<compile_context>
chip_gen: v7x
topology: tpu7x:2x2x1
jax: 0.10.0
libtpu: 0.0.40
codegen_flags: <defaults>
</compile_context>

<pallas_src>
import functools

import jax
import jax.numpy as jnp
from jax import lax
from jax.experimental import pallas as pl
from jax.experimental.pallas import tpu as pltpu


# ----------------------------------------------------------------------------
# helpers
# ----------------------------------------------------------------------------
def _round_up(x, m):
    return ((x + m - 1) // m) * m


def _pick_tile(padded, max_tile, unit=128):
    """Largest multiple of `unit` that divides `padded` and is <= max_tile."""
    best = unit
    t = unit
    while t <= min(padded, max_tile):
        if padded % t == 0:
            best = t
        t += unit
    return best


# ----------------------------------------------------------------------------
# Pallas tiled linear kernel: y = act((a @ w) * scale + bias)
# refs: a, w, [scale], bias, [alpha], out, acc_scratch
# ----------------------------------------------------------------------------
def _linear_kernel(*refs, activation, quantized):
    acc_ref = refs[-1]
    o_ref = refs[-2]
    it = iter(refs[:-2])
    a_ref = next(it)
    w_ref = next(it)
    scale_ref = next(it) if quantized else None
    bias_ref = next(it)
    alpha_ref = next(it) if activation == "prelu" else None

    k = pl.program_id(2)

    @pl.when(k == 0)
    def _():
        acc_ref[...] = jnp.zeros_like(acc_ref)

    w = w_ref[...]
    if quantized:
        w = w.astype(jnp.bfloat16)          # int8 weight -> bf16 for the MXU
    acc_ref[...] += jnp.dot(a_ref[...], w, preferred_element_type=jnp.float32)

    @pl.when(k == pl.num_programs(2) - 1)
    def _():
        r = acc_ref[...]
        if quantized:
            r = r * scale_ref[...]          # per-output-channel dequant scale
        r = r + bias_ref[...]
        if activation == "relu":
            r = jnp.maximum(r, 0.0)
        elif activation == "prelu":
            r = jnp.where(r >= 0.0, r, alpha_ref[...] * r)
        o_ref[...] = r.astype(o_ref.dtype)


def make_linear_params(w, b, dtype=jnp.bfloat16, k_mult=512, n_mult=128,
                       quantize=False):
    """Pre-pad / pre-layout / (optionally) quantize a (K, N) weight ONCE."""
    K, N = w.shape
    Kp, Np = _round_up(K, k_mult), _round_up(N, n_mult)
    if quantize:
        absmax = jnp.max(jnp.abs(w), axis=0)                       # (N,)
        scale = jnp.where(absmax > 0, absmax / 127.0, 1.0).astype(jnp.float32)
        wq = jnp.clip(jnp.round(w / scale), -127, 127).astype(jnp.int8)
        wp = jnp.zeros((Kp, Np), jnp.int8).at[:K, :N].set(wq)
        sp = jnp.ones((1, Np), jnp.float32).at[0, :N].set(scale)
    else:
        wp = jnp.zeros((Kp, Np), dtype).at[:K, :N].set(w.astype(dtype))
        sp = None
    bp = jnp.zeros((1, Np), jnp.float32).at[0, :N].set(b.astype(jnp.float32))
    return {"w": wp, "b": bp, "scale": sp, "alpha": None}


def pallas_linear(a, lp, n_out=None, activation=None, out_dtype=jnp.float32):
    """a: (M, K); lp: pre-padded weight dict -> (M, n_out or Np) out_dtype."""
    M, K = a.shape
    Kp, Np = lp["w"].shape
    assert K <= Kp
    quantized = lp["scale"] is not None

    gemv = M <= 8
    max_tk = 2048 if gemv else 512
    max_tn = 1024 if gemv else 512          # GEMV: >=2 N tiles at Np=2048 (v7x)
    tk = _pick_tile(Kp, max_tk)
    tn = _pick_tile(Np, max_tn)
    Mp = _round_up(M, 16)                   # bf16-safe second-minor padding
    if Mp <= 512:
        tm = Mp
    else:
        tm = 256
        Mp = _round_up(M, tm)

    # Cast activations to bf16 ONCE here (not per grid step inside the kernel).
    a_p = jnp.pad(a.astype(jnp.bfloat16), ((0, Mp - M), (0, Kp - K)))

    inputs = [a_p, lp["w"]]
    in_specs = [pl.BlockSpec((tm, tk), lambda i, j, k: (i, k)),
                pl.BlockSpec((tk, tn), lambda i, j, k: (k, j))]
    if quantized:
        inputs.append(lp["scale"])
        in_specs.append(pl.BlockSpec((1, tn), lambda i, j, k: (0, j)))
    inputs.append(lp["b"])
    in_specs.append(pl.BlockSpec((1, tn), lambda i, j, k: (0, j)))
    if activation == "prelu":
        inputs.append(lp["alpha"])
        in_specs.append(pl.BlockSpec((1, tn), lambda i, j, k: (0, j)))

    grid = (Mp // tm, Np // tn, Kp // tk)
    out = pl.pallas_call(
        functools.partial(_linear_kernel, activation=activation,
                          quantized=quantized),
        out_shape=jax.ShapeDtypeStruct((Mp, Np), out_dtype),
        grid_spec=pltpu.PrefetchScalarGridSpec(
            num_scalar_prefetch=0,
            grid=grid,
            in_specs=in_specs,
            out_specs=pl.BlockSpec((tm, tn), lambda i, j, k: (i, j)),
            scratch_shapes=[pltpu.VMEM((tm, tn), jnp.float32)],
        ),
        compiler_params=pltpu.CompilerParams(
            dimension_semantics=("parallel", "parallel", "arbitrary"),
            vmem_limit_bytes=32 * 1024 * 1024),   # safe ceiling on v7x's 64MiB
    )(*inputs)

    out = out[:M]
    if n_out is not None:
        out = out[:, :n_out]
    return out


# ----------------------------------------------------------------------------
# Conv / pool glue (NHWC im2col feeds the Pallas matmul kernel).
# Activations carry the 128-padded channel count (lane-dense) end-to-end.
# ----------------------------------------------------------------------------
def conv2d_nhwc(x, lp, kh, kw, stride=1, padding=0, activation=None):
    # TODO(synk): im2col patches are still materialized through XLA before the
    # Pallas call; a shifted-window index_map over the (kh,kw) taps would avoid
    # this extra HBM round trip for the batch-1 latency-bound case.
    N, H, W, C = x.shape
    OH = (H + 2 * padding - kh) // stride + 1
    OW = (W + 2 * padding - kw) // stride + 1
    xp = jnp.pad(x, ((0, 0), (padding, padding), (padding, padding), (0, 0)))
    cols = []
    for i in range(kh):
        for j in range(kw):
            cols.append(xp[:, i:i + stride * OH:stride,
                           j:j + stride * OW:stride, :])
    patches = jnp.stack(cols, axis=3)                  # (N, OH, OW, kh*kw, C)
    a = patches.reshape(N * OH * OW, kh * kw * C)      # channels on lane axis
    out = pallas_linear(a, lp, activation=activation, out_dtype=jnp.bfloat16)
    return out.reshape(N, OH, OW, out.shape[1])        # padded, lane-dense NHWC


def maxpool2d_nhwc(x, k=3, s=2):
    # TODO(synk): MaxPool2d stays as lax.reduce_window glue (no Pallas kernel).
    return lax.reduce_window(x, jnp.array(-jnp.inf, x.dtype), lax.max,
                             (1, k, k, 1), (1, s, s, 1), "VALID")


def _flatten_nchw(x_nhwc):
    # Match the PyTorch .view(1, -1) ordering (NCHW flatten); tensors are tiny.
    return jnp.transpose(x_nhwc, (0, 3, 1, 2)).reshape(x_nhwc.shape[0], -1)


# ----------------------------------------------------------------------------
# Model forward
# ----------------------------------------------------------------------------
def alexnet_features(x, p):
    feats = {}
    x = conv2d_nhwc(x, p["conv0"], 11, 11, stride=4, padding=2,
                    activation="relu")                                 # idx 0,1
    x = maxpool2d_nhwc(x)                                              # idx 2
    feats[2] = x
    x = conv2d_nhwc(x, p["conv3"], 5, 5, padding=2, activation="relu")
    x = maxpool2d_nhwc(x)                                              # idx 5
    feats[5] = x
    x = conv2d_nhwc(x, p["conv6"], 3, 3, padding=1, activation="relu")
    x = conv2d_nhwc(x, p["conv8"], 3, 3, padding=1, activation="relu")
    x = conv2d_nhwc(x, p["conv10"], 3, 3, padding=1, activation="relu")
    feats[11] = x                                                      # idx 11
    x = maxpool2d_nhwc(x)                                              # idx 12
    return x, feats


def conv_layers_forward(x_nchw, p, cfg):
    # TODO(synk): Re3Net_.forward calls conv_layers(x) with a single argument
    # although alexnet_conv_layers.forward takes (x, y); both siamese streams
    # see the same image, so the identical branch is computed once and
    # concatenated with itself (siamese dedup).
    x = jnp.transpose(x_nchw, (0, 2, 3, 1))        # single NCHW -> NHWC relayout
    x12, feats = alexnet_features(x, p)

    def skip(feat, lp, cout_real):
        y = conv2d_nhwc(feat, lp, 1, 1, activation="prelu")   # PReLU in epilogue
        return _flatten_nchw(y[..., :cout_real])

    branch = jnp.concatenate([
        skip(feats[2], p["skip1"], cfg["skip1"]),
        skip(feats[5], p["skip2"], cfg["skip2"]),
        skip(feats[11], p["skip5"], cfg["skip5"]),
        _flatten_nchw(x12[..., :cfg["c10"]]),
    ], axis=1)
    final = jnp.concatenate([branch, branch], axis=1)          # (1, conv6_in)
    return pallas_linear(final, p["conv6_fc"], n_out=cfg["conv6_out"],
                         activation="relu")                    # (1, conv6_out)


def lstm_cell(x, h, c, lp):
    """PyTorch nn.LSTMCell semantics (gate order i, f, g, o), fused gate GEMV."""
    H = c.shape[1]
    xh = jnp.concatenate([x, h], axis=1)
    gates = pallas_linear(xh, lp, n_out=4 * H)   # [x|h] @ [W_ih; W_hh] + bias
    i_g, f_g, g_g, o_g = jnp.split(gates, 4, axis=1)
    c_new = jax.nn.sigmoid(f_g) * c + jax.nn.sigmoid(i_g) * jnp.tanh(g_g)
    h_new = jax.nn.sigmoid(o_g) * jnp.tanh(c_new)
    return h_new, c_new


def re3net_forward(x, p, cfg=None):
    out = conv_layers_forward(x, p, cfg)                        # (1, conv6_out)
    # lstm_out, self.h0 = lstm1(out, (h0, c0))  -> self.h0 := new *cell* state
    lstm1_h, lstm1_c = lstm_cell(out, p["h_init"], p["c_init"], p["lstm1"])
    lstm2_in = jnp.concatenate([out, lstm1_h], axis=1)
    # lstm2 gets (self.h0 == lstm1's new cell state, original c0): original quirk
    lstm2_h, _ = lstm_cell(lstm2_in, lstm1_c, p["c_init"], p["lstm2"])
    return pallas_linear(lstm2_h, p["fc_final"], n_out=4)       # (1, 4)


# ----------------------------------------------------------------------------
# Configuration + deterministic parameter init
# ----------------------------------------------------------------------------
def make_config(image, c0, c3, c6, c8, c10, skip1, skip2, skip5, conv6_out, lstm):
    def conv_o(h, k, s, p):
        return (h + 2 * p - k) // s + 1

    def pool_o(h):
        return (h - 3) // 2 + 1

    h2 = pool_o(conv_o(image, 11, 4, 2))
    h5 = pool_o(h2)
    h12 = pool_o(h5)
    flat = skip1 * h2 * h2 + skip2 * h5 * h5 + skip5 * h5 * h5 + c10 * h12 * h12
    return dict(image=image, c0=c0, c3=c3, c6=c6, c8=c8, c10=c10,
                skip1=skip1, skip2=skip2, skip5=skip5,
                conv6_in=2 * flat, conv6_out=conv6_out, lstm=lstm)


# Real Re3Net_ sizes: 227x227 input -> conv6_in = 2*37104 = 74208, LSTM_SIZE=512.
CFG_FULL = make_config(227, 64, 192, 384, 256, 256, 16, 32, 64, 2048, 512)
# Scaled-down config for the self-test (same layer graph, small dims).
CFG_SMALL = make_config(67, 16, 32, 48, 32, 32, 8, 8, 16, 256, 64)


def init_params(key, cfg):
    keys = iter(jax.random.split(key, 32))

    def he(shape, fan_in):
        return jax.random.normal(next(keys), shape, jnp.float32) * (fan_in ** -0.5)

    def cp(c):                      # carried (lane-dense) channel count
        return _round_up(c, 128)

    def conv_p(cin, cin_pad, cout, k, k_mult=512):
        # torch weight layout (O, C, kh, kw) -> im2col layout (kh, kw, Cpad, O)
        # with zero rows at padded input-channel positions.
        w = he((cout, cin, k, k), cin * k * k)
        w_khwc = jnp.transpose(w, (2, 3, 1, 0))
        wm = jnp.zeros((k, k, cin_pad, cout), jnp.float32)
        wm = wm.at[:, :, :cin, :].set(w_khwc).reshape(k * k * cin_pad, cout)
        return make_linear_params(wm, jnp.zeros((cout,), jnp.float32),
                                  dtype=jnp.bfloat16, k_mult=k_mult)

    def lstm_p(din, hidden):
        w = jnp.concatenate([he((din, 4 * hidden), din),
                             he((hidden, 4 * hidden), hidden)], axis=0)
        return make_linear_params(w, jnp.zeros((4 * hidden,), jnp.float32),
                                  k_mult=512, quantize=True)

    H = cfg["lstm"]
    p = {}
    # AlexNet features (synthetic weights; the pretrained checkpoint is not loaded).
    p["conv0"] = conv_p(3, 3, cfg["c0"], 11)
    p["conv3"] = conv_p(cfg["c0"], cp(cfg["c0"]), cfg["c3"], 5)
    p["conv6"] = conv_p(cfg["c3"], cp(cfg["c3"]), cfg["c6"], 3)
    p["conv8"] = conv_p(cfg["c6"], cp(cfg["c6"]), cfg["c8"], 3)
    p["conv10"] = conv_p(cfg["c8"], cp(cfg["c8"]), cfg["c10"], 3)
    # skip 1x1 convs + PReLU (shared alpha, PyTorch default 0.25) fused in epilogue
    p["skip1"] = conv_p(cfg["c0"], cp(cfg["c0"]), cfg["skip1"], 1, k_mult=128)
    p["skip2"] = conv_p(cfg["c3"], cp(cfg["c3"]), cfg["skip2"], 1, k_mult=128)
    p["skip5"] = conv_p(cfg["c10"], cp(cfg["c10"]), cfg["skip5"], 1, k_mult=128)
    for name in ("skip1", "skip2", "skip5"):
        np_ = p[name]["w"].shape[1]
        p[name]["alpha"] = jnp.full((1, np_), 0.25, jnp.float32)
    # conv6 Linear + ReLU and LSTM gates: int8 weights (per-channel scale in
    # the epilogue, bf16 MXU, f32 accumulation) -> halves the dominant
    # HBM-bound GEMV weight stream; big K padding enables tk=2048.
    p["conv6_fc"] = make_linear_params(
        he((cfg["conv6_in"], cfg["conv6_out"]), cfg["conv6_in"]),
        jnp.zeros((cfg["conv6_out"],), jnp.float32),
        k_mult=2048, quantize=True)
    p["lstm1"] = lstm_p(cfg["conv6_out"], H)
    p["lstm2"] = lstm_p(cfg["conv6_out"] + H, H)
    p["fc_final"] = make_linear_params(he((H, 4), H),
                                       jnp.zeros((4,), jnp.float32),
                                       dtype=jnp.bfloat16, k_mult=128)
    # initial hidden / cell state (torch.rand equivalent) -- NOTE: distinct keys
    # from the conv weights (previous version clobbered conv0 with "c0").
    p["h_init"] = jax.random.uniform(next(keys), (1, H), jnp.float32)
    p["c_init"] = jax.random.uniform(next(keys), (1, H), jnp.float32)
    return p


if __name__ == "__main__":
    cfg = CFG_SMALL   # scaled-down Re3Net_ (same layer graph); CFG_FULL = real sizes
    key = jax.random.PRNGKey(0)
    pkey, xkey = jax.random.split(key)
    params = init_params(pkey, cfg)
    # batch must be 1 (x.view(1, -1) in the module); NCHW like the PyTorch input.
    x = jax.random.normal(xkey, (1, 3, cfg["image"], cfg["image"]), jnp.float32)

    fwd = jax.jit(functools.partial(re3net_forward, cfg=cfg))
    out = fwd(x, params)
    jax.block_until_ready(out)
    assert out.shape == (1, 4) and bool(jnp.all(jnp.isfinite(out)))
    print("KERNEL_OK")
</pallas_src>

<mosaic_0001>
module attributes {stable_mosaic.version = 11 : i64} {
  func.func @_linear_kernel(%arg0: i32, %arg1: i32, %arg2: i32, %arg3: memref<256x512xbf16, #tpu.memory_space<vmem>>, %arg4: memref<512x128xbf16, #tpu.memory_space<vmem>>, %arg5: memref<1x128xf32, #tpu.memory_space<vmem>>, %arg6: memref<256x128xbf16, #tpu.memory_space<vmem>>, %arg7: memref<256x128xf32, #tpu.memory_space<vmem>>) attributes {dimension_semantics = [#tpu.dimension_semantics<parallel>, #tpu.dimension_semantics<parallel>, #tpu.dimension_semantics<arbitrary>], iteration_bounds = array<i64: 1, 1, 1>, scalar_prefetch = 0 : i64, scratch_operands = 1 : i64, tpu.core_type = #tpu.core_type<tc>, window_params = [{transform_indices = @transform_0, window_bounds = array<i64: 256, 512>}, {transform_indices = @transform_1, window_bounds = array<i64: 512, 128>}, {transform_indices = @transform_2, window_bounds = array<i64: 1, 128>}, {transform_indices = @transform_3, window_bounds = array<i64: 256, 128>}]} {
    %c0_i32 = arith.constant 0 : i32
    %0 = arith.cmpi eq, %arg2, %c0_i32 : i32
    %1 = arith.extui %0 : i1 to i32
    %c0_i32_0 = arith.constant 0 : i32
    %2 = arith.cmpi ne, %1, %c0_i32_0 : i32
    scf.if %2 {
      %cst_10 = arith.constant 0.000000e+00 : f32
      %12 = vector.broadcast %cst_10 : f32 to vector<256x128xf32>
      %c0_11 = arith.constant 0 : index
      %c0_12 = arith.constant 0 : index
      %13 = vector.load %arg7[%c0_11, %c0_12] : memref<256x128xf32, #tpu.memory_space<vmem>>, vector<256x128xf32>
      tpu.vector_store %arg7[%c0_11, %c0_12], %12 {strides = array<i32>} : memref<256x128xf32, #tpu.memory_space<vmem>>, vector<256x128xf32>,
    } else {
    }
    %c0 = arith.constant 0 : index
    %c0_1 = arith.constant 0 : index
    %3 = vector.load %arg4[%c0, %c0_1] : memref<512x128xbf16, #tpu.memory_space<vmem>>, vector<512x128xbf16>
    %c0_2 = arith.constant 0 : index
    %c0_3 = arith.constant 0 : index
    %4 = vector.load %arg7[%c0_2, %c0_3] : memref<256x128xf32, #tpu.memory_space<vmem>>, vector<256x128xf32>
    %c0_4 = arith.constant 0 : index
    %c0_5 = arith.constant 0 : index
    %5 = vector.load %arg3[%c0_4, %c0_5] : memref<256x512xbf16, #tpu.memory_space<vmem>>, vector<256x512xbf16>
    %cst = arith.constant dense<0.000000e+00> : vector<256x128xf32>
    %6 = tpu.matmul %5, %3, %cst {dimension_numbers = #tpu.dot_dimension_numbers<[1], [0], [0], [1], [0, 0, 1, 1], [], []>} : vector<256x512xbf16>, vector<512x128xbf16>, vector<256x128xf32> -> vector<256x128xf32>
    %7 = arith.addf %4, %6 : vector<256x128xf32>
    %c0_6 = arith.constant 0 : index
    %c0_7 = arith.constant 0 : index
    %8 = vector.load %arg7[%c0_6, %c0_7] : memref<256x128xf32, #tpu.memory_space<vmem>>, vector<256x128xf32>
    tpu.vector_store %arg7[%c0_6, %c0_7], %7 {strides = array<i32>} : memref<256x128xf32, #tpu.memory_space<vmem>>, vector<256x128xf32>,
    %c0_i32_8 = arith.constant 0 : i32
    %9 = arith.cmpi eq, %arg2, %c0_i32_8 : i32
    %10 = arith.extui %9 : i1 to i32
    %c0_i32_9 = arith.constant 0 : i32
    %11 = arith.cmpi ne, %10, %c0_i32_9 : i32
    scf.if %11 {
      %c0_10 = arith.constant 0 : index
      %c0_11 = arith.constant 0 : index
      %12 = vector.load %arg7[%c0_10, %c0_11] : memref<256x128xf32, #tpu.memory_space<vmem>>, vector<256x128xf32>
      %c0_12 = arith.constant 0 : index
      %c0_13 = arith.constant 0 : index
      %13 = vector.load %arg5[%c0_12, %c0_13] : memref<1x128xf32, #tpu.memory_space<vmem>>, vector<1x128xf32>
      %14 = vector.broadcast %13 : vector<1x128xf32> to vector<256x128xf32>
      %15 = arith.addf %12, %14 : vector<256x128xf32>
      %cst_14 = arith.constant 0.000000e+00 : f32
      %16 = vector.broadcast %cst_14 : f32 to vector<256x128xf32>
      %17 = arith.maximumf %15, %16 : vector<256x128xf32>
      %18 = arith.truncf %17 : vector<256x128xf32> to vector<256x128xbf16>
      %c0_15 = arith.constant 0 : index
      %c0_16 = arith.constant 0 : index
      %19 = vector.load %arg6[%c0_15, %c0_16] : memref<256x128xbf16, #tpu.memory_space<vmem>>, vector<256x128xbf16>
      tpu.vector_store %arg6[%c0_15, %c0_16], %18 {strides = array<i32>} : memref<256x128xbf16, #tpu.memory_space<vmem>>, vector<256x128xbf16>,
    } else {
    }
    return
  }
  func.func @transform_0(%arg0: i32, %arg1: i32, %arg2: i32) -> (i32, i32) {
    %c0_i32 = arith.constant 0 : i32
    return %arg0, %arg2 : i32, i32
  }
  func.func @transform_1(%arg0: i32, %arg1: i32, %arg2: i32) -> (i32, i32) {
    %c0_i32 = arith.constant 0 : i32
    return %arg2, %arg1 : i32, i32
  }
  func.func @transform_2(%arg0: i32, %arg1: i32, %arg2: i32) -> (i32, i32) {
    %c0_i32 = arith.constant 0 : i32
    %c0_i32_0 = arith.constant 0 : i32
    return %c0_i32, %arg1 : i32, i32
  }
  func.func @transform_3(%arg0: i32, %arg1: i32, %arg2: i32) -> (i32, i32) {
    %c0_i32 = arith.constant 0 : i32
    return %arg0, %arg1 : i32, i32
  }
}

module attributes {stable_mosaic.version = 11 : i64} {
  func.func @_linear_kernel(%arg0: i32, %arg1: i32, %arg2: i32, %arg3: memref<64x512xbf16, #tpu.memory_space<vmem>>, %arg4: memref<512x128xbf16, #tpu.memory_space<vmem>>, %arg5: memref<1x128xf32, #tpu.memory_space<vmem>>, %arg6: memref<64x128xbf16, #tpu.memory_space<vmem>>, %arg7: memref<64x128xf32, #tpu.memory_space<vmem>>) attributes {dimension_semantics = [#tpu.dimension_semantics<parallel>, #tpu.dimension_semantics<parallel>, #tpu.dimension_semantics<arbitrary>], iteration_bounds = array<i64: 1, 1, 7>, scalar_prefetch = 0 : i64, scratch_operands = 1 : i64, tpu.core_type = #tpu.core_type<tc>, window_params = [{transform_indices = @transform_0, window_bounds = array<i64: 64, 512>}, {transform_indices = @transform_1, window_bounds = array<i64: 512, 128>}, {transform_indices = @transform_2, window_bounds = array<i64: 1, 128>}, {transform_indices = @transform_3, window_bounds = array<i64: 64, 128>}]} {
    %c0_i32 = arith.constant 0 : i32
    %0 = arith.cmpi eq, %arg2, %c0_i32 : i32
    %1 = arith.extui %0 : i1 to i32
    %c0_i32_0 = arith.constant 0 : i32
    %2 = arith.cmpi ne, %1, %c0_i32_0 : i32
    scf.if %2 {
      %cst_9 = arith.constant 0.000000e+00 : f32
      %12 = vector.broadcast %cst_9 : f32 to vector<64x128xf32>
      %c0_10 = arith.constant 0 : index
      %c0_11 = arith.constant 0 : index
      %13 = vector.load %arg7[%c0_10, %c0_11] : memref<64x128xf32, #tpu.memory_space<vmem>>, vector<64x128xf32>
      tpu.vector_store %arg7[%c0_10, %c0_11], %12 {strides = array<i32>} : memref<64x128xf32, #tpu.memory_space<vmem>>, vector<64x128xf32>,
    } else {
    }
    %c0 = arith.constant 0 : index
    %c0_1 = arith.constant 0 : index
    %3 = vector.load %arg4[%c0, %c0_1] : memref<512x128xbf16, #tpu.memory_space<vmem>>, vector<512x128xbf16>
    %c0_2 = arith.constant 0 : index
    %c0_3 = arith.constant 0 : index
    %4 = vector.load %arg7[%c0_2, %c0_3] : memref<64x128xf32, #tpu.memory_space<vmem>>, vector<64x128xf32>
    %c0_4 = arith.constant 0 : index
    %c0_5 = arith.constant 0 : index
    %5 = vector.load %arg3[%c0_4, %c0_5] : memref<64x512xbf16, #tpu.memory_space<vmem>>, vector<64x512xbf16>
    %cst = arith.constant dense<0.000000e+00> : vector<64x128xf32>
    %6 = tpu.matmul %5, %3, %cst {dimension_numbers = #tpu.dot_dimension_numbers<[1], [0], [0], [1], [0, 0, 1, 1], [], []>} : vector<64x512xbf16>, vector<512x128xbf16>, vector<64x128xf32> -> vector<64x128xf32>
    %7 = arith.addf %4, %6 : vector<64x128xf32>
    %c0_6 = arith.constant 0 : index
    %c0_7 = arith.constant 0 : index
    %8 = vector.load %arg7[%c0_6, %c0_7] : memref<64x128xf32, #tpu.memory_space<vmem>>, vector<64x128xf32>
    tpu.vector_store %arg7[%c0_6, %c0_7], %7 {strides = array<i32>} : memref<64x128xf32, #tpu.memory_space<vmem>>, vector<64x128xf32>,
    %c6_i32 = arith.constant 6 : i32
    %9 = arith.cmpi eq, %arg2, %c6_i32 : i32
    %10 = arith.extui %9 : i1 to i32
    %c0_i32_8 = arith.constant 0 : i32
    %11 = arith.cmpi ne, %10, %c0_i32_8 : i32
    scf.if %11 {
      %c0_9 = arith.constant 0 : index
      %c0_10 = arith.constant 0 : index
      %12 = vector.load %arg7[%c0_9, %c0_10] : memref<64x128xf32, #tpu.memory_space<vmem>>, vector<64x128xf32>
      %c0_11 = arith.constant 0 : index
      %c0_12 = arith.constant 0 : index
      %13 = vector.load %arg5[%c0_11, %c0_12] : memref<1x128xf32, #tpu.memory_space<vmem>>, vector<1x128xf32>
      %14 = vector.broadcast %13 : vector<1x128xf32> to vector<64x128xf32>
      %15 = arith.addf %12, %14 : vector<64x128xf32>
      %cst_13 = arith.constant 0.000000e+00 : f32
      %16 = vector.broadcast %cst_13 : f32 to vector<64x128xf32>
      %17 = arith.maximumf %15, %16 : vector<64x128xf32>
      %18 = arith.truncf %17 : vector<64x128xf32> to vector<64x128xbf16>
      %c0_14 = arith.constant 0 : index
      %c0_15 = arith.constant 0 : index
      %19 = vector.load %arg6[%c0_14, %c0_15] : memref<64x128xbf16, #tpu.memory_space<vmem>>, vector<64x128xbf16>
      tpu.vector_store %arg6[%c0_14, %c0_15], %18 {strides = array<i32>} : memref<64x128xbf16, #tpu.memory_space<vmem>>, vector<64x128xbf16>,
    } else {
    }
    return
  }
  func.func @transform_0(%arg0: i32, %arg1: i32, %arg2: i32) -> (i32, i32) {
    %c0_i32 = arith.constant 0 : i32
    return %arg0, %arg2 : i32, i32
  }
  func.func @transform_1(%arg0: i32, %arg1: i32, %arg2: i32) -> (i32, i32) {
    %c0_i32 = arith.constant 0 : i32
    return %arg2, %arg1 : i32, i32
  }
  func.func @transform_2(%arg0: i32, %arg1: i32, %arg2: i32) -> (i32, i32) {
    %c0_i32 = arith.constant 0 : i32
    %c0_i32_0 = arith.constant 0 : i32
    return %c0_i32, %arg1 : i32, i32
  }
  func.func @transform_3(%arg0: i32, %arg1: i32, %arg2: i32) -> (i32, i32) {
    %c0_i32 = arith.constant 0 : i32
    return %arg0, %arg1 : i32, i32
  }
}

module attributes {stable_mosaic.version = 11 : i64} {
  func.func @_linear_kernel(%arg0: i32, %arg1: i32, %arg2: i32, %arg3: memref<16x512xbf16, #tpu.memory_space<vmem>>, %arg4: memref<512x128xbf16, #tpu.memory_space<vmem>>, %arg5: memref<1x128xf32, #tpu.memory_space<vmem>>, %arg6: memref<16x128xbf16, #tpu.memory_space<vmem>>, %arg7: memref<16x128xf32, #tpu.memory_space<vmem>>) attributes {dimension_semantics = [#tpu.dimension_semantics<parallel>, #tpu.dimension_semantics<parallel>, #tpu.dimension_semantics<arbitrary>], iteration_bounds = array<i64: 1, 1, 3>, scalar_prefetch = 0 : i64, scratch_operands = 1 : i64, tpu.core_type = #tpu.core_type<tc>, window_params = [{transform_indices = @transform_0, window_bounds = array<i64: 16, 512>}, {transform_indices = @transform_1, window_bounds = array<i64: 512, 128>}, {transform_indices = @transform_2, window_bounds = array<i64: 1, 128>}, {transform_indices = @transform_3, window_bounds = array<i64: 16, 128>}]} {
    %c0_i32 = arith.constant 0 : i32
    %0 = arith.cmpi eq, %arg2, %c0_i32 : i32
    %1 = arith.extui %0 : i1 to i32
    %c0_i32_0 = arith.constant 0 : i32
    %2 = arith.cmpi ne, %1, %c0_i32_0 : i32
    scf.if %2 {
      %cst_9 = arith.constant 0.000000e+00 : f32
      %12 = vector.broadcast %cst_9 : f32 to vector<16x128xf32>
      %c0_10 = arith.constant 0 : index
      %c0_11 = arith.constant 0 : index
      %13 = vector.load %arg7[%c0_10, %c0_11] : memref<16x128xf32, #tpu.memory_space<vmem>>, vector<16x128xf32>
      tpu.vector_store %arg7[%c0_10, %c0_11], %12 {strides = array<i32>} : memref<16x128xf32, #tpu.memory_space<vmem>>, vector<16x128xf32>,
    } else {
    }
    %c0 = arith.constant 0 : index
    %c0_1 = arith.constant 0 : index
    %3 = vector.load %arg4[%c0, %c0_1] : memref<512x128xbf16, #tpu.memory_space<vmem>>, vector<512x128xbf16>
    %c0_2 = arith.constant 0 : index
    %c0_3 = arith.constant 0 : index
    %4 = vector.load %arg7[%c0_2, %c0_3] : memref<16x128xf32, #tpu.memory_space<vmem>>, vector<16x128xf32>
    %c0_4 = arith.constant 0 : index
    %c0_5 = arith.constant 0 : index
    %5 = vector.load %arg3[%c0_4, %c0_5] : memref<16x512xbf16, #tpu.memory_space<vmem>>, vector<16x512xbf16>
    %cst = arith.constant dense<0.000000e+00> : vector<16x128xf32>
    %6 = tpu.matmul %5, %3, %cst {dimension_numbers = #tpu.dot_dimension_numbers<[1], [0], [0], [1], [0, 0, 1, 1], [], []>} : vector<16x512xbf16>, vector<512x128xbf16>, vector<16x128xf32> -> vector<16x128xf32>
    %7 = arith.addf %4, %6 : vector<16x128xf32>
    %c0_6 = arith.constant 0 : index
    %c0_7 = arith.constant 0 : index
    %8 = vector.load %arg7[%c0_6, %c0_7] : memref<16x128xf32, #tpu.memory_space<vmem>>, vector<16x128xf32>
    tpu.vector_store %arg7[%c0_6, %c0_7], %7 {strides = array<i32>} : memref<16x128xf32, #tpu.memory_space<vmem>>, vector<16x128xf32>,
    %c2_i32 = arith.constant 2 : i32
    %9 = arith.cmpi eq, %arg2, %c2_i32 : i32
    %10 = arith.extui %9 : i1 to i32
    %c0_i32_8 = arith.constant 0 : i32
    %11 = arith.cmpi ne, %10, %c0_i32_8 : i32
    scf.if %11 {
      %c0_9 = arith.constant 0 : index
      %c0_10 = arith.constant 0 : index
      %12 = vector.load %arg7[%c0_9, %c0_10] : memref<16x128xf32, #tpu.memory_space<vmem>>, vector<16x128xf32>
      %c0_11 = arith.constant 0 : index
      %c0_12 = arith.constant 0 : index
      %13 = vector.load %arg5[%c0_11, %c0_12] : memref<1x128xf32, #tpu.memory_space<vmem>>, vector<1x128xf32>
      %14 = vector.broadcast %13 : vector<1x128xf32> to vector<16x128xf32>
      %15 = arith.addf %12, %14 : vector<16x128xf32>
      %cst_13 = arith.constant 0.000000e+00 : f32
      %16 = vector.broadcast %cst_13 : f32 to vector<16x128xf32>
      %17 = arith.maximumf %15, %16 : vector<16x128xf32>
      %18 = arith.truncf %17 : vector<16x128xf32> to vector<16x128xbf16>
      %c0_14 = arith.constant 0 : index
      %c0_15 = arith.constant 0 : index
      %19 = vector.load %arg6[%c0_14, %c0_15] : memref<16x128xbf16, #tpu.memory_space<vmem>>, vector<16x128xbf16>
      tpu.vector_store %arg6[%c0_14, %c0_15], %18 {strides = array<i32>} : memref<16x128xbf16, #tpu.memory_space<vmem>>, vector<16x128xbf16>,
    } else {
    }
    return
  }
  func.func @transform_0(%arg0: i32, %arg1: i32, %arg2: i32) -> (i32, i32) {
    %c0_i32 = arith.constant 0 : i32
    return %arg0, %arg2 : i32, i32
  }
  func.func @transform_1(%arg0: i32, %arg1: i32, %arg2: i32) -> (i32, i32) {
    %c0_i32 = arith.constant 0 : i32
    return %arg2, %arg1 : i32, i32
  }
  func.func @transform_2(%arg0: i32, %arg1: i32, %arg2: i32) -> (i32, i32) {
    %c0_i32 = arith.constant 0 : i32
    %c0_i32_0 = arith.constant 0 : i32
    return %c0_i32, %arg1 : i32, i32
  }
  func.func @transform_3(%arg0: i32, %arg1: i32, %arg2: i32) -> (i32, i32) {
    %c0_i32 = arith.constant 0 : i32
    return %arg0, %arg1 : i32, i32
  }
}

module attributes {stable_mosaic.version = 11 : i64} {
  func.func @_linear_kernel(%arg0: i32, %arg1: i32, %arg2: i32, %arg3: memref<16x128xbf16, #tpu.memory_space<vmem>>, %arg4: memref<128x128xbf16, #tpu.memory_space<vmem>>, %arg5: memref<1x128xf32, #tpu.memory_space<vmem>>, %arg6: memref<1x128xf32, #tpu.memory_space<vmem>>, %arg7: memref<16x128xbf16, #tpu.memory_space<vmem>>, %arg8: memref<16x128xf32, #tpu.memory_space<vmem>>) attributes {dimension_semantics = [#tpu.dimension_semantics<parallel>, #tpu.dimension_semantics<parallel>, #tpu.dimension_semantics<arbitrary>], iteration_bounds = array<i64: 1, 1, 1>, scalar_prefetch = 0 : i64, scratch_operands = 1 : i64, tpu.core_type = #tpu.core_type<tc>, window_params = [{transform_indices = @transform_0, window_bounds = array<i64: 16, 128>}, {transform_indices = @transform_1, window_bounds = array<i64: 128, 128>}, {transform_indices = @transform_2, window_bounds = array<i64: 1, 128>}, {transform_indices = @transform_3, window_bounds = array<i64: 1, 128>}, {transform_indices = @transform_4, window_bounds = array<i64: 16, 128>}]} {
    %c0_i32 = arith.constant 0 : i32
    %0 = arith.cmpi eq, %arg2, %c0_i32 : i32
    %1 = arith.extui %0 : i1 to i32
    %c0_i32_0 = arith.constant 0 : i32
    %2 = arith.cmpi ne, %1, %c0_i32_0 : i32
    scf.if %2 {
      %cst_10 = arith.constant 0.000000e+00 : f32
      %12 = vector.broadcast %cst_10 : f32 to vector<16x128xf32>
      %c0_11 = arith.constant 0 : index
      %c0_12 = arith.constant 0 : index
      %13 = vector.load %arg8[%c0_11, %c0_12] : memref<16x128xf32, #tpu.memory_space<vmem>>, vector<16x128xf32>
      tpu.vector_store %arg8[%c0_11, %c0_12], %12 {strides = array<i32>} : memref<16x128xf32, #tpu.memory_space<vmem>>, vector<16x128xf32>,
    } else {
    }
    %c0 = arith.constant 0 : index
    %c0_1 = arith.constant 0 : index
    %3 = vector.load %arg4[%c0, %c0_1] : memref<128x128xbf16, #tpu.memory_space<vmem>>, vector<128x128xbf16>
    %c0_2 = arith.constant 0 : index
    %c0_3 = arith.constant 0 : index
    %4 = vector.load %arg8[%c0_2, %c0_3] : memref<16x128xf32, #tpu.memory_space<vmem>>, vector<16x128xf32>
    %c0_4 = arith.constant 0 : index
    %c0_5 = arith.constant 0 : index
    %5 = vector.load %arg3[%c0_4, %c0_5] : memref<16x128xbf16, #tpu.memory_space<vmem>>, vector<16x128xbf16>
    %cst = arith.constant dense<0.000000e+00> : vector<16x128xf32>
    %6 = tpu.matmul %5, %3, %cst {dimension_numbers = #tpu.dot_dimension_numbers<[1], [0], [0], [1], [0, 0, 1, 1], [], []>} : vector<16x128xbf16>, vector<128x128xbf16>, vector<16x128xf32> -> vector<16x128xf32>
    %7 = arith.addf %4, %6 : vector<16x128xf32>
    %c0_6 = arith.constant 0 : index
    %c0_7 = arith.constant 0 : index
    %8 = vector.load %arg8[%c0_6, %c0_7] : memref<16x128xf32, #tpu.memory_space<vmem>>, vector<16x128xf32>
    tpu.vector_store %arg8[%c0_6, %c0_7], %7 {strides = array<i32>} : memref<16x128xf32, #tpu.memory_space<vmem>>, vector<16x128xf32>,
    %c0_i32_8 = arith.constant 0 : i32
    %9 = arith.cmpi eq, %arg2, %c0_i32_8 : i32
    %10 = arith.extui %9 : i1 to i32
    %c0_i32_9 = arith.constant 0 : i32
    %11 = arith.cmpi ne, %10, %c0_i32_9 : i32
    scf.if %11 {
      %c0_10 = arith.constant 0 : index
      %c0_11 = arith.constant 0 : index
      %12 = vector.load %arg8[%c0_10, %c0_11] : memref<16x128xf32, #tpu.memory_space<vmem>>, vector<16x128xf32>
      %c0_12 = arith.constant 0 : index
      %c0_13 = arith.constant 0 : index
      %13 = vector.load %arg5[%c0_12, %c0_13] : memref<1x128xf32, #tpu.memory_space<vmem>>, vector<1x128xf32>
      %14 = vector.broadcast %13 : vector<1x128xf32> to vector<16x128xf32>
      %15 = arith.addf %12, %14 : vector<16x128xf32>
      %cst_14 = arith.constant 0.000000e+00 : f32
      %16 = vector.broadcast %cst_14 : f32 to vector<16x128xf32>
      %17 = arith.cmpf oge, %15, %16 : vector<16x128xf32>
      %c0_15 = arith.constant 0 : index
      %c0_16 = arith.constant 0 : index
      %18 = vector.load %arg6[%c0_15, %c0_16] : memref<1x128xf32, #tpu.memory_space<vmem>>, vector<1x128xf32>
      %19 = vector.broadcast %18 : vector<1x128xf32> to vector<16x128xf32>
      %20 = arith.mulf %19, %15 : vector<16x128xf32>
      %21 = arith.select %17, %15, %20 : vector<16x128xi1>, vector<16x128xf32>
      %22 = arith.truncf %21 : vector<16x128xf32> to vector<16x128xbf16>
      %c0_17 = arith.constant 0 : index
      %c0_18 = arith.constant 0 : index
      %23 = vector.load %arg7[%c0_17, %c0_18] : memref<16x128xbf16, #tpu.memory_space<vmem>>, vector<16x128xbf16>
      tpu.vector_store %arg7[%c0_17, %c0_18], %22 {strides = array<i32>} : memref<16x128xbf16, #tpu.memory_space<vmem>>, vector<16x128xbf16>,
    } else {
    }
    return
  }
  func.func @transform_0(%arg0: i32, %arg1: i32, %arg2: i32) -> (i32, i32) {
    %c0_i32 = arith.constant 0 : i32
    return %arg0, %arg2 : i32, i32
  }
  func.func @transform_1(%arg0: i32, %arg1: i32, %arg2: i32) -> (i32, i32) {
    %c0_i32 = arith.constant 0 : i32
    return %arg2, %arg1 : i32, i32
  }
  func.func @transform_2(%arg0: i32, %arg1: i32, %arg2: i32) -> (i32, i32) {
    %c0_i32 = arith.constant 0 : i32
    %c0_i32_0 = arith.constant 0 : i32
    return %c0_i32, %arg1 : i32, i32
  }
  func.func @transform_3(%arg0: i32, %arg1: i32, %arg2: i32) -> (i32, i32) {
    %c0_i32 = arith.constant 0 : i32
    %c0_i32_0 = arith.constant 0 : i32
    return %c0_i32, %arg1 : i32, i32
  }
  func.func @transform_4(%arg0: i32, %arg1: i32, %arg2: i32) -> (i32, i32) {
    %c0_i32 = arith.constant 0 : i32
    return %arg0, %arg1 : i32, i32
  }
}

module attributes {stable_mosaic.version = 11 : i64} {
  func.func @_linear_kernel(%arg0: i32, %arg1: i32, %arg2: i32, %arg3: memref<64x128xbf16, #tpu.memory_space<vmem>>, %arg4: memref<128x128xbf16, #tpu.memory_space<vmem>>, %arg5: memref<1x128xf32, #tpu.memory_space<vmem>>, %arg6: memref<1x128xf32, #tpu.memory_space<vmem>>, %arg7: memref<64x128xbf16, #tpu.memory_space<vmem>>, %arg8: memref<64x128xf32, #tpu.memory_space<vmem>>) attributes {dimension_semantics = [#tpu.dimension_semantics<parallel>, #tpu.dimension_semantics<parallel>, #tpu.dimension_semantics<arbitrary>], iteration_bounds = array<i64: 1, 1, 1>, scalar_prefetch = 0 : i64, scratch_operands = 1 : i64, tpu.core_type = #tpu.core_type<tc>, window_params = [{transform_indices = @transform_0, window_bounds = array<i64: 64, 128>}, {transform_indices = @transform_1, window_bounds = array<i64: 128, 128>}, {transform_indices = @transform_2, window_bounds = array<i64: 1, 128>}, {transform_indices = @transform_3, window_bounds = array<i64: 1, 128>}, {transform_indices = @transform_4, window_bounds = array<i64: 64, 128>}]} {
    %c0_i32 = arith.constant 0 : i32
    %0 = arith.cmpi eq, %arg2, %c0_i32 : i32
    %1 = arith.extui %0 : i1 to i32
    %c0_i32_0 = arith.constant 0 : i32
    %2 = arith.cmpi ne, %1, %c0_i32_0 : i32
    scf.if %2 {
      %cst_10 = arith.constant 0.000000e+00 : f32
      %12 = vector.broadcast %cst_10 : f32 to vector<64x128xf32>
      %c0_11 = arith.constant 0 : index
      %c0_12 = arith.constant 0 : index
      %13 = vector.load %arg8[%c0_11, %c0_12] : memref<64x128xf32, #tpu.memory_space<vmem>>, vector<64x128xf32>
      tpu.vector_store %arg8[%c0_11, %c0_12], %12 {strides = array<i32>} : memref<64x128xf32, #tpu.memory_space<vmem>>, vector<64x128xf32>,
    } else {
    }
    %c0 = arith.constant 0 : index
    %c0_1 = arith.constant 0 : index
    %3 = vector.load %arg4[%c0, %c0_1] : memref<128x128xbf16, #tpu.memory_space<vmem>>, vector<128x128xbf16>
    %c0_2 = arith.constant 0 : index
    %c0_3 = arith.constant 0 : index
    %4 = vector.load %arg8[%c0_2, %c0_3] : memref<64x128xf32, #tpu.memory_space<vmem>>, vector<64x128xf32>
    %c0_4 = arith.constant 0 : index
    %c0_5 = arith.constant 0 : index
    %5 = vector.load %arg3[%c0_4, %c0_5] : memref<64x128xbf16, #tpu.memory_space<vmem>>, vector<64x128xbf16>
    %cst = arith.constant dense<0.000000e+00> : vector<64x128xf32>
    %6 = tpu.matmul %5, %3, %cst {dimension_numbers = #tpu.dot_dimension_numbers<[1], [0], [0], [1], [0, 0, 1, 1], [], []>} : vector<64x128xbf16>, vector<128x128xbf16>, vector<64x128xf32> -> vector<64x128xf32>
    %7 = arith.addf %4, %6 : vector<64x128xf32>
    %c0_6 = arith.constant 0 : index
    %c0_7 = arith.constant 0 : index
    %8 = vector.load %arg8[%c0_6, %c0_7] : memref<64x128xf32, #tpu.memory_space<vmem>>, vector<64x128xf32>
    tpu.vector_store %arg8[%c0_6, %c0_7], %7 {strides = array<i32>} : memref<64x128xf32, #tpu.memory_space<vmem>>, vector<64x128xf32>,
    %c0_i32_8 = arith.constant 0 : i32
    %9 = arith.cmpi eq, %arg2, %c0_i32_8 : i32
    %10 = arith.extui %9 : i1 to i32
    %c0_i32_9 = arith.constant 0 : i32
    %11 = arith.cmpi ne, %10, %c0_i32_9 : i32
    scf.if %11 {
      %c0_10 = arith.constant 0 : index
      %c0_11 = arith.constant 0 : index
      %12 = vector.load %arg8[%c0_10, %c0_11] : memref<64x128xf32, #tpu.memory_space<vmem>>, vector<64x128xf32>
      %c0_12 = arith.constant 0 : index
      %c0_13 = arith.constant 0 : index
      %13 = vector.load %arg5[%c0_12, %c0_13] : memref<1x128xf32, #tpu.memory_space<vmem>>, vector<1x128xf32>
      %14 = vector.broadcast %13 : vector<1x128xf32> to vector<64x128xf32>
      %15 = arith.addf %12, %14 : vector<64x128xf32>
      %cst_14 = arith.constant 0.000000e+00 : f32
      %16 = vector.broadcast %cst_14 : f32 to vector<64x128xf32>
      %17 = arith.cmpf oge, %15, %16 : vector<64x128xf32>
      %c0_15 = arith.constant 0 : index
      %c0_16 = arith.constant 0 : index
      %18 = vector.load %arg6[%c0_15, %c0_16] : memref<1x128xf32, #tpu.memory_space<vmem>>, vector<1x128xf32>
      %19 = vector.broadcast %18 : vector<1x128xf32> to vector<64x128xf32>
      %20 = arith.mulf %19, %15 : vector<64x128xf32>
      %21 = arith.select %17, %15, %20 : vector<64x128xi1>, vector<64x128xf32>
      %22 = arith.truncf %21 : vector<64x128xf32> to vector<64x128xbf16>
      %c0_17 = arith.constant 0 : index
      %c0_18 = arith.constant 0 : index
      %23 = vector.load %arg7[%c0_17, %c0_18] : memref<64x128xbf16, #tpu.memory_space<vmem>>, vector<64x128xbf16>
      tpu.vector_store %arg7[%c0_17, %c0_18], %22 {strides = array<i32>} : memref<64x128xbf16, #tpu.memory_space<vmem>>, vector<64x128xbf16>,
    } else {
    }
    return
  }
  func.func @transform_0(%arg0: i32, %arg1: i32, %arg2: i32) -> (i32, i32) {
    %c0_i32 = arith.constant 0 : i32
    return %arg0, %arg2 : i32, i32
  }
  func.func @transform_1(%arg0: i32, %arg1: i32, %arg2: i32) -> (i32, i32) {
    %c0_i32 = arith.constant 0 : i32
    return %arg2, %arg1 : i32, i32
  }
  func.func @transform_2(%arg0: i32, %arg1: i32, %arg2: i32) -> (i32, i32) {
    %c0_i32 = arith.constant 0 : i32
    %c0_i32_0 = arith.constant 0 : i32
    return %c0_i32, %arg1 : i32, i32
  }
  func.func @transform_3(%arg0: i32, %arg1: i32, %arg2: i32) -> (i32, i32) {
    %c0_i32 = arith.constant 0 : i32
    %c0_i32_0 = arith.constant 0 : i32
    return %c0_i32, %arg1 : i32, i32
  }
  func.func @transform_4(%arg0: i32, %arg1: i32, %arg2: i32) -> (i32, i32) {
    %c0_i32 = arith.constant 0 : i32
    return %arg0, %arg1 : i32, i32
  }
}

module attributes {stable_mosaic.version = 11 : i64} {
  func.func @_linear_kernel(%arg0: i32, %arg1: i32, %arg2: i32, %arg3: memref<16x2048xbf16, #tpu.memory_space<vmem>>, %arg4: memref<2048x256xi8, #tpu.memory_space<vmem>>, %arg5: memref<1x256xf32, #tpu.memory_space<vmem>>, %arg6: memref<1x256xf32, #tpu.memory_space<vmem>>, %arg7: memref<16x256xf32, #tpu.memory_space<vmem>>, %arg8: memref<16x256xf32, #tpu.memory_space<vmem>>) attributes {dimension_semantics = [#tpu.dimension_semantics<parallel>, #tpu.dimension_semantics<parallel>, #tpu.dimension_semantics<arbitrary>], iteration_bounds = array<i64: 1, 1, 1>, scalar_prefetch = 0 : i64, scratch_operands = 1 : i64, tpu.core_type = #tpu.core_type<tc>, window_params = [{transform_indices = @transform_0, window_bounds = array<i64: 16, 2048>}, {transform_indices = @transform_1, window_bounds = array<i64: 2048, 256>}, {transform_indices = @transform_2, window_bounds = array<i64: 1, 256>}, {transform_indices = @transform_3, window_bounds = array<i64: 1, 256>}, {transform_indices = @transform_4, window_bounds = array<i64: 16, 256>}]} {
    %c0_i32 = arith.constant 0 : i32
    %0 = arith.cmpi eq, %arg2, %c0_i32 : i32
    %1 = arith.extui %0 : i1 to i32
    %c0_i32_0 = arith.constant 0 : i32
    %2 = arith.cmpi ne, %1, %c0_i32_0 : i32
    scf.if %2 {
      %cst_10 = arith.constant 0.000000e+00 : f32
      %13 = vector.broadcast %cst_10 : f32 to vector<16x256xf32>
      %c0_11 = arith.constant 0 : index
      %c0_12 = arith.constant 0 : index
      %14 = vector.load %arg8[%c0_11, %c0_12] : memref<16x256xf32, #tpu.memory_space<vmem>>, vector<16x256xf32>
      tpu.vector_store %arg8[%c0_11, %c0_12], %13 {strides = array<i32>} : memref<16x256xf32, #tpu.memory_space<vmem>>, vector<16x256xf32>,
    } else {
    }
    %c0 = arith.constant 0 : index
    %c0_1 = arith.constant 0 : index
    %3 = vector.load %arg4[%c0, %c0_1] : memref<2048x256xi8, #tpu.memory_space<vmem>>, vector<2048x256xi8>
    %4 = arith.sitofp %3 : vector<2048x256xi8> to vector<2048x256xbf16>
    %c0_2 = arith.constant 0 : index
    %c0_3 = arith.constant 0 : index
    %5 = vector.load %arg8[%c0_2, %c0_3] : memref<16x256xf32, #tpu.memory_space<vmem>>, vector<16x256xf32>
    %c0_4 = arith.constant 0 : index
    %c0_5 = arith.constant 0 : index
    %6 = vector.load %arg3[%c0_4, %c0_5] : memref<16x2048xbf16, #tpu.memory_space<vmem>>, vector<16x2048xbf16>
    %cst = arith.constant dense<0.000000e+00> : vector<16x256xf32>
    %7 = tpu.matmul %6, %4, %cst {dimension_numbers = #tpu.dot_dimension_numbers<[1], [0], [0], [1], [0, 0, 1, 1], [], []>} : vector<16x2048xbf16>, vector<2048x256xbf16>, vector<16x256xf32> -> vector<16x256xf32>
    %8 = arith.addf %5, %7 : vector<16x256xf32>
    %c0_6 = arith.constant 0 : index
    %c0_7 = arith.constant 0 : index
    %9 = vector.load %arg8[%c0_6, %c0_7] : memref<16x256xf32, #tpu.memory_space<vmem>>, vector<16x256xf32>
    tpu.vector_store %arg8[%c0_6, %c0_7], %8 {strides = array<i32>} : memref<16x256xf32, #tpu.memory_space<vmem>>, vector<16x256xf32>,
    %c0_i32_8 = arith.constant 0 : i32
    %10 = arith.cmpi eq, %arg2, %c0_i32_8 : i32
    %11 = arith.extui %10 : i1 to i32
    %c0_i32_9 = arith.constant 0 : i32
    %12 = arith.cmpi ne, %11, %c0_i32_9 : i32
    scf.if %12 {
      %c0_10 = arith.constant 0 : index
      %c0_11 = arith.constant 0 : index
      %13 = vector.load %arg8[%c0_10, %c0_11] : memref<16x256xf32, #tpu.memory_space<vmem>>, vector<16x256xf32>
      %c0_12 = arith.constant 0 : index
      %c0_13 = arith.constant 0 : index
      %14 = vector.load %arg5[%c0_12, %c0_13] : memref<1x256xf32, #tpu.memory_space<vmem>>, vector<1x256xf32>
      %15 = vector.broadcast %14 : vector<1x256xf32> to vector<16x256xf32>
      %16 = arith.mulf %13, %15 : vector<16x256xf32>
      %c0_14 = arith.constant 0 : index
      %c0_15 = arith.constant 0 : index
      %17 = vector.load %arg6[%c0_14, %c0_15] : memref<1x256xf32, #tpu.memory_space<vmem>>, vector<1x256xf32>
      %18 = vector.broadcast %17 : vector<1x256xf32> to vector<16x256xf32>
      %19 = arith.addf %16, %18 : vector<16x256xf32>
      %cst_16 = arith.constant 0.000000e+00 : f32
      %20 = vector.broadcast %cst_16 : f32 to vector<16x256xf32>
      %21 = arith.maximumf %19, %20 : vector<16x256xf32>
      %c0_17 = arith.constant 0 : index
      %c0_18 = arith.constant 0 : index
      %22 = vector.load %arg7[%c0_17, %c0_18] : memref<16x256xf32, #tpu.memory_space<vmem>>, vector<16x256xf32>
      tpu.vector_store %arg7[%c0_17, %c0_18], %21 {strides = array<i32>} : memref<16x256xf32, #tpu.memory_space<vmem>>, vector<16x256xf32>,
    } else {
    }
    return
  }
  func.func @transform_0(%arg0: i32, %arg1: i32, %arg2: i32) -> (i32, i32) {
    %c0_i32 = arith.constant 0 : i32
    return %arg0, %arg2 : i32, i32
  }
  func.func @transform_1(%arg0: i32, %arg1: i32, %arg2: i32) -> (i32, i32) {
    %c0_i32 = arith.constant 0 : i32
    return %arg2, %arg1 : i32, i32
  }
  func.func @transform_2(%arg0: i32, %arg1: i32, %arg2: i32) -> (i32, i32) {
    %c0_i32 = arith.constant 0 : i32
    %c0_i32_0 = arith.constant 0 : i32
    return %c0_i32, %arg1 : i32, i32
  }
  func.func @transform_3(%arg0: i32, %arg1: i32, %arg2: i32) -> (i32, i32) {
    %c0_i32 = arith.constant 0 : i32
    %c0_i32_0 = arith.constant 0 : i32
    return %c0_i32, %arg1 : i32, i32
  }
  func.func @transform_4(%arg0: i32, %arg1: i32, %arg2: i32) -> (i32, i32) {
    %c0_i32 = arith.constant 0 : i32
    return %arg0, %arg1 : i32, i32
  }
}

module attributes {stable_mosaic.version = 11 : i64} {
  func.func @_linear_kernel(%arg0: i32, %arg1: i32, %arg2: i32, %arg3: memref<16x512xbf16, #tpu.memory_space<vmem>>, %arg4: memref<512x256xi8, #tpu.memory_space<vmem>>, %arg5: memref<1x256xf32, #tpu.memory_space<vmem>>, %arg6: memref<1x256xf32, #tpu.memory_space<vmem>>, %arg7: memref<16x256xf32, #tpu.memory_space<vmem>>, %arg8: memref<16x256xf32, #tpu.memory_space<vmem>>) attributes {dimension_semantics = [#tpu.dimension_semantics<parallel>, #tpu.dimension_semantics<parallel>, #tpu.dimension_semantics<arbitrary>], iteration_bounds = array<i64: 1, 1, 1>, scalar_prefetch = 0 : i64, scratch_operands = 1 : i64, tpu.core_type = #tpu.core_type<tc>, window_params = [{transform_indices = @transform_0, window_bounds = array<i64: 16, 512>}, {transform_indices = @transform_1, window_bounds = array<i64: 512, 256>}, {transform_indices = @transform_2, window_bounds = array<i64: 1, 256>}, {transform_indices = @transform_3, window_bounds = array<i64: 1, 256>}, {transform_indices = @transform_4, window_bounds = array<i64: 16, 256>}]} {
    %c0_i32 = arith.constant 0 : i32
    %0 = arith.cmpi eq, %arg2, %c0_i32 : i32
    %1 = arith.extui %0 : i1 to i32
    %c0_i32_0 = arith.constant 0 : i32
    %2 = arith.cmpi ne, %1, %c0_i32_0 : i32
    scf.if %2 {
      %cst_10 = arith.constant 0.000000e+00 : f32
      %13 = vector.broadcast %cst_10 : f32 to vector<16x256xf32>
      %c0_11 = arith.constant 0 : index
      %c0_12 = arith.constant 0 : index
      %14 = vector.load %arg8[%c0_11, %c0_12] : memref<16x256xf32, #tpu.memory_space<vmem>>, vector<16x256xf32>
      tpu.vector_store %arg8[%c0_11, %c0_12], %13 {strides = array<i32>} : memref<16x256xf32, #tpu.memory_space<vmem>>, vector<16x256xf32>,
    } else {
    }
    %c0 = arith.constant 0 : index
    %c0_1 = arith.constant 0 : index
    %3 = vector.load %arg4[%c0, %c0_1] : memref<512x256xi8, #tpu.memory_space<vmem>>, vector<512x256xi8>
    %4 = arith.sitofp %3 : vector<512x256xi8> to vector<512x256xbf16>
    %c0_2 = arith.constant 0 : index
    %c0_3 = arith.constant 0 : index
    %5 = vector.load %arg8[%c0_2, %c0_3] : memref<16x256xf32, #tpu.memory_space<vmem>>, vector<16x256xf32>
    %c0_4 = arith.constant 0 : index
    %c0_5 = arith.constant 0 : index
    %6 = vector.load %arg3[%c0_4, %c0_5] : memref<16x512xbf16, #tpu.memory_space<vmem>>, vector<16x512xbf16>
    %cst = arith.constant dense<0.000000e+00> : vector<16x256xf32>
    %7 = tpu.matmul %6, %4, %cst {dimension_numbers = #tpu.dot_dimension_numbers<[1], [0], [0], [1], [0, 0, 1, 1], [], []>} : vector<16x512xbf16>, vector<512x256xbf16>, vector<16x256xf32> -> vector<16x256xf32>
    %8 = arith.addf %5, %7 : vector<16x256xf32>
    %c0_6 = arith.constant 0 : index
    %c0_7 = arith.constant 0 : index
    %9 = vector.load %arg8[%c0_6, %c0_7] : memref<16x256xf32, #tpu.memory_space<vmem>>, vector<16x256xf32>
    tpu.vector_store %arg8[%c0_6, %c0_7], %8 {strides = array<i32>} : memref<16x256xf32, #tpu.memory_space<vmem>>, vector<16x256xf32>,
    %c0_i32_8 = arith.constant 0 : i32
    %10 = arith.cmpi eq, %arg2, %c0_i32_8 : i32
    %11 = arith.extui %10 : i1 to i32
    %c0_i32_9 = arith.constant 0 : i32
    %12 = arith.cmpi ne, %11, %c0_i32_9 : i32
    scf.if %12 {
      %c0_10 = arith.constant 0 : index
      %c0_11 = arith.constant 0 : index
      %13 = vector.load %arg8[%c0_10, %c0_11] : memref<16x256xf32, #tpu.memory_space<vmem>>, vector<16x256xf32>
      %c0_12 = arith.constant 0 : index
      %c0_13 = arith.constant 0 : index
      %14 = vector.load %arg5[%c0_12, %c0_13] : memref<1x256xf32, #tpu.memory_space<vmem>>, vector<1x256xf32>
      %15 = vector.broadcast %14 : vector<1x256xf32> to vector<16x256xf32>
      %16 = arith.mulf %13, %15 : vector<16x256xf32>
      %c0_14 = arith.constant 0 : index
      %c0_15 = arith.constant 0 : index
      %17 = vector.load %arg6[%c0_14, %c0_15] : memref<1x256xf32, #tpu.memory_space<vmem>>, vector<1x256xf32>
      %18 = vector.broadcast %17 : vector<1x256xf32> to vector<16x256xf32>
      %19 = arith.addf %16, %18 : vector<16x256xf32>
      %c0_16 = arith.constant 0 : index
      %c0_17 = arith.constant 0 : index
      %20 = vector.load %arg7[%c0_16, %c0_17] : memref<16x256xf32, #tpu.memory_space<vmem>>, vector<16x256xf32>
      tpu.vector_store %arg7[%c0_16, %c0_17], %19 {strides = array<i32>} : memref<16x256xf32, #tpu.memory_space<vmem>>, vector<16x256xf32>,
    } else {
    }
    return
  }
  func.func @transform_0(%arg0: i32, %arg1: i32, %arg2: i32) -> (i32, i32) {
    %c0_i32 = arith.constant 0 : i32
    return %arg0, %arg2 : i32, i32
  }
  func.func @transform_1(%arg0: i32, %arg1: i32, %arg2: i32) -> (i32, i32) {
    %c0_i32 = arith.constant 0 : i32
    return %arg2, %arg1 : i32, i32
  }
  func.func @transform_2(%arg0: i32, %arg1: i32, %arg2: i32) -> (i32, i32) {
    %c0_i32 = arith.constant 0 : i32
    %c0_i32_0 = arith.constant 0 : i32
    return %c0_i32, %arg1 : i32, i32
  }
  func.func @transform_3(%arg0: i32, %arg1: i32, %arg2: i32) -> (i32, i32) {
    %c0_i32 = arith.constant 0 : i32
    %c0_i32_0 = arith.constant 0 : i32
    return %c0_i32, %arg1 : i32, i32
  }
  func.func @transform_4(%arg0: i32, %arg1: i32, %arg2: i32) -> (i32, i32) {
    %c0_i32 = arith.constant 0 : i32
    return %arg0, %arg1 : i32, i32
  }
}

module attributes {stable_mosaic.version = 11 : i64} {
  func.func @_linear_kernel(%arg0: i32, %arg1: i32, %arg2: i32, %arg3: memref<16x128xbf16, #tpu.memory_space<vmem>>, %arg4: memref<128x128xbf16, #tpu.memory_space<vmem>>, %arg5: memref<1x128xf32, #tpu.memory_space<vmem>>, %arg6: memref<16x128xf32, #tpu.memory_space<vmem>>, %arg7: memref<16x128xf32, #tpu.memory_space<vmem>>) attributes {dimension_semantics = [#tpu.dimension_semantics<parallel>, #tpu.dimension_semantics<parallel>, #tpu.dimension_semantics<arbitrary>], iteration_bounds = array<i64: 1, 1, 1>, scalar_prefetch = 0 : i64, scratch_operands = 1 : i64, tpu.core_type = #tpu.core_type<tc>, window_params = [{transform_indices = @transform_0, window_bounds = array<i64: 16, 128>}, {transform_indices = @transform_1, window_bounds = array<i64: 128, 128>}, {transform_indices = @transform_2, window_bounds = array<i64: 1, 128>}, {transform_indices = @transform_3, window_bounds = array<i64: 16, 128>}]} {
    %c0_i32 = arith.constant 0 : i32
    %0 = arith.cmpi eq, %arg2, %c0_i32 : i32
    %1 = arith.extui %0 : i1 to i32
    %c0_i32_0 = arith.constant 0 : i32
    %2 = arith.cmpi ne, %1, %c0_i32_0 : i32
    scf.if %2 {
      %cst_10 = arith.constant 0.000000e+00 : f32
      %12 = vector.broadcast %cst_10 : f32 to vector<16x128xf32>
      %c0_11 = arith.constant 0 : index
      %c0_12 = arith.constant 0 : index
      %13 = vector.load %arg7[%c0_11, %c0_12] : memref<16x128xf32, #tpu.memory_space<vmem>>, vector<16x128xf32>
      tpu.vector_store %arg7[%c0_11, %c0_12], %12 {strides = array<i32>} : memref<16x128xf32, #tpu.memory_space<vmem>>, vector<16x128xf32>,
    } else {
    }
    %c0 = arith.constant 0 : index
    %c0_1 = arith.constant 0 : index
    %3 = vector.load %arg4[%c0, %c0_1] : memref<128x128xbf16, #tpu.memory_space<vmem>>, vector<128x128xbf16>
    %c0_2 = arith.constant 0 : index
    %c0_3 = arith.constant 0 : index
    %4 = vector.load %arg7[%c0_2, %c0_3] : memref<16x128xf32, #tpu.memory_space<vmem>>, vector<16x128xf32>
    %c0_4 = arith.constant 0 : index
    %c0_5 = arith.constant 0 : index
    %5 = vector.load %arg3[%c0_4, %c0_5] : memref<16x128xbf16, #tpu.memory_space<vmem>>, vector<16x128xbf16>
    %cst = arith.constant dense<0.000000e+00> : vector<16x128xf32>
    %6 = tpu.matmul %5, %3, %cst {dimension_numbers = #tpu.dot_dimension_numbers<[1], [0], [0], [1], [0, 0, 1, 1], [], []>} : vector<16x128xbf16>, vector<128x128xbf16>, vector<16x128xf32> -> vector<16x128xf32>
    %7 = arith.addf %4, %6 : vector<16x128xf32>
    %c0_6 = arith.constant 0 : index
    %c0_7 = arith.constant 0 : index
    %8 = vector.load %arg7[%c0_6, %c0_7] : memref<16x128xf32, #tpu.memory_space<vmem>>, vector<16x128xf32>
    tpu.vector_store %arg7[%c0_6, %c0_7], %7 {strides = array<i32>} : memref<16x128xf32, #tpu.memory_space<vmem>>, vector<16x128xf32>,
    %c0_i32_8 = arith.constant 0 : i32
    %9 = arith.cmpi eq, %arg2, %c0_i32_8 : i32
    %10 = arith.extui %9 : i1 to i32
    %c0_i32_9 = arith.constant 0 : i32
    %11 = arith.cmpi ne, %10, %c0_i32_9 : i32
    scf.if %11 {
      %c0_10 = arith.constant 0 : index
      %c0_11 = arith.constant 0 : index
      %12 = vector.load %arg7[%c0_10, %c0_11] : memref<16x128xf32, #tpu.memory_space<vmem>>, vector<16x128xf32>
      %c0_12 = arith.constant 0 : index
      %c0_13 = arith.constant 0 : index
      %13 = vector.load %arg5[%c0_12, %c0_13] : memref<1x128xf32, #tpu.memory_space<vmem>>, vector<1x128xf32>
      %14 = vector.broadcast %13 : vector<1x128xf32> to vector<16x128xf32>
      %15 = arith.addf %12, %14 : vector<16x128xf32>
      %c0_14 = arith.constant 0 : index
      %c0_15 = arith.constant 0 : index
      %16 = vector.load %arg6[%c0_14, %c0_15] : memref<16x128xf32, #tpu.memory_space<vmem>>, vector<16x128xf32>
      tpu.vector_store %arg6[%c0_14, %c0_15], %15 {strides = array<i32>} : memref<16x128xf32, #tpu.memory_space<vmem>>, vector<16x128xf32>,
    } else {
    }
    return
  }
  func.func @transform_0(%arg0: i32, %arg1: i32, %arg2: i32) -> (i32, i32) {
    %c0_i32 = arith.constant 0 : i32
    return %arg0, %arg2 : i32, i32
  }
  func.func @transform_1(%arg0: i32, %arg1: i32, %arg2: i32) -> (i32, i32) {
    %c0_i32 = arith.constant 0 : i32
    return %arg2, %arg1 : i32, i32
  }
  func.func @transform_2(%arg0: i32, %arg1: i32, %arg2: i32) -> (i32, i32) {
    %c0_i32 = arith.constant 0 : i32
    %c0_i32_0 = arith.constant 0 : i32
    return %c0_i32, %arg1 : i32, i32
  }
  func.func @transform_3(%arg0: i32, %arg1: i32, %arg2: i32) -> (i32, i32) {
    %c0_i32 = arith.constant 0 : i32
    return %arg0, %arg1 : i32, i32
  }
}

</mosaic_0001>

<bundles_post_ra>
// kernel: re3net_forward.12
= control target key start
LH: loop header
LB: loop body
LE: loop exit
PB: predicated region body
PF: predicated region fallthrough
CT: control target
= control target key end

     0   :  { %s2380_s1 = inlined_call_operand.vmem [shape: bf16[512,128], index: 1, kind: input, shape index: {}]   ;;  %s2381_s0 = inlined_call_operand.vmem [shape: bf16[256,512], index: 0, kind: input, shape index: {}]   ;;  %s2382_s2 = inlined_call_operand.vmem [shape: f32[1,128], index: 2, kind: input, shape index: {}]   ;;  %s2383_s3 = inlined_call_operand.vmem [shape: bf16[256,128], index: 3, kind: output, shape index: {}]  }
   0x1   :  { %v1859_v0 = vld [vmem:[%s2380_s1 + $0x40] sm:$0xff]   ;;  %v1863_v4 = vld [vmem:[%s2380_s1 + $0x48] sm:$0xff]   ;;  %v1867_v8 = vld [vmem:[%s2380_s1 + $0x50] sm:$0xff]  }
   0x2   :  { %v1860_v1 = vld [vmem:[%s2380_s1 + $0xc0] sm:$0xff]   ;;  %1635 = vmatprep.subr.bf16.mxu0 %v1859_v0  ;;  %v1864_v5 = vld [vmem:[%s2380_s1 + $0xc8] sm:$0xff]   ;;  %v1868_v9 = vld [vmem:[%s2380_s1 + $0xd0] sm:$0xff]  }
   0x3   :  { %v1861_v2 = vld [vmem:[%s2380_s1] sm:$0xff]   ;;  %1747 = vmatprep.subr.bf16.mxu1 %v1860_v1  ;;  %v1865_v6 = vld [vmem:[%s2380_s1 + $0x8] sm:$0xff]   ;;  %v1869_v10 = vld [vmem:[%s2380_s1 + $0x10] sm:$0xff]  }
   0x4   :  { %v1862_v3 = vld [vmem:[%s2380_s1 + $0x80] sm:$0xff]   ;;  %1636 = vmatpush3.bf16.msra.mxu0 %v1861_v2  ;;  %v1866_v7 = vld [vmem:[%s2380_s1 + $0x88] sm:$0xff]   ;;  %v1870_v11 = vld [vmem:[%s2380_s1 + $0x90] sm:$0xff]  }
   0x5   :  { %1748 = vmatpush3.bf16.msra.mxu1 %v1862_v3  ;;  %1637 = vmatprep.subr.bf16.mxu0 %v1863_v4  ;;  %v1871_v12 = vld [vmem:[%s2380_s1 + $0x58] sm:$0xff]   ;;  %v1875_v16 = vld [vmem:[%s2380_s1 + $0x60] sm:$0xff]   ;;  %v1879_v20 = vld [vmem:[%s2380_s1 + $0x68] sm:$0xff]  }
   0x6   :  { %1749 = vmatprep.subr.bf16.mxu1 %v1864_v5  ;;  %v1872_v13 = vld [vmem:[%s2380_s1 + $0xd8] sm:$0xff]   ;;  %v1876_v17 = vld [vmem:[%s2380_s1 + $0xe0] sm:$0xff]   ;;  %v1880_v21 = vld [vmem:[%s2380_s1 + $0xe8] sm:$0xff]  }
   0x7   :  { %v1873_v14 = vld [vmem:[%s2380_s1 + $0x18] sm:$0xff]   ;;  %v1877_v18 = vld [vmem:[%s2380_s1 + $0x20] sm:$0xff]   ;;  %v1881_v22 = vld [vmem:[%s2380_s1 + $0x28] sm:$0xff]  }
   0x8   :  { %1638 = vmatpush3.bf16.msra.mxu0 %v1865_v6  ;;  %v1874_v15 = vld [vmem:[%s2380_s1 + $0x98] sm:$0xff]   ;;  %v1878_v19 = vld [vmem:[%s2380_s1 + $0xa0] sm:$0xff]   ;;  %v1882_v23 = vld [vmem:[%s2380_s1 + $0xa8] sm:$0xff]  }
   0x9   :  { %1750 = vmatpush3.bf16.msra.mxu1 %v1866_v7  ;;  %1639 = vmatprep.subr.bf16.mxu0 %v1867_v8  ;;  %v1883_v24 = vld [vmem:[%s2380_s1 + $0x70] sm:$0xff]   ;;  %v1887_v28 = vld [vmem:[%s2380_s1 + $0x78] sm:$0xff]  }
   0xa   :  { %1751 = vmatprep.subr.bf16.mxu1 %v1868_v9  ;;  %v1884_v25 = vld [vmem:[%s2380_s1 + $0xf0] sm:$0xff]   ;;  %v1888_v29 = vld [vmem:[%s2380_s1 + $0xf8] sm:$0xff]  }
   0xb   :  { %v1885_v26 = vld [vmem:[%s2380_s1 + $0x30] sm:$0xff]   ;;  %v1889_v30 = vld [vmem:[%s2380_s1 + $0x38] sm:$0xff]  }
   0xc   :  { %1640 = vmatpush3.bf16.msra.mxu0 %v1869_v10  ;;  %v1886_v27 = vld [vmem:[%s2380_s1 + $0xb0] sm:$0xff]   ;;  %v1890_v31 = vld [vmem:[%s2380_s1 + $0xb8] sm:$0xff]  }
   0xd   :  { %1752 = vmatpush3.bf16.msra.mxu1 %v1870_v11  ;;  %1641 = vmatprep.subr.bf16.mxu0 %v1871_v12  ;;  %v1891_v32 = vld [vmem:[%s2381_s0] ss:$16 sps:$4 sm:$0xff]   ;;  %v1893_v33 = vld [vmem:[%s2381_s0 + $0x4] ss:$16 sps:$4 sm:$0xff]   ;;  %v1894_v34 = vld [vmem:[%s2381_s0 + $0x8] ss:$16 sps:$4 sm:$0xff]  }
   0xe   :  { %1753 = vmatprep.subr.bf16.mxu1 %v1872_v13  ;;  %v1896_v35 = vld [vmem:[%s2381_s0 + $0xc] ss:$16 sps:$4 sm:$0xff]   ;;  %755 = vmatprep.mubr.bf16.mxu0 %v1893_v33  ;;  %v1897_v36 = vld [vmem:[%s2381_s0 + $0x24] ss:$16 sps:$4 sm:$0xff]   ;;  %v1901_v38 = vld [vmem:[%s2381_s0 + $0x20] ss:$16 sps:$4 sm:$0xff]  }
   0xf   :  { %916 = vmatprep.mubr.bf16.mxu1 %v1896_v35  ;;  %v1899_v37 = vld [vmem:[%s2381_s0 + $0x2c] ss:$16 sps:$4 sm:$0xff]   ;;  %v1902_v39 = vld [vmem:[%s2381_s0 + $0x28] ss:$16 sps:$4 sm:$0xff]   ;;  %v1903_v40 = vld [vmem:[%s2381_s0 + $0x44] ss:$16 sps:$4 sm:$0xff]  }
  0x10   :  { %1642 = vmatpush3.bf16.msra.mxu0 %v1873_v14  ;;  %v1905_v41 = vld [vmem:[%s2381_s0 + $0x4c] ss:$16 sps:$4 sm:$0xff]   ;;  %v1907_v42 = vld [vmem:[%s2381_s0 + $0x40] ss:$16 sps:$4 sm:$0xff]   ;;  %v1908_v43 = vld [vmem:[%s2381_s0 + $0x48] ss:$16 sps:$4 sm:$0xff]  }
  0x11   :  { %1754 = vmatpush3.bf16.msra.mxu1 %v1874_v15  ;;  %1643 = vmatprep.subr.bf16.mxu0 %v1875_v16  ;;  %v1909_v44 = vld [vmem:[%s2381_s0 + $0x64] ss:$16 sps:$4 sm:$0xff]   ;;  %v1911_v45 = vld [vmem:[%s2381_s0 + $0x6c] ss:$16 sps:$4 sm:$0xff]   ;;  %v1913_v46 = vld [vmem:[%s2381_s0 + $0x60] ss:$16 sps:$4 sm:$0xff]  }
  0x12   :  { %1755 = vmatprep.subr.bf16.mxu1 %v1876_v17  ;;  %v1914_v47 = vld [vmem:[%s2381_s0 + $0x68] ss:$16 sps:$4 sm:$0xff]   ;;  %v1915_v48 = vld [vmem:[%s2381_s0 + $0x84] ss:$16 sps:$4 sm:$0xff]   ;;  %v1917_v49 = vld [vmem:[%s2381_s0 + $0x8c] ss:$16 sps:$4 sm:$0xff]  }
  0x13   :  { %v1919_v50 = vld [vmem:[%s2381_s0 + $0x80] ss:$16 sps:$4 sm:$0xff]   ;;  %v1920_v51 = vld [vmem:[%s2381_s0 + $0x88] ss:$16 sps:$4 sm:$0xff]   ;;  %v1921_v52 = vld [vmem:[%s2381_s0 + $0xa4] ss:$16 sps:$4 sm:$0xff]  }
  0x14   :  { %1644 = vmatpush3.bf16.msra.mxu0 %v1877_v18  ;;  %v1923_v53 = vld [vmem:[%s2381_s0 + $0xac] ss:$16 sps:$4 sm:$0xff]   ;;  %v1925_v54 = vld [vmem:[%s2381_s0 + $0xa0] ss:$16 sps:$4 sm:$0xff]   ;;  %v1926_v55 = vld [vmem:[%s2381_s0 + $0xa8] ss:$16 sps:$4 sm:$0xff]  }
  0x15   :  { %1756 = vmatpush3.bf16.msra.mxu1 %v1878_v19  ;;  %1645 = vmatprep.subr.bf16.mxu0 %v1879_v20  ;;  %v1927_v56 = vld [vmem:[%s2381_s0 + $0xc4] ss:$16 sps:$4 sm:$0xff]   ;;  %v1929_v57 = vld [vmem:[%s2381_s0 + $0xcc] ss:$16 sps:$4 sm:$0xff]   ;;  %v1931_v58 = vld [vmem:[%s2381_s0 + $0xc0] ss:$16 sps:$4 sm:$0xff]  }
  0x16   :  { %1757 = vmatprep.subr.bf16.mxu1 %v1880_v21  ;;  %v1932_v59 = vld [vmem:[%s2381_s0 + $0xc8] ss:$16 sps:$4 sm:$0xff]   ;;  %v1933_v60 = vld [vmem:[%s2381_s0 + $0xe4] ss:$16 sps:$4 sm:$0xff]   ;;  %v1935_v61 = vld [vmem:[%s2381_s0 + $0xec] ss:$16 sps:$4 sm:$0xff]  }
  0x17   :  { %v1937_v62 = vld [vmem:[%s2381_s0 + $0xe0] ss:$16 sps:$4 sm:$0xff]   ;;  %v1938_v63 = vld [vmem:[%s2381_s0 + $0xe8] ss:$16 sps:$4 sm:$0xff]   ;;  %v1939_v0 = vld [vmem:[%s2381_s0 + $0x104] ss:$16 sps:$4 sm:$0xff]  }
  0x18   :  { %1646 = vmatpush3.bf16.msra.mxu0 %v1881_v22  ;;  %v1941_v1 = vld [vmem:[%s2381_s0 + $0x10c] ss:$16 sps:$4 sm:$0xff]   ;;  %v1943_v2 = vld [vmem:[%s2381_s0 + $0x100] ss:$16 sps:$4 sm:$0xff]   ;;  %v1944_v3 = vld [vmem:[%s2381_s0 + $0x108] ss:$16 sps:$4 sm:$0xff]  }
  0x19   :  { %1758 = vmatpush3.bf16.msra.mxu1 %v1882_v23  ;;  %1647 = vmatprep.subr.bf16.mxu0 %v1883_v24  ;;  %v1945_v4 = vld [vmem:[%s2381_s0 + $0x124] ss:$16 sps:$4 sm:$0xff]   ;;  %v1947_v5 = vld [vmem:[%s2381_s0 + $0x12c] ss:$16 sps:$4 sm:$0xff]   ;;  %v1949_v6 = vld [vmem:[%s2381_s0 + $0x120] ss:$16 sps:$4 sm:$0xff]  }
  0x1a   :  { %1759 = vmatprep.subr.bf16.mxu1 %v1884_v25  ;;  %v1950_v7 = vld [vmem:[%s2381_s0 + $0x128] ss:$16 sps:$4 sm:$0xff]   ;;  %v1951_v8 = vld [vmem:[%s2381_s0 + $0x144] ss:$16 sps:$4 sm:$0xff]   ;;  %v1953_v9 = vld [vmem:[%s2381_s0 + $0x14c] ss:$16 sps:$4 sm:$0xff]  }
  0x1b   :  { %v1955_v10 = vld [vmem:[%s2381_s0 + $0x140] ss:$16 sps:$4 sm:$0xff]   ;;  %v1956_v11 = vld [vmem:[%s2381_s0 + $0x148] ss:$16 sps:$4 sm:$0xff]   ;;  %v1957_v12 = vld [vmem:[%s2381_s0 + $0x164] ss:$16 sps:$4 sm:$0xff]  }
  0x1c   :  { %1648 = vmatpush3.bf16.msra.mxu0 %v1885_v26  ;;  %v1959_v13 = vld [vmem:[%s2381_s0 + $0x16c] ss:$16 sps:$4 sm:$0xff]   ;;  %v1961_v14 = vld [vmem:[%s2381_s0 + $0x160] ss:$16 sps:$4 sm:$0xff]   ;;  %v1962_v15 = vld [vmem:[%s2381_s0 + $0x168] ss:$16 sps:$4 sm:$0xff]  }
  0x1d   :  { %1760 = vmatpush3.bf16.msra.mxu1 %v1886_v27  ;;  %1649 = vmatprep.subr.bf16.mxu0 %v1887_v28  ;;  %v1963_v16 = vld [vmem:[%s2381_s0 + $0x184] ss:$16 sps:$4 sm:$0xff]   ;;  %v1965_v17 = vld [vmem:[%s2381_s0 + $0x18c] ss:$16 sps:$4 sm:$0xff]   ;;  %v1967_v18 = vld [vmem:[%s2381_s0 + $0x180] ss:$16 sps:$4 sm:$0xff]  }
  0x1e   :  { %1761 = vmatprep.subr.bf16.mxu1 %v1888_v29  ;;  %v1968_v19 = vld [vmem:[%s2381_s0 + $0x188] ss:$16 sps:$4 sm:$0xff]   ;;  %v1969_v20 = vld [vmem:[%s2381_s0 + $0x1a4] ss:$16 sps:$4 sm:$0xff]   ;;  %v1971_v21 = vld [vmem:[%s2381_s0 + $0x1ac] ss:$16 sps:$4 sm:$0xff]  }
  0x1f   :  { %v1973_v22 = vld [vmem:[%s2381_s0 + $0x1a0] ss:$16 sps:$4 sm:$0xff]   ;;  %v1974_v23 = vld [vmem:[%s2381_s0 + $0x1a8] ss:$16 sps:$4 sm:$0xff]   ;;  %v1975_v24 = vld [vmem:[%s2381_s0 + $0x1c4] ss:$16 sps:$4 sm:$0xff]  }
  0x20   :  { %1650 = vmatpush3.bf16.msra.mxu0 %v1889_v30  ;;  %v1977_v25 = vld [vmem:[%s2381_s0 + $0x1cc] ss:$16 sps:$4 sm:$0xff]   ;;  %v1979_v26 = vld [vmem:[%s2381_s0 + $0x1c0] ss:$16 sps:$4 sm:$0xff]   ;;  %v1980_v27 = vld [vmem:[%s2381_s0 + $0x1c8] ss:$16 sps:$4 sm:$0xff]  }
  0x21   :  { %1762 = vmatpush3.bf16.msra.mxu1 %v1890_v31  ;;  %v1981_v28 = vld [vmem:[%s2381_s0 + $0x1e4] ss:$16 sps:$4 sm:$0xff]   ;;  %v1983_v29 = vld [vmem:[%s2381_s0 + $0x1ec] ss:$16 sps:$4 sm:$0xff]   ;;  %v1985_v30 = vld [vmem:[%s2381_s0 + $0x1e0] ss:$16 sps:$4 sm:$0xff]  }
  0x22   :  { %v1986_v31 = vld [vmem:[%s2381_s0 + $0x1e8] ss:$16 sps:$4 sm:$0xff]  }
  0x23   :  { %756 = vmatmul.mubr.bf16.vlgmr.msra.gmra.mrb[0].mxu0 %v1891_v32 }
  0x24   :  { %917 = vmatmul.mubr.bf16.vlgmr.msra.gmra.mrb[0].mxu1 %v1894_v34  ;;  %763 = vmatprep.mubr.bf16.mxu0 %v1897_v36 }
  0x25   :  { %924 = vmatprep.mubr.bf16.mxu1 %v1899_v37 }
  0x2b   :  { %764 = vmatmul.mubr.bf16.gmra.mrb[4].mxu0 %v1901_v38 }
  0x2c   :  { %925 = vmatmul.mubr.bf16.gmra.mrb[4].mxu1 %v1902_v39  ;;  %771 = vmatprep.mubr.bf16.mxu0 %v1903_v40 }
  0x2d   :  { %932 = vmatprep.mubr.bf16.mxu1 %v1905_v41  ;;  %v2298_v41 = vld [vmem:[%s2382_s2] ss:$0 sm:$0xff] }
  0x33   :  { %772 = vmatmul.mubr.bf16.gmra.mrb[8].mxu0 %v1907_v42 }
  0x34   :  { %933 = vmatmul.mubr.bf16.gmra.mrb[8].mxu1 %v1908_v43  ;;  %779 = vmatprep.mubr.bf16.mxu0 %v1909_v44 }
  0x35   :  { %940 = vmatprep.mubr.bf16.mxu1 %v1911_v45 }
  0x3b   :  { %780 = vmatmul.mubr.bf16.gmra.mrb[12].mxu0 %v1913_v46 }
  0x3c   :  { %941 = vmatmul.mubr.bf16.gmra.mrb[12].mxu1 %v1914_v47  ;;  %787 = vmatprep.mubr.bf16.mxu0 %v1915_v48 }
  0x3d   :  { %948 = vmatprep.mubr.bf16.mxu1 %v1917_v49 }
  0x43   :  { %788 = vmatmul.mubr.bf16.gmra.mrb[16].mxu0 %v1919_v50 }
  0x44   :  { %949 = vmatmul.mubr.bf16.gmra.mrb[16].mxu1 %v1920_v51  ;;  %795 = vmatprep.mubr.bf16.mxu0 %v1921_v52 }
  0x45   :  { %956 = vmatprep.mubr.bf16.mxu1 %v1923_v53 }
  0x4b   :  { %796 = vmatmul.mubr.bf16.gmra.mrb[20].mxu0 %v1925_v54 }
  0x4c   :  { %957 = vmatmul.mubr.bf16.gmra.mrb[20].mxu1 %v1926_v55  ;;  %803 = vmatprep.mubr.bf16.mxu0 %v1927_v56 }
  0x4d   :  { %964 = vmatprep.mubr.bf16.mxu1 %v1929_v57 }
  0x53   :  { %804 = vmatmul.mubr.bf16.gmra.mrb[24].mxu0 %v1931_v58 }
  0x54   :  { %965 = vmatmul.mubr.bf16.gmra.mrb[24].mxu1 %v1932_v59  ;;  %811 = vmatprep.mubr.bf16.mxu0 %v1933_v60 }
  0x55   :  { %972 = vmatprep.mubr.bf16.mxu1 %v1935_v61 }
  0x5b   :  { %812 = vmatmul.mubr.bf16.gmra.mrb[28].mxu0 %v1937_v62 }
  0x5c   :  { %973 = vmatmul.mubr.bf16.gmra.mrb[28].mxu1 %v1938_v63  ;;  %819 = vmatprep.mubr.bf16.mxu0 %v1939_v0 }
  0x5d   :  { %980 = vmatprep.mubr.bf16.mxu1 %v1941_v1 }
  0x63   :  { %820 = vmatmul.mubr.bf16.gmra.mrb[32].mxu0 %v1943_v2 }
  0x64   :  { %981 = vmatmul.mubr.bf16.gmra.mrb[32].mxu1 %v1944_v3  ;;  %827 = vmatprep.mubr.bf16.mxu0 %v1945_v4 }
  0x65   :  { %988 = vmatprep.mubr.bf16.mxu1 %v1947_v5 }
  0x6b   :  { %828 = vmatmul.mubr.bf16.gmra.mrb[36].mxu0 %v1949_v6 }
  0x6c   :  { %989 = vmatmul.mubr.bf16.gmra.mrb[36].mxu1 %v1950_v7  ;;  %835 = vmatprep.mubr.bf16.mxu0 %v1951_v8 }
  0x6d   :  { %996 = vmatprep.mubr.bf16.mxu1 %v1953_v9 }
  0x73   :  { %836 = vmatmul.mubr.bf16.gmra.mrb[40].mxu0 %v1955_v10 }
  0x74   :  { %997 = vmatmul.mubr.bf16.gmra.mrb[40].mxu1 %v1956_v11  ;;  %843 = vmatprep.mubr.bf16.mxu0 %v1957_v12 }
  0x75   :  { %1004 = vmatprep.mubr.bf16.mxu1 %v1959_v13 }
  0x7b   :  { %844 = vmatmul.mubr.bf16.gmra.mrb[44].mxu0 %v1961_v14 }
  0x7c   :  { %1005 = vmatmul.mubr.bf16.gmra.mrb[44].mxu1 %v1962_v15  ;;  %851 = vmatprep.mubr.bf16.mxu0 %v1963_v16 }
  0x7d   :  { %1012 = vmatprep.mubr.bf16.mxu1 %v1965_v17 }
  0x83   :  { %852 = vmatmul.mubr.bf16.gmra.mrb[48].mxu0 %v1967_v18 }
  0x84   :  { %1013 = vmatmul.mubr.bf16.gmra.mrb[48].mxu1 %v1968_v19  ;;  %859 = vmatprep.mubr.bf16.mxu0 %v1969_v20 }
  0x85   :  { %1020 = vmatprep.mubr.bf16.mxu1 %v1971_v21 }
  0x8b   :  { %860 = vmatmul.mubr.bf16.gmra.mrb[52].mxu0 %v1973_v22 }
  0x8c   :  { %1021 = vmatmul.mubr.bf16.gmra.mrb[52].mxu1 %v1974_v23  ;;  %867 = vmatprep.mubr.bf16.mxu0 %v1975_v24 }
  0x8d   :  { %1028 = vmatprep.mubr.bf16.mxu1 %v1977_v25 }
  0x93   :  { %868 = vmatmul.mubr.bf16.gmra.mrb[56].mxu0 %v1979_v26 }
  0x94   :  { %1029 = vmatmul.mubr.bf16.gmra.mrb[56].mxu1 %v1980_v27  ;;  %875 = vmatprep.mubr.bf16.mxu0 %v1981_v28 }
  0x95   :  { %1036 = vmatprep.mubr.bf16.mxu1 %v1983_v29 }
  0x9b   :  { %876 = vmatmul.mubr.bf16.gmra.mrb[60].mxu0 %v1985_v30 }
  0x9c   :  { %1037 = vmatmul.mubr.bf16.gmra.mrb[60].mxu1 %v1986_v31 }
  0xf6   :  { %v1651_v32 = vpop.f32.mrb[0].mxu0 }
  0xf7   :  { %v1763_v33 = vpop.f32.mrb[0].mxu1  ;;  %v1652_v34 = vpop.f32.mrb[1].mxu0 }
  0xf8   :  { %v1653_v35 = vadd.f32 %v1652_v34, %v1651_v32  ;;  %v1764_v36 = vpop.f32.mrb[1].mxu1  ;;  %v1654_v37 = vpop.f32.mrb[2].mxu0 }
  0xf9   :  { %v1765_v38 = vadd.f32 %v1764_v36, %v1763_v33  ;;  %v1766_v39 = vpop.f32.mrb[2].mxu1  ;;  %v1655_v40 = vpop.f32.mrb[3].mxu0 }
  0xfa   :  { %v1656_v42 = vadd.f32 %v1655_v40, %v1654_v37  ;;  %v1767_v43 = vpop.f32.mrb[3].mxu1 }
  0xfb   :  { %v919_v44 = vadd.f32 %v1765_v38, %v1653_v35  ;;  %v1768_v45 = vadd.f32 %v1767_v43, %v1766_v39 }
  0xfd   :  { %v1151_v46 = vadd.f32 %v2298_v41, %v919_v44  ;;  %v922_v47 = vadd.f32 %v1768_v45, %v1656_v42 }
  0xfe   :  { %v1657_v48 = vpop.f32.mrb[4].mxu0 }
  0xff   :  { %v1152_v49 = vadd.f32 %v2298_v41, %v922_v47  ;;  %v1769_v50 = vpop.f32.mrb[4].mxu1  ;;  %v1658_v51 = vpop.f32.mrb[5].mxu0  ;;  %v1183_v55 = vmax.f32 %v1151_v46, 0.0 }
 0x100   :  { %v1659_v52 = vadd.f32 %v1658_v51, %v1657_v48  ;;  %v1770_v53 = vpop.f32.mrb[5].mxu1  ;;  %v1660_v54 = vpop.f32.mrb[6].mxu0 }
 0x101   :  { %v1184_v56 = vmax.f32 %v1152_v49, 0.0  ;;  %v1771_v57 = vadd.f32 %v1770_v53, %v1769_v50  ;;  %v1772_v58 = vpop.f32.mrb[6].mxu1  ;;  %v1661_v59 = vpop.f32.mrb[7].mxu0 }
 0x102   :  { %v1662_v60 = vadd.f32 %v1661_v59, %v1660_v54  ;;  %v1773_v61 = vpop.f32.mrb[7].mxu1 }
 0x103   :  { %v1543_v62 = vpack.c.bf16 %v1184_v56, %v1183_v55  ;;  %v927_v63 = vadd.f32 %v1771_v57, %v1659_v52  ;;  %v1774_v0 = vadd.f32 %v1773_v61, %v1772_v58 }
 0x105   :  { %1544 = vst [vmem:[%s2383_s3] sm:$0xff] %v1543_v62   ;;  %v1153_v1 = vadd.f32 %v2298_v41, %v927_v63  ;;  %v930_v2 = vadd.f32 %v1774_v0, %v1662_v60 }
 0x106   :  { %v1663_v3 = vpop.f32.mrb[8].mxu0 }
 0x107   :  { %v1154_v4 = vadd.f32 %v2298_v41, %v930_v2  ;;  %v1775_v5 = vpop.f32.mrb[8].mxu1  ;;  %v1664_v6 = vpop.f32.mrb[9].mxu0  ;;  %v1185_v10 = vmax.f32 %v1153_v1, 0.0 }
 0x108   :  { %v1665_v7 = vadd.f32 %v1664_v6, %v1663_v3  ;;  %v1776_v8 = vpop.f32.mrb[9].mxu1  ;;  %v1666_v9 = vpop.f32.mrb[10].mxu0 }
 0x109   :  { %v1186_v11 = vmax.f32 %v1154_v4, 0.0  ;;  %v1777_v12 = vadd.f32 %v1776_v8, %v1775_v5  ;;  %v1778_v13 = vpop.f32.mrb[10].mxu1  ;;  %v1667_v14 = vpop.f32.mrb[11].mxu0 }
 0x10a   :  { %v1668_v15 = vadd.f32 %v1667_v14, %v1666_v9  ;;  %v1779_v16 = vpop.f32.mrb[11].mxu1 }
 0x10b   :  { %v1548_v17 = vpack.c.bf16 %v1186_v11, %v1185_v10  ;;  %v935_v18 = vadd.f32 %v1777_v12, %v1665_v7  ;;  %v1780_v19 = vadd.f32 %v1779_v16, %v1778_v13 }
 0x10d   :  { %1620 = vst [vmem:[%s2383_s3 + $0x8] sm:$0xff] %v1548_v17   ;;  %v1155_v20 = vadd.f32 %v2298_v41, %v935_v18  ;;  %v938_v21 = vadd.f32 %v1780_v19, %v1668_v15 }
 0x10e   :  { %v1669_v22 = vpop.f32.mrb[12].mxu0 }
 0x10f   :  { %v1156_v23 = vadd.f32 %v2298_v41, %v938_v21  ;;  %v1781_v24 = vpop.f32.mrb[12].mxu1  ;;  %v1670_v25 = vpop.f32.mrb[13].mxu0  ;;  %v1187_v29 = vmax.f32 %v1155_v20, 0.0 }
 0x110   :  { %v1671_v26 = vadd.f32 %v1670_v25, %v1669_v22  ;;  %v1782_v27 = vpop.f32.mrb[13].mxu1  ;;  %v1672_v28 = vpop.f32.mrb[14].mxu0 }
 0x111   :  { %v1188_v30 = vmax.f32 %v1156_v23, 0.0  ;;  %v1783_v31 = vadd.f32 %v1782_v27, %v1781_v24  ;;  %v1784_v32 = vpop.f32.mrb[14].mxu1  ;;  %v1673_v33 = vpop.f32.mrb[15].mxu0 }
 0x112   :  { %v1674_v34 = vadd.f32 %v1673_v33, %v1672_v28  ;;  %v1785_v35 = vpop.f32.mrb[15].mxu1 }
 0x113   :  { %v1553_v36 = vpack.c.bf16 %v1188_v30, %v1187_v29  ;;  %v943_v37 = vadd.f32 %v1783_v31, %v1671_v26  ;;  %v1786_v38 = vadd.f32 %v1785_v35, %v1784_v32 }
 0x115   :  { %1621 = vst [vmem:[%s2383_s3 + $0x10] sm:$0xff] %v1553_v36   ;;  %v1157_v39 = vadd.f32 %v2298_v41, %v943_v37  ;;  %v946_v40 = vadd.f32 %v1786_v38, %v1674_v34 }
 0x116   :  { %v1675_v42 = vpop.f32.mrb[16].mxu0 }
 0x117   :  { %v1158_v43 = vadd.f32 %v2298_v41, %v946_v40  ;;  %v1787_v44 = vpop.f32.mrb[16].mxu1  ;;  %v1676_v45 = vpop.f32.mrb[17].mxu0  ;;  %v1189_v49 = vmax.f32 %v1157_v39, 0.0 }
 0x118   :  { %v1677_v46 = vadd.f32 %v1676_v45, %v1675_v42  ;;  %v1788_v47 = vpop.f32.mrb[17].mxu1  ;;  %v1678_v48 = vpop.f32.mrb[18].mxu0 }
 0x119   :  { %v1190_v50 = vmax.f32 %v1158_v43, 0.0  ;;  %v1789_v51 = vadd.f32 %v1788_v47, %v1787_v44  ;;  %v1790_v52 = vpop.f32.mrb[18].mxu1  ;;  %v1679_v53 = vpop.f32.mrb[19].mxu0 }
 0x11a   :  { %v1680_v54 = vadd.f32 %v1679_v53, %v1678_v48  ;;  %v1791_v55 = vpop.f32.mrb[19].mxu1 }
 0x11b   :  { %v1558_v56 = vpack.c.bf16 %v1190_v50, %v1189_v49  ;;  %v951_v57 = vadd.f32 %v1789_v51, %v1677_v46  ;;  %v1792_v58 = vadd.f32 %v1791_v55, %v1790_v52 }
 0x11d   :  { %1622 = vst [vmem:[%s2383_s3 + $0x18] sm:$0xff] %v1558_v56   ;;  %v1159_v59 = vadd.f32 %v2298_v41, %v951_v57  ;;  %v954_v60 = vadd.f32 %v1792_v58, %v1680_v54 }
 0x11e   :  { %v1681_v61 = vpop.f32.mrb[20].mxu0 }
 0x11f   :  { %v1160_v62 = vadd.f32 %v2298_v41, %v954_v60  ;;  %v1793_v63 = vpop.f32.mrb[20].mxu1  ;;  %v1682_v0 = vpop.f32.mrb[21].mxu0  ;;  %v1191_v4 = vmax.f32 %v1159_v59, 0.0 }
 0x120   :  { %v1683_v1 = vadd.f32 %v1682_v0, %v1681_v61  ;;  %v1794_v2 = vpop.f32.mrb[21].mxu1  ;;  %v1684_v3 = vpop.f32.mrb[22].mxu0 }
 0x121   :  { %v1192_v5 = vmax.f32 %v1160_v62, 0.0  ;;  %v1795_v6 = vadd.f32 %v1794_v2, %v1793_v63  ;;  %v1796_v7 = vpop.f32.mrb[22].mxu1  ;;  %v1685_v8 = vpop.f32.mrb[23].mxu0 }
 0x122   :  { %v1686_v9 = vadd.f32 %v1685_v8, %v1684_v3  ;;  %v1797_v10 = vpop.f32.mrb[23].mxu1 }
 0x123   :  { %v1563_v11 = vpack.c.bf16 %v1192_v5, %v1191_v4  ;;  %v959_v12 = vadd.f32 %v1795_v6, %v1683_v1  ;;  %v1798_v13 = vadd.f32 %v1797_v10, %v1796_v7 }
 0x125   :  { %1623 = vst [vmem:[%s2383_s3 + $0x20] sm:$0xff] %v1563_v11   ;;  %v1161_v14 = vadd.f32 %v2298_v41, %v959_v12  ;;  %v962_v15 = vadd.f32 %v1798_v13, %v1686_v9 }
 0x126   :  { %v1687_v16 = vpop.f32.mrb[24].mxu0 }
 0x127   :  { %v1162_v17 = vadd.f32 %v2298_v41, %v962_v15  ;;  %v1799_v18 = vpop.f32.mrb[24].mxu1  ;;  %v1688_v19 = vpop.f32.mrb[25].mxu0  ;;  %v1193_v23 = vmax.f32 %v1161_v14, 0.0 }
 0x128   :  { %v1689_v20 = vadd.f32 %v1688_v19, %v1687_v16  ;;  %v1800_v21 = vpop.f32.mrb[25].mxu1  ;;  %v1690_v22 = vpop.f32.mrb[26].mxu0 }
 0x129   :  { %v1194_v24 = vmax.f32 %v1162_v17, 0.0  ;;  %v1801_v25 = vadd.f32 %v1800_v21, %v1799_v18  ;;  %v1802_v26 = vpop.f32.mrb[26].mxu1  ;;  %v1691_v27 = vpop.f32.mrb[27].mxu0 }
 0x12a   :  { %v1692_v28 = vadd.f32 %v1691_v27, %v1690_v22  ;;  %v1803_v29 = vpop.f32.mrb[27].mxu1 }
 0x12b   :  { %v1568_v30 = vpack.c.bf16 %v1194_v24, %v1193_v23  ;;  %v967_v31 = vadd.f32 %v1801_v25, %v1689_v20  ;;  %v1804_v32 = vadd.f32 %v1803_v29, %v1802_v26 }
 0x12d   :  { %1624 = vst [vmem:[%s2383_s3 + $0x28] sm:$0xff] %v1568_v30   ;;  %v1163_v33 = vadd.f32 %v2298_v41, %v967_v31  ;;  %v970_v34 = vadd.f32 %v1804_v32, %v1692_v28 }
 0x12e   :  { %v1693_v35 = vpop.f32.mrb[28].mxu0 }
 0x12f   :  { %v1164_v36 = vadd.f32 %v2298_v41, %v970_v34  ;;  %v1805_v37 = vpop.f32.mrb[28].mxu1  ;;  %v1694_v38 = vpop.f32.mrb[29].mxu0  ;;  %v1195_v43 = vmax.f32 %v1163_v33, 0.0 }
 0x130   :  { %v1695_v39 = vadd.f32 %v1694_v38, %v1693_v35  ;;  %v1806_v40 = vpop.f32.mrb[29].mxu1  ;;  %v1696_v42 = vpop.f32.mrb[30].mxu0 }
 0x131   :  { %v1196_v44 = vmax.f32 %v1164_v36, 0.0  ;;  %v1807_v45 = vadd.f32 %v1806_v40, %v1805_v37  ;;  %v1808_v46 = vpop.f32.mrb[30].mxu1  ;;  %v1697_v47 = vpop.f32.mrb[31].mxu0 }
 0x132   :  { %v1698_v48 = vadd.f32 %v1697_v47, %v1696_v42  ;;  %v1809_v49 = vpop.f32.mrb[31].mxu1 }
 0x133   :  { %v1573_v50 = vpack.c.bf16 %v1196_v44, %v1195_v43  ;;  %v975_v51 = vadd.f32 %v1807_v45, %v1695_v39  ;;  %v1810_v52 = vadd.f32 %v1809_v49, %v1808_v46 }
 0x135   :  { %1625 = vst [vmem:[%s2383_s3 + $0x30] sm:$0xff] %v1573_v50   ;;  %v1165_v53 = vadd.f32 %v2298_v41, %v975_v51  ;;  %v978_v54 = vadd.f32 %v1810_v52, %v1698_v48 }
 0x136   :  { %v1699_v55 = vpop.f32.mrb[32].mxu0 }
 0x137   :  { %v1166_v56 = vadd.f32 %v2298_v41, %v978_v54  ;;  %v1811_v57 = vpop.f32.mrb[32].mxu1  ;;  %v1700_v58 = vpop.f32.mrb[33].mxu0  ;;  %v1197_v62 = vmax.f32 %v1165_v53, 0.0 }
 0x138   :  { %v1701_v59 = vadd.f32 %v1700_v58, %v1699_v55  ;;  %v1812_v60 = vpop.f32.mrb[33].mxu1  ;;  %v1702_v61 = vpop.f32.mrb[34].mxu0 }
 0x139   :  { %v1198_v63 = vmax.f32 %v1166_v56, 0.0  ;;  %v1813_v0 = vadd.f32 %v1812_v60, %v1811_v57  ;;  %v1814_v1 = vpop.f32.mrb[34].mxu1  ;;  %v1703_v2 = vpop.f32.mrb[35].mxu0 }
 0x13a   :  { %v1704_v3 = vadd.f32 %v1703_v2, %v1702_v61  ;;  %v1815_v4 = vpop.f32.mrb[35].mxu1 }
 0x13b   :  { %v1578_v5 = vpack.c.bf16 %v1198_v63, %v1197_v62  ;;  %v983_v6 = vadd.f32 %v1813_v0, %v1701_v59  ;;  %v1816_v7 = vadd.f32 %v1815_v4, %v1814_v1 }
 0x13d   :  { %1626 = vst [vmem:[%s2383_s3 + $0x38] sm:$0xff] %v1578_v5   ;;  %v1167_v8 = vadd.f32 %v2298_v41, %v983_v6  ;;  %v986_v9 = vadd.f32 %v1816_v7, %v1704_v3 }
 0x13e   :  { %v1705_v10 = vpop.f32.mrb[36].mxu0 }
 0x13f   :  { %v1168_v11 = vadd.f32 %v2298_v41, %v986_v9  ;;  %v1817_v12 = vpop.f32.mrb[36].mxu1  ;;  %v1706_v13 = vpop.f32.mrb[37].mxu0  ;;  %v1199_v17 = vmax.f32 %v1167_v8, 0.0 }
 0x140   :  { %v1707_v14 = vadd.f32 %v1706_v13, %v1705_v10  ;;  %v1818_v15 = vpop.f32.mrb[37].mxu1  ;;  %v1708_v16 = vpop.f32.mrb[38].mxu0 }
 0x141   :  { %v1200_v18 = vmax.f32 %v1168_v11, 0.0  ;;  %v1819_v19 = vadd.f32 %v1818_v15, %v1817_v12  ;;  %v1820_v20 = vpop.f32.mrb[38].mxu1  ;;  %v1709_v21 = vpop.f32.mrb[39].mxu0 }
 0x142   :  { %v1710_v22 = vadd.f32 %v1709_v21, %v1708_v16  ;;  %v1821_v23 = vpop.f32.mrb[39].mxu1 }
 0x143   :  { %v1583_v24 = vpack.c.bf16 %v1200_v18, %v1199_v17  ;;  %v991_v25 = vadd.f32 %v1819_v19, %v1707_v14  ;;  %v1822_v26 = vadd.f32 %v1821_v23, %v1820_v20 }
 0x145   :  { %1627 = vst [vmem:[%s2383_s3 + $0x40] sm:$0xff] %v1583_v24   ;;  %v1169_v27 = vadd.f32 %v2298_v41, %v991_v25  ;;  %v994_v28 = vadd.f32 %v1822_v26, %v1710_v22 }
 0x146   :  { %v1711_v29 = vpop.f32.mrb[40].mxu0 }
 0x147   :  { %v1170_v30 = vadd.f32 %v2298_v41, %v994_v28  ;;  %v1823_v31 = vpop.f32.mrb[40].mxu1  ;;  %v1712_v32 = vpop.f32.mrb[41].mxu0  ;;  %v1201_v36 = vmax.f32 %v1169_v27, 0.0 }
 0x148   :  { %v1713_v33 = vadd.f32 %v1712_v32, %v1711_v29  ;;  %v1824_v34 = vpop.f32.mrb[41].mxu1  ;;  %v1714_v35 = vpop.f32.mrb[42].mxu0 }
 0x149   :  { %v1202_v37 = vmax.f32 %v1170_v30, 0.0  ;;  %v1825_v38 = vadd.f32 %v1824_v34, %v1823_v31  ;;  %v1826_v39 = vpop.f32.mrb[42].mxu1  ;;  %v1715_v40 = vpop.f32.mrb[43].mxu0 }
 0x14a   :  { %v1716_v42 = vadd.f32 %v1715_v40, %v1714_v35  ;;  %v1827_v43 = vpop.f32.mrb[43].mxu1 }
 0x14b   :  { %v1588_v44 = vpack.c.bf16 %v1202_v37, %v1201_v36  ;;  %v999_v45 = vadd.f32 %v1825_v38, %v1713_v33  ;;  %v1828_v46 = vadd.f32 %v1827_v43, %v1826_v39 }
 0x14d   :  { %1628 = vst [vmem:[%s2383_s3 + $0x48] sm:$0xff] %v1588_v44   ;;  %v1171_v47 = vadd.f32 %v2298_v41, %v999_v45  ;;  %v1002_v48 = vadd.f32 %v1828_v46, %v1716_v42 }
 0x14e   :  { %v1717_v49 = vpop.f32.mrb[44].mxu0 }
 0x14f   :  { %v1172_v50 = vadd.f32 %v2298_v41, %v1002_v48  ;;  %v1829_v51 = vpop.f32.mrb[44].mxu1  ;;  %v1718_v52 = vpop.f32.mrb[45].mxu0  ;;  %v1203_v56 = vmax.f32 %v1171_v47, 0.0 }
 0x150   :  { %v1719_v53 = vadd.f32 %v1718_v52, %v1717_v49  ;;  %v1830_v54 = vpop.f32.mrb[45].mxu1  ;;  %v1720_v55 = vpop.f32.mrb[46].mxu0 }
 0x151   :  { %v1204_v57 = vmax.f32 %v1172_v50, 0.0  ;;  %v1831_v58 = vadd.f32 %v1830_v54, %v1829_v51  ;;  %v1832_v59 = vpop.f32.mrb[46].mxu1  ;;  %v1721_v60 = vpop.f32.mrb[47].mxu0 }
 0x152   :  { %v1722_v61 = vadd.f32 %v1721_v60, %v1720_v55  ;;  %v1833_v62 = vpop.f32.mrb[47].mxu1 }
 0x153   :  { %v1593_v63 = vpack.c.bf16 %v1204_v57, %v1203_v56  ;;  %v1007_v0 = vadd.f32 %v1831_v58, %v1719_v53  ;;  %v1834_v1 = vadd.f32 %v1833_v62, %v1832_v59 }
 0x155   :  { %1629 = vst [vmem:[%s2383_s3 + $0x50] sm:$0xff] %v1593_v63   ;;  %v1173_v2 = vadd.f32 %v2298_v41, %v1007_v0  ;;  %v1010_v3 = vadd.f32 %v1834_v1, %v1722_v61 }
 0x156   :  { %v1723_v4 = vpop.f32.mrb[48].mxu0 }
 0x157   :  { %v1174_v5 = vadd.f32 %v2298_v41, %v1010_v3  ;;  %v1835_v6 = vpop.f32.mrb[48].mxu1  ;;  %v1724_v7 = vpop.f32.mrb[49].mxu0  ;;  %v1205_v11 = vmax.f32 %v1173_v2, 0.0 }
 0x158   :  { %v1725_v8 = vadd.f32 %v1724_v7, %v1723_v4  ;;  %v1836_v9 = vpop.f32.mrb[49].mxu1  ;;  %v1726_v10 = vpop.f32.mrb[50].mxu0 }
 0x159   :  { %v1206_v12 = vmax.f32 %v1174_v5, 0.0  ;;  %v1837_v13 = vadd.f32 %v1836_v9, %v1835_v6  ;;  %v1838_v14 = vpop.f32.mrb[50].mxu1  ;;  %v1727_v15 = vpop.f32.mrb[51].mxu0 }
 0x15a   :  { %v1728_v16 = vadd.f32 %v1727_v15, %v1726_v10  ;;  %v1839_v17 = vpop.f32.mrb[51].mxu1 }
 0x15b   :  { %v1598_v18 = vpack.c.bf16 %v1206_v12, %v1205_v11  ;;  %v1015_v19 = vadd.f32 %v1837_v13, %v1725_v8  ;;  %v1840_v20 = vadd.f32 %v1839_v17, %v1838_v14 }
 0x15d   :  { %1630 = vst [vmem:[%s2383_s3 + $0x58] sm:$0xff] %v1598_v18   ;;  %v1175_v21 = vadd.f32 %v2298_v41, %v1015_v19  ;;  %v1018_v22 = vadd.f32 %v1840_v20, %v1728_v16 }
 0x15e   :  { %v1729_v23 = vpop.f32.mrb[52].mxu0 }
 0x15f   :  { %v1176_v24 = vadd.f32 %v2298_v41, %v1018_v22  ;;  %v1841_v25 = vpop.f32.mrb[52].mxu1  ;;  %v1730_v26 = vpop.f32.mrb[53].mxu0  ;;  %v1207_v30 = vmax.f32 %v1175_v21, 0.0 }
 0x160   :  { %v1731_v27 = vadd.f32 %v1730_v26, %v1729_v23  ;;  %v1842_v28 = vpop.f32.mrb[53].mxu1  ;;  %v1732_v29 = vpop.f32.mrb[54].mxu0 }
 0x161   :  { %v1208_v31 = vmax.f32 %v1176_v24, 0.0  ;;  %v1843_v32 = vadd.f32 %v1842_v28, %v1841_v25  ;;  %v1844_v33 = vpop.f32.mrb[54].mxu1  ;;  %v1733_v34 = vpop.f32.mrb[55].mxu0 }
 0x162   :  { %v1734_v35 = vadd.f32 %v1733_v34, %v1732_v29  ;;  %v1845_v36 = vpop.f32.mrb[55].mxu1 }
 0x163   :  { %v1603_v37 = vpack.c.bf16 %v1208_v31, %v1207_v30  ;;  %v1023_v38 = vadd.f32 %v1843_v32, %v1731_v27  ;;  %v1846_v39 = vadd.f32 %v1845_v36, %v1844_v33 }
 0x165   :  { %1631 = vst [vmem:[%s2383_s3 + $0x60] sm:$0xff] %v1603_v37   ;;  %v1177_v40 = vadd.f32 %v2298_v41, %v1023_v38  ;;  %v1026_v42 = vadd.f32 %v1846_v39, %v1734_v35 }
 0x166   :  { %v1735_v43 = vpop.f32.mrb[56].mxu0 }
 0x167   :  { %v1178_v44 = vadd.f32 %v2298_v41, %v1026_v42  ;;  %v1847_v45 = vpop.f32.mrb[56].mxu1  ;;  %v1736_v46 = vpop.f32.mrb[57].mxu0  ;;  %v1209_v50 = vmax.f32 %v1177_v40, 0.0 }
 0x168   :  { %v1737_v47 = vadd.f32 %v1736_v46, %v1735_v43  ;;  %v1848_v48 = vpop.f32.mrb[57].mxu1  ;;  %v1738_v49 = vpop.f32.mrb[58].mxu0 }
 0x169   :  { %v1210_v51 = vmax.f32 %v1178_v44, 0.0  ;;  %v1849_v52 = vadd.f32 %v1848_v48, %v1847_v45  ;;  %v1850_v53 = vpop.f32.mrb[58].mxu1  ;;  %v1739_v54 = vpop.f32.mrb[59].mxu0 }
 0x16a   :  { %v1740_v55 = vadd.f32 %v1739_v54, %v1738_v49  ;;  %v1851_v56 = vpop.f32.mrb[59].mxu1 }
 0x16b   :  { %v1608_v57 = vpack.c.bf16 %v1210_v51, %v1209_v50  ;;  %v1031_v58 = vadd.f32 %v1849_v52, %v1737_v47  ;;  %v1852_v59 = vadd.f32 %v1851_v56, %v1850_v53 }
 0x16d   :  { %1632 = vst [vmem:[%s2383_s3 + $0x68] sm:$0xff] %v1608_v57   ;;  %v1179_v60 = vadd.f32 %v2298_v41, %v1031_v58  ;;  %v1034_v61 = vadd.f32 %v1852_v59, %v1740_v55 }
 0x16e   :  { %v1741_v62 = vpop.f32.mrb[60].mxu0 }
 0x16f   :  { %v1180_v63 = vadd.f32 %v2298_v41, %v1034_v61  ;;  %v1853_v0 = vpop.f32.mrb[60].mxu1  ;;  %v1742_v1 = vpop.f32.mrb[61].mxu0  ;;  %v1211_v5 = vmax.f32 %v1179_v60, 0.0 }
 0x170   :  { %v1743_v2 = vadd.f32 %v1742_v1, %v1741_v62  ;;  %v1854_v3 = vpop.f32.mrb[61].mxu1  ;;  %v1744_v4 = vpop.f32.mrb[62].mxu0 }
 0x171   :  { %v1212_v6 = vmax.f32 %v1180_v63, 0.0  ;;  %v1855_v7 = vadd.f32 %v1854_v3, %v1853_v0  ;;  %v1856_v8 = vpop.f32.mrb[62].mxu1  ;;  %v1745_v9 = vpop.f32.mrb[63].mxu0 }
 0x172   :  { %v1746_v10 = vadd.f32 %v1745_v9, %v1744_v4  ;;  %v1857_v11 = vpop.f32.mrb[63].mxu1 }
 0x173   :  { %v1613_v12 = vpack.c.bf16 %v1212_v6, %v1211_v5  ;;  %v1039_v13 = vadd.f32 %v1855_v7, %v1743_v2  ;;  %v1858_v14 = vadd.f32 %v1857_v11, %v1856_v8 }
 0x175   :  { %1633 = vst [vmem:[%s2383_s3 + $0x70] sm:$0xff] %v1613_v12   ;;  %v1181_v15 = vadd.f32 %v2298_v41, %v1039_v13  ;;  %v1042_v16 = vadd.f32 %v1858_v14, %v1746_v10 }
 0x177   :  { %v1182_v17 = vadd.f32 %v2298_v41, %v1042_v16  ;;  %v1213_v18 = vmax.f32 %v1181_v15, 0.0 }
 0x179   :  { %v1214_v19 = vmax.f32 %v1182_v17, 0.0 }
 0x17b   :  { %v1618_v20 = vpack.c.bf16 %v1214_v19, %v1213_v18 }
 0x17d   :  { %1634 = vst [vmem:[%s2383_s3 + $0x78] sm:$0xff] %v1618_v20  }

// kernel: re3net_forward.13
= control target key start
LH: loop header
LB: loop body
LE: loop exit
PB: predicated region body
PF: predicated region fallthrough
CT: control target
= control target key end

     0   :  { %s1352_s12 = smov 0   ;;  %s1354_s13 = smov 0   ;;  %s1504_s0 = inlined_call_operand.vmem [shape: bf16[64,3584], index: 0, kind: input, shape index: {}]   ;;  %s1505_s1 = inlined_call_operand.vmem [shape: bf16[3584,128], index: 1, kind: input, shape index: {}]   ;;  %s1506_s2 = inlined_call_operand.vmem [shape: f32[1,128], index: 2, kind: input, shape index: {}]   ;;  %s1507_s3 = inlined_call_operand.vmem [shape: bf16[64,128], index: 3, kind: output, shape index: {}]  }
   0x1   :  { %s1356_s14 = smov 0   ;;  %s1358_s15 = smov 0  }
   0x2   :  { %s1360_s16 = smov 0  }
   0x3 LB: > { %s25_s17 = sadd.s32 1, %s1325_s15  ;;  %p48_p1 = scmp.ne.s32.totalorder %s1317_s13, %s1313_s12  ;;  %s1329_s16 = sphi %s1360_s16, %s13_s16   ;;  %s1325_s15 = sphi %s1358_s15, %s1511_s15   ;;  %s1321_s14 = sphi %s1356_s14, %s1510_s14   ;;  %s1317_s13 = sphi %s1354_s13, %s1509_s13   ;;  %s1313_s12 = sphi %s1352_s12, %s1508_s12  }
   0x4   : > { %p26_p0 = scmp.ge.s32.totalorder %s25_s17, 7  ;;  %p49_p2 = scmp.eq.s32.totalorder %s1329_s16, 0 }
   0x5   : > { %s41_s19 = sadd.s32 1, %s1317_s13  ;;  %p1011_p5 = scmp.ge.s32.totalorder %s1329_s16, 7 }
   0x6   : > { %s1513_s17 = smov (%p26_p0, %s25_s17), 0  ;;  %p50_p3 = por %p49_p2, %p48_p1 }
   0x7   : > { %s37_s18 = ssub.s32 %s1325_s15, %s1513_s17  ;;  %162 = sbr.rel (%p1011_p5) target bundleno = 26 (0x1a), region = 20 }
   0x8   : > { %p39_p4 = scmp.eq.s32.totalorder %s37_s18, 0 }
   0xa   : > { %s1387_s20 = scalar_select %p39_p4, %s1317_s13, %s41_s19  }
   0xe   : > { %165 = sbr.rel (!%p50_p3) target bundleno = 26 (0x1a), region = 24  ;;  %s167_s21 = sand.u32 (%p50_p3), 1, %s1317_s13  }
   0xf   : > { %s1082_s22 = sshll.u32 (%p50_p3), %s1325_s15, 4  ;;  %s1012_s23 = sshll.u32 (%p50_p3), %s167_s21, 7 }
  0x10   : > { %s1395_s26 = scalar_lea.vmem (%p50_p3), %s1504_s0, %s1082_s22  ;;  %s169_s27 = scalar_lea.vmem (%p50_p3), [#allocation3], %s1012_s23 }
  0x11   : > { %v188_v0 = vld [vmem:[%s1395_s26] sm:$0xff] (%p50_p3)  ;;  %v190_v1 = vld [vmem:[%s1395_s26 + $0x8] sm:$0xff] (%p50_p3)  ;;  %v192_v2 = vld [vmem:[%s1395_s26 + $0x70] sm:$0xff] (%p50_p3) }
  0x12   : > { %189 = vst [vmem:[%s169_s27] sm:$0xff] (%p50_p3), %v188_v0  ;;  %191 = vst [vmem:[%s169_s27 + $0x8] sm:$0xff] (%p50_p3), %v190_v1  ;;  %v194_v3 = vld [vmem:[%s1395_s26 + $0x78] sm:$0xff] (%p50_p3)  ;;  %v196_v4 = vld [vmem:[%s1395_s26 + $0xe0] sm:$0xff] (%p50_p3) }
  0x13   : > { %193 = vst [vmem:[%s169_s27 + $0x10] sm:$0xff] (%p50_p3), %v192_v2  ;;  %v198_v5 = vld [vmem:[%s1395_s26 + $0xe8] sm:$0xff] (%p50_p3)  ;;  %195 = vst [vmem:[%s169_s27 + $0x18] sm:$0xff] (%p50_p3), %v194_v3  ;;  %v200_v6 = vld [vmem:[%s1395_s26 + $0x150] sm:$0xff] (%p50_p3) }
  0x14   : > { %197 = vst [vmem:[%s169_s27 + $0x20] sm:$0xff] (%p50_p3), %v196_v4  ;;  %199 = vst [vmem:[%s169_s27 + $0x28] sm:$0xff] (%p50_p3), %v198_v5  ;;  %v202_v7 = vld [vmem:[%s1395_s26 + $0x158] sm:$0xff] (%p50_p3)  ;;  %v204_v8 = vld [vmem:[%s1395_s26 + $0x1c0] sm:$0xff] (%p50_p3) }
  0x15   : > { %201 = vst [vmem:[%s169_s27 + $0x30] sm:$0xff] %v200_v6  ;;  %203 = vst [vmem:[%s169_s27 + $0x38] sm:$0xff] %v202_v7  ;;  %v206_v9 = vld [vmem:[%s1395_s26 + $0x1c8] sm:$0xff]  ;;  %v208_v10 = vld [vmem:[%s1395_s26 + $0x230] sm:$0xff] }
  0x16   : > { %205 = vst [vmem:[%s169_s27 + $0x40] sm:$0xff] %v204_v8  ;;  %v210_v11 = vld [vmem:[%s1395_s26 + $0x238] sm:$0xff]  ;;  %207 = vst [vmem:[%s169_s27 + $0x48] sm:$0xff] %v206_v9  ;;  %v212_v12 = vld [vmem:[%s1395_s26 + $0x2a0] sm:$0xff] }
  0x17   : > { %209 = vst [vmem:[%s169_s27 + $0x50] sm:$0xff] %v208_v10  ;;  %211 = vst [vmem:[%s169_s27 + $0x58] sm:$0xff] %v210_v11  ;;  %v214_v13 = vld [vmem:[%s1395_s26 + $0x2a8] sm:$0xff]  ;;  %v216_v14 = vld [vmem:[%s1395_s26 + $0x310] sm:$0xff] }
  0x18   : > { %213 = vst [vmem:[%s169_s27 + $0x60] sm:$0xff] %v212_v12  ;;  %215 = vst [vmem:[%s169_s27 + $0x68] sm:$0xff] %v214_v13  ;;  %v218_v15 = vld [vmem:[%s1395_s26 + $0x318] sm:$0xff] }
  0x19   : > { %217 = vst [vmem:[%s169_s27 + $0x70] sm:$0xff] %v216_v14  ;;  %219 = vst [vmem:[%s169_s27 + $0x78] sm:$0xff] %v218_v15 }
  0x1a PF: > { %p1015_p6 = scmp.ge.s32.totalorder %s1329_s16, 1  ;;  %p236_p7 = scmp.lt.s32.totalorder %s1329_s16, 8 }
  0x1c   : > { %p237_p8 = pnand %p1015_p6, %p236_p7 }
  0x1d   : > { %s243_s28 = sand.u32 (!%p237_p8), 1, %s1313_s12   ;;  %s1017_s29 = sshll.u32 (!%p237_p8), %s1321_s14, 6 }
  0x1e   : > { %240 = sbr.rel (%p237_p8) target bundleno = 339 (0x153), region = 51  ;;  %s1016_s30 = sshll.u32 (!%p237_p8), %s243_s28, 7 }
  0x1f   : > { %p283_p9 = scmp.lt.s32.totalorder (!%p237_p8), %s1017_s29, 447  ;;  %s1422_s8 = scalar_lea.vmem (!%p237_p8), [#allocation3], %s1016_s30 }
  0x20   : > { %p1019_p10 = scmp.ne.s32.totalorder (!%p237_p8), %s1321_s14, 0 }
  0x25   : > { %s1515_s29 = smov (!%p283_p9, %s1017_s29), 447  ;;  %307 = sbr.rel (%p1019_p10) target bundleno = 44 (0x2c), region = 59 }
  0x26   : > { %s1018_s4 = sshll.u32 %s1515_s29, 2  ;;  %v1331_v16 = vmov (!%p1019_p10), 0.0  }
  0x27   : > { %s1420_s7 = scalar_lea.vmem %s1505_s1, %s1018_s4  ;;  %308 = vst [vmem:[#allocation2] sm:$0xff] (!%p1019_p10), %v1331_v16  ;;  %309 = vst [vmem:[#allocation2 + $0x8] sm:$0xff] (!%p1019_p10), %v1331_v16 }
  0x28   : > { %310 = vst [vmem:[#allocation2 + $0x10] sm:$0xff] (!%p1019_p10), %v1331_v16  ;;  %311 = vst [vmem:[#allocation2 + $0x18] sm:$0xff] (!%p1019_p10), %v1331_v16 }
  0x29   : > { %312 = vst [vmem:[#allocation2 + $0x20] sm:$0xff] (!%p1019_p10), %v1331_v16  ;;  %313 = vst [vmem:[#allocation2 + $0x28] sm:$0xff] (!%p1019_p10), %v1331_v16 }
  0x2a   : > { %314 = vst [vmem:[#allocation2 + $0x30] sm:$0xff] (!%p1019_p10), %v1331_v16  ;;  %315 = vst [vmem:[#allocation2 + $0x38] sm:$0xff] (!%p1019_p10), %v1331_v16 }
  0x2c PF: > { %v1235_v17 = vld [vmem:[%s1420_s7 + $0x40] sm:$0xff]   ;;  %v1239_v21 = vld [vmem:[%s1420_s7 + $0x48] sm:$0xff]   ;;  %v1243_v25 = vld [vmem:[%s1420_s7 + $0x50] sm:$0xff]   ;;  %p1068_p11 = scmp.ne.s32.totalorder %s1321_s14, 6 }
  0x2d   : > { %v1236_v18 = vld [vmem:[%s1420_s7 + $0xc0] sm:$0xff]   ;;  %1114 = vmatprep.subr.bf16.mxu0 %v1235_v17  ;;  %v1240_v22 = vld [vmem:[%s1420_s7 + $0xc8] sm:$0xff]   ;;  %v1244_v26 = vld [vmem:[%s1420_s7 + $0xd0] sm:$0xff]  }
  0x2e   : > { %v1237_v19 = vld [vmem:[%s1420_s7] sm:$0xff]   ;;  %1154 = vmatprep.subr.bf16.mxu1 %v1236_v18  ;;  %v1241_v23 = vld [vmem:[%s1420_s7 + $0x8] sm:$0xff]   ;;  %v1245_v27 = vld [vmem:[%s1420_s7 + $0x10] sm:$0xff]  }
  0x2f   : > { %v1238_v20 = vld [vmem:[%s1420_s7 + $0x80] sm:$0xff]   ;;  %1115 = vmatpush3.bf16.msra.mxu0 %v1237_v19  ;;  %v1242_v24 = vld [vmem:[%s1420_s7 + $0x88] sm:$0xff]   ;;  %v1246_v28 = vld [vmem:[%s1420_s7 + $0x90] sm:$0xff]  }
  0x30   : > { %1155 = vmatpush3.bf16.msra.mxu1 %v1238_v20  ;;  %1116 = vmatprep.subr.bf16.mxu0 %v1239_v21  ;;  %v1247_v29 = vld [vmem:[%s1420_s7 + $0x58] sm:$0xff]   ;;  %v1251_v33 = vld [vmem:[%s1420_s7 + $0x60] sm:$0xff]   ;;  %v1255_v37 = vld [vmem:[%s1420_s7 + $0x68] sm:$0xff]  }
  0x31   : > { %1156 = vmatprep.subr.bf16.mxu1 %v1240_v22  ;;  %v1248_v30 = vld [vmem:[%s1420_s7 + $0xd8] sm:$0xff]   ;;  %v1252_v34 = vld [vmem:[%s1420_s7 + $0xe0] sm:$0xff]   ;;  %v1256_v38 = vld [vmem:[%s1420_s7 + $0xe8] sm:$0xff]  }
  0x32   : > { %v1249_v31 = vld [vmem:[%s1420_s7 + $0x18] sm:$0xff]   ;;  %v1253_v35 = vld [vmem:[%s1420_s7 + $0x20] sm:$0xff]   ;;  %v1257_v39 = vld [vmem:[%s1420_s7 + $0x28] sm:$0xff]  }
  0x33   : > { %1117 = vmatpush3.bf16.msra.mxu0 %v1241_v23  ;;  %v1250_v32 = vld [vmem:[%s1420_s7 + $0x98] sm:$0xff]   ;;  %v1254_v36 = vld [vmem:[%s1420_s7 + $0xa0] sm:$0xff]   ;;  %v1258_v40 = vld [vmem:[%s1420_s7 + $0xa8] sm:$0xff]  }
  0x34   : > { %1157 = vmatpush3.bf16.msra.mxu1 %v1242_v24  ;;  %1118 = vmatprep.subr.bf16.mxu0 %v1243_v25  ;;  %v1259_v41 = vld [vmem:[%s1420_s7 + $0x70] sm:$0xff]   ;;  %v1263_v45 = vld [vmem:[%s1420_s7 + $0x78] sm:$0xff]   ;;  %v380_v10 = vld [vmem:[#allocation2] sm:$0xff] }
  0x35   : > { %1158 = vmatprep.subr.bf16.mxu1 %v1244_v26  ;;  %v1260_v42 = vld [vmem:[%s1420_s7 + $0xf0] sm:$0xff]   ;;  %v1264_v46 = vld [vmem:[%s1420_s7 + $0xf8] sm:$0xff]   ;;  %v381_v15 = vld [vmem:[#allocation2 + $0x8] sm:$0xff] }
  0x36   : > { %v1261_v43 = vld [vmem:[%s1420_s7 + $0x30] sm:$0xff]   ;;  %v1265_v47 = vld [vmem:[%s1420_s7 + $0x38] sm:$0xff]  }
  0x37   : > { %1119 = vmatpush3.bf16.msra.mxu0 %v1245_v27  ;;  %v1262_v44 = vld [vmem:[%s1420_s7 + $0xb0] sm:$0xff]   ;;  %v1266_v48 = vld [vmem:[%s1420_s7 + $0xb8] sm:$0xff]  }
  0x38   : > { %1159 = vmatpush3.bf16.msra.mxu1 %v1246_v28  ;;  %1120 = vmatprep.subr.bf16.mxu0 %v1247_v29  ;;  %v1267_v49 = vld [vmem:[%s1422_s8] ss:$16 sps:$4 sm:$0xff]   ;;  %v1269_v50 = vld [vmem:[%s1422_s8 + $0x4] ss:$16 sps:$4 sm:$0xff]   ;;  %v1270_v51 = vld [vmem:[%s1422_s8 + $0x8] ss:$16 sps:$4 sm:$0xff]  }
  0x39   : > { %1160 = vmatprep.subr.bf16.mxu1 %v1248_v30  ;;  %v1272_v52 = vld [vmem:[%s1422_s8 + $0xc] ss:$16 sps:$4 sm:$0xff]   ;;  %708 = vmatprep.mubr.bf16.mxu0 %v1269_v50  ;;  %v1273_v53 = vld [vmem:[%s1422_s8 + $0x24] ss:$16 sps:$4 sm:$0xff]   ;;  %v1277_v55 = vld [vmem:[%s1422_s8 + $0x20] ss:$16 sps:$4 sm:$0xff]  }
  0x3a   : > { %773 = vmatprep.mubr.bf16.mxu1 %v1272_v52  ;;  %v1275_v54 = vld [vmem:[%s1422_s8 + $0x2c] ss:$16 sps:$4 sm:$0xff]   ;;  %v1278_v56 = vld [vmem:[%s1422_s8 + $0x28] ss:$16 sps:$4 sm:$0xff]   ;;  %v1279_v57 = vld [vmem:[%s1422_s8 + $0x44] ss:$16 sps:$4 sm:$0xff]  }
  0x3b   : > { %1121 = vmatpush3.bf16.msra.mxu0 %v1249_v31  ;;  %v1281_v58 = vld [vmem:[%s1422_s8 + $0x4c] ss:$16 sps:$4 sm:$0xff]   ;;  %v1283_v59 = vld [vmem:[%s1422_s8 + $0x40] ss:$16 sps:$4 sm:$0xff]   ;;  %v1284_v60 = vld [vmem:[%s1422_s8 + $0x48] ss:$16 sps:$4 sm:$0xff]  }
  0x3c   : > { %1161 = vmatpush3.bf16.msra.mxu1 %v1250_v32  ;;  %1122 = vmatprep.subr.bf16.mxu0 %v1251_v33  ;;  %v1285_v61 = vld [vmem:[%s1422_s8 + $0x64] ss:$16 sps:$4 sm:$0xff]   ;;  %v1287_v62 = vld [vmem:[%s1422_s8 + $0x6c] ss:$16 sps:$4 sm:$0xff]   ;;  %v1289_v63 = vld [vmem:[%s1422_s8 + $0x60] ss:$16 sps:$4 sm:$0xff]  }
  0x3d   : > { %1162 = vmatprep.subr.bf16.mxu1 %v1252_v34  ;;  %v1290_v0 = vld [vmem:[%s1422_s8 + $0x68] ss:$16 sps:$4 sm:$0xff]   ;;  %v382_v28 = vld [vmem:[#allocation2 + $0x10] sm:$0xff] }
  0x3e   : > { %v383_v33 = vld [vmem:[#allocation2 + $0x18] sm:$0xff] }
  0x3f   : > { %1123 = vmatpush3.bf16.msra.mxu0 %v1253_v35 }
  0x40   : > { %1163 = vmatpush3.bf16.msra.mxu1 %v1254_v36  ;;  %1124 = vmatprep.subr.bf16.mxu0 %v1255_v37 }
  0x41   : > { %1164 = vmatprep.subr.bf16.mxu1 %v1256_v38 }
  0x43   : > { %1125 = vmatpush3.bf16.msra.mxu0 %v1257_v39 }
  0x44   : > { %1165 = vmatpush3.bf16.msra.mxu1 %v1258_v40  ;;  %1126 = vmatprep.subr.bf16.mxu0 %v1259_v41 }
  0x45   : > { %1166 = vmatprep.subr.bf16.mxu1 %v1260_v42 }
  0x47   : > { %1127 = vmatpush3.bf16.msra.mxu0 %v1261_v43 }
  0x48   : > { %1167 = vmatpush3.bf16.msra.mxu1 %v1262_v44  ;;  %1128 = vmatprep.subr.bf16.mxu0 %v1263_v45 }
  0x49   : > { %1168 = vmatprep.subr.bf16.mxu1 %v1264_v46  ;;  %v384_v46 = vld [vmem:[#allocation2 + $0x20] sm:$0xff] }
  0x4b   : > { %1129 = vmatpush3.bf16.msra.mxu0 %v1265_v47 }
  0x4c   : > { %1169 = vmatpush3.bf16.msra.mxu1 %v1266_v48 }
  0x4e   : > { %709 = vmatmul.mubr.bf16.vlgmr.msra.gmra.mrb[0].mxu0 %v1267_v49 }
  0x4f   : > { %774 = vmatmul.mubr.bf16.vlgmr.msra.gmra.mrb[0].mxu1 %v1270_v51  ;;  %716 = vmatprep.mubr.bf16.mxu0 %v1273_v53  ;;  %v385_v51 = vld [vmem:[#allocation2 + $0x28] sm:$0xff] }
  0x50   : > { %781 = vmatprep.mubr.bf16.mxu1 %v1275_v54 }
  0x56   : > { %717 = vmatmul.mubr.bf16.gmra.mrb[4].mxu0 %v1277_v55 }
  0x57   : > { %782 = vmatmul.mubr.bf16.gmra.mrb[4].mxu1 %v1278_v56  ;;  %724 = vmatprep.mubr.bf16.mxu0 %v1279_v57 }
  0x58   : > { %789 = vmatprep.mubr.bf16.mxu1 %v1281_v58 }
  0x5e   : > { %725 = vmatmul.mubr.bf16.gmra.mrb[8].mxu0 %v1283_v59 }
  0x5f   : > { %790 = vmatmul.mubr.bf16.gmra.mrb[8].mxu1 %v1284_v60  ;;  %732 = vmatprep.mubr.bf16.mxu0 %v1285_v61 }
  0x60   : > { %797 = vmatprep.mubr.bf16.mxu1 %v1287_v62 }
  0x66   : > { %733 = vmatmul.mubr.bf16.gmra.mrb[12].mxu0 %v1289_v63 }
  0x67   : > { %798 = vmatmul.mubr.bf16.gmra.mrb[12].mxu1 %v1290_v0  ;;  %v386_v0 = vld [vmem:[#allocation2 + $0x30] sm:$0xff] }
 0x121   : > { %v1130_v1 = vpop.f32.mrb[0].mxu0 }
 0x122   : > { %v1170_v2 = vpop.f32.mrb[0].mxu1  ;;  %v1131_v3 = vpop.f32.mrb[1].mxu0 }
 0x123   : > { %v1132_v4 = vadd.f32 %v1131_v3, %v1130_v1  ;;  %v1171_v5 = vpop.f32.mrb[1].mxu1  ;;  %v1133_v6 = vpop.f32.mrb[2].mxu0 }
 0x124   : > { %v1172_v7 = vadd.f32 %v1171_v5, %v1170_v2  ;;  %v1173_v8 = vpop.f32.mrb[2].mxu1  ;;  %v1134_v9 = vpop.f32.mrb[3].mxu0  ;;  %v387_v5 = vld [vmem:[#allocation2 + $0x38] sm:$0xff] }
 0x125   : > { %v1135_v11 = vadd.f32 %v1134_v9, %v1133_v6  ;;  %v1174_v12 = vpop.f32.mrb[3].mxu1 }
 0x126   : > { %v776_v13 = vadd.f32 %v1172_v7, %v1132_v4  ;;  %v1175_v14 = vadd.f32 %v1174_v12, %v1173_v8 }
 0x128   : > { %v806_v16 = vadd.f32 %v776_v13, %v380_v10  ;;  %v779_v17 = vadd.f32 %v1175_v14, %v1135_v11  ;;  %v1069_v11 = vld [vmem:[%s1506_s2] ss:$0 sm:$0xff] (!%p1068_p11) }
 0x129   : > { %v1136_v18 = vpop.f32.mrb[4].mxu0 }
 0x12a   : > { %814 = vst [vmem:[#allocation2] sm:$0xff] %v806_v16  ;;  %v807_v19 = vadd.f32 %v779_v17, %v381_v15  ;;  %v1176_v20 = vpop.f32.mrb[4].mxu1  ;;  %v1137_v21 = vpop.f32.mrb[5].mxu0 }
 0x12b   : > { %v1138_v22 = vadd.f32 %v1137_v21, %v1136_v18  ;;  %v1177_v23 = vpop.f32.mrb[5].mxu1  ;;  %v1139_v24 = vpop.f32.mrb[6].mxu0 }
 0x12c   : > { %815 = vst [vmem:[#allocation2 + $0x8] sm:$0xff] %v807_v19  ;;  %v1178_v25 = vadd.f32 %v1177_v23, %v1176_v20  ;;  %v1179_v26 = vpop.f32.mrb[6].mxu1  ;;  %v1140_v27 = vpop.f32.mrb[7].mxu0 }
 0x12d   : > { %v1141_v29 = vadd.f32 %v1140_v27, %v1139_v24  ;;  %v1180_v30 = vpop.f32.mrb[7].mxu1 }
 0x12e   : > { %v784_v31 = vadd.f32 %v1178_v25, %v1138_v22  ;;  %v1181_v32 = vadd.f32 %v1180_v30, %v1179_v26 }
 0x130   : > { %v808_v34 = vadd.f32 %v784_v31, %v382_v28  ;;  %v787_v35 = vadd.f32 %v1181_v32, %v1141_v29 }
 0x131   : > { %v1142_v36 = vpop.f32.mrb[8].mxu0  ;;  %v826_v9 = vld [vmem:[#allocation2] sm:$0xff] (!%p1068_p11) }
 0x132   : > { %816 = vst [vmem:[#allocation2 + $0x10] sm:$0xff] %v808_v34  ;;  %v809_v37 = vadd.f32 %v787_v35, %v383_v33  ;;  %v1182_v38 = vpop.f32.mrb[8].mxu1  ;;  %v1143_v39 = vpop.f32.mrb[9].mxu0  ;;  %v841_v12 = vadd.f32 (!%p1068_p11), %v1069_v11, %v826_v9 }
 0x133   : > { %v1144_v40 = vadd.f32 %v1143_v39, %v1142_v36  ;;  %v1183_v41 = vpop.f32.mrb[9].mxu1  ;;  %v1145_v42 = vpop.f32.mrb[10].mxu0  ;;  %v827_v10 = vld [vmem:[#allocation2 + $0x8] sm:$0xff] (!%p1068_p11) }
 0x134   : > { %817 = vst [vmem:[#allocation2 + $0x18] sm:$0xff] %v809_v37  ;;  %v1184_v43 = vadd.f32 %v1183_v41, %v1182_v38  ;;  %v1185_v44 = vpop.f32.mrb[10].mxu1  ;;  %v1146_v45 = vpop.f32.mrb[11].mxu0  ;;  %v842_v13 = vadd.f32 (!%p1068_p11), %v1069_v11, %v827_v10  ;;  %v849_v23 = vmax.f32 (!%p1068_p11), %v841_v12, 0.0 }
 0x135   : > { %v1147_v47 = vadd.f32 %v1146_v45, %v1145_v42  ;;  %v1186_v48 = vpop.f32.mrb[11].mxu1 }
 0x136   : > { %v792_v49 = vadd.f32 %v1184_v43, %v1144_v40  ;;  %v1187_v50 = vadd.f32 %v1186_v48, %v1185_v44  ;;  %v850_v24 = vmax.f32 (!%p1068_p11), %v842_v13, 0.0 }
 0x138   : > { %v810_v52 = vadd.f32 %v792_v49, %v384_v46  ;;  %v795_v53 = vadd.f32 %v1187_v50, %v1147_v47  ;;  %v1094_v31 = vpack.c.bf16 (!%p1068_p11), %v850_v24, %v849_v23 }
 0x139   : > { %v1148_v54 = vpop.f32.mrb[12].mxu0  ;;  %v828_v14 = vld [vmem:[#allocation2 + $0x10] sm:$0xff] (!%p1068_p11) }
 0x13a   : > { %818 = vst [vmem:[#allocation2 + $0x20] sm:$0xff] %v810_v52  ;;  %v811_v55 = vadd.f32 %v795_v53, %v385_v51  ;;  %v1188_v56 = vpop.f32.mrb[12].mxu1  ;;  %v1149_v57 = vpop.f32.mrb[13].mxu0  ;;  %v843_v17 = vadd.f32 (!%p1068_p11), %v1069_v11, %v828_v14  ;;  %1095 = vst [vmem:[%s1507_s3] sm:$0xff] (!%p1068_p11), %v1094_v31  }
 0x13b   : > { %v1150_v58 = vadd.f32 %v1149_v57, %v1148_v54  ;;  %v1189_v59 = vpop.f32.mrb[13].mxu1  ;;  %v1151_v60 = vpop.f32.mrb[14].mxu0  ;;  %v829_v15 = vld [vmem:[#allocation2 + $0x18] sm:$0xff] (!%p1068_p11) }
 0x13c   : > { %819 = vst [vmem:[#allocation2 + $0x28] sm:$0xff] %v811_v55  ;;  %v1190_v61 = vadd.f32 %v1189_v59, %v1188_v56  ;;  %v1191_v62 = vpop.f32.mrb[14].mxu1  ;;  %v1152_v63 = vpop.f32.mrb[15].mxu0  ;;  %v844_v18 = vadd.f32 (!%p1068_p11), %v1069_v11, %v829_v15  ;;  %v851_v27 = vmax.f32 (!%p1068_p11), %v843_v17, 0.0 }
 0x13d   : > { %v1153_v1 = vadd.f32 %v1152_v63, %v1151_v60  ;;  %v1192_v2 = vpop.f32.mrb[15].mxu1 }
 0x13e   : > { %v800_v3 = vadd.f32 %v1190_v61, %v1150_v58  ;;  %v1193_v4 = vadd.f32 %v1192_v2, %v1191_v62  ;;  %825 = sbr.rel (%p1068_p11) target bundleno = 339 (0x153), region = 63  ;;  %v852_v28 = vmax.f32 (!%p1068_p11), %v844_v18, 0.0 }
 0x140   : > { %v812_v6 = vadd.f32 %v800_v3, %v386_v0  ;;  %v803_v7 = vadd.f32 %v1193_v4, %v1153_v1  ;;  %v1099_v34 = vpack.c.bf16 (!%p1068_p11), %v852_v28, %v851_v27 }
 0x141   : > { %v830_v16 = vld [vmem:[#allocation2 + $0x20] sm:$0xff] (!%p1068_p11) }
 0x142   : > { %820 = vst [vmem:[#allocation2 + $0x30] sm:$0xff] %v812_v6  ;;  %v813_v8 = vadd.f32 %v803_v7, %v387_v5  ;;  %v845_v20 = vadd.f32 (!%p1068_p11), %v1069_v11, %v830_v16  ;;  %1111 = vst [vmem:[%s1507_s3 + $0x8] sm:$0xff] (!%p1068_p11), %v1099_v34  }
 0x143   : > { %v831_v19 = vld [vmem:[#allocation2 + $0x28] sm:$0xff] (!%p1068_p11) }
 0x144   : > { %821 = vst [vmem:[#allocation2 + $0x38] sm:$0xff] %v813_v8  ;;  %v846_v25 = vadd.f32 (!%p1068_p11), %v1069_v11, %v831_v19  ;;  %v853_v29 = vmax.f32 (!%p1068_p11), %v845_v20, 0.0 }
 0x146   : > { %v854_v32 = vmax.f32 %v846_v25, 0.0 }
 0x148   : > { %v1104_v36 = vpack.c.bf16 %v854_v32, %v853_v29 }
 0x149   : > { %v832_v21 = vld [vmem:[#allocation2 + $0x30] sm:$0xff] }
 0x14a   : > { %v847_v26 = vadd.f32 %v1069_v11, %v832_v21  ;;  %1112 = vst [vmem:[%s1507_s3 + $0x10] sm:$0xff] %v1104_v36  }
 0x14b   : > { %v833_v22 = vld [vmem:[#allocation2 + $0x38] sm:$0xff] }
 0x14c   : > { %v848_v30 = vadd.f32 %v1069_v11, %v833_v22  ;;  %v855_v33 = vmax.f32 %v847_v26, 0.0 }
 0x14e   : > { %v856_v35 = vmax.f32 %v848_v30, 0.0 }
 0x150   : > { %v1109_v37 = vpack.c.bf16 %v856_v35, %v855_v33 }
 0x152   : > { %1113 = vst [vmem:[%s1507_s3 + $0x18] sm:$0xff] %v1109_v37  }
 0x153 PF: > { %s13_s16 = sadd.s32 1, %s1329_s16   ;;  %s1508_s12 = smov %s1317_s13 }
 0x154   : > { %p10_p12 = scmp.ge.s32.totalorder %s13_s16, 9   ;;  %s1509_s13 = smov %s1387_s20 }
 0x155   : > { %s1510_s14 = smov %s1325_s15  ;;  %s1511_s15 = smov %s1513_s17 }
 0x156   :  { %12 = sbr.rel (!%p10_p12) target bundleno = 3 (0x3), region = 104 }

// kernel: re3net_forward.19
= control target key start
LH: loop header
LB: loop body
LE: loop exit
PB: predicated region body
PF: predicated region fallthrough
CT: control target
= control target key end

     0   :  { %v244_v0 = vmov 0.0   ;;  %vm245_vm0 = vmmov 0   ;;  %s307_s1 = inlined_call_operand.vmem [shape: bf16[128,128], index: 1, kind: input, shape index: {}]   ;;  %s308_s0 = inlined_call_operand.vmem [shape: bf16[16,128], index: 0, kind: input, shape index: {}]   ;;  %s309_s2 = inlined_call_operand.vmem [shape: f32[1,128], index: 2, kind: input, shape index: {}]   ;;  %s310_s3 = inlined_call_operand.vmem [shape: f32[1,128], index: 3, kind: input, shape index: {}]   ;;  %s311_s4 = inlined_call_operand.vmem [shape: bf16[16,128], index: 4, kind: output, shape index: {}]  }
   0x1   :  { %213 = vmatprep.subr.bf16.mxu0 %v244_v0  ;;  %v235_v1 = vld [vmem:[%s307_s1] sm:$0xff]   ;;  %229 = vmatprep.mubr.msk.bf16.mxu0 %vm245_vm0, %v244_v0  ;;  %v236_v2 = vld [vmem:[%s307_s1 + $0x8] sm:$0xff]   ;;  %v237_v3 = vld [vmem:[%s307_s1 + $0x10] sm:$0xff]  }
   0x2   :  { %214 = vmatpush3.bf16.msra.mxu0 %v235_v1  ;;  %v238_v4 = vld [vmem:[%s307_s1 + $0x18] sm:$0xff]   ;;  %v239_v5 = vld [vmem:[%s307_s1 + $0x20] sm:$0xff]   ;;  %v240_v6 = vld [vmem:[%s307_s1 + $0x28] sm:$0xff]  }
   0x3   :  { %215 = vmatprep.subr.bf16.mxu0 %v244_v0  ;;  %v241_v7 = vld [vmem:[%s307_s1 + $0x30] sm:$0xff]   ;;  %v242_v8 = vld [vmem:[%s307_s1 + $0x38] sm:$0xff]   ;;  %v243_v9 = vld [vmem:[%s308_s0] sm:$0xff]  }
   0x4   :  { %v193_v10 = vld [vmem:[%s309_s2] ss:$0 sm:$0xff] }
   0x5   :  { %v194_v12 = vld [vmem:[%s310_s3] ss:$0 sm:$0xff] }
   0x6   :  { %216 = vmatpush3.bf16.msra.mxu0 %v236_v2 }
   0x7   :  { %217 = vmatprep.subr.bf16.mxu0 %v244_v0 }
   0xa   :  { %218 = vmatpush3.bf16.msra.mxu0 %v237_v3 }
   0xb   :  { %219 = vmatprep.subr.bf16.mxu0 %v244_v0 }
   0xe   :  { %220 = vmatpush3.bf16.msra.mxu0 %v238_v4 }
   0xf   :  { %221 = vmatprep.subr.bf16.mxu0 %v244_v0 }
  0x12   :  { %222 = vmatpush3.bf16.msra.mxu0 %v239_v5 }
  0x13   :  { %223 = vmatprep.subr.bf16.mxu0 %v244_v0 }
  0x16   :  { %224 = vmatpush3.bf16.msra.mxu0 %v240_v6 }
  0x17   :  { %225 = vmatprep.subr.bf16.mxu0 %v244_v0 }
  0x1a   :  { %226 = vmatpush3.bf16.msra.mxu0 %v241_v7 }
  0x1b   :  { %227 = vmatprep.subr.bf16.mxu0 %v244_v0 }
  0x1e   :  { %228 = vmatpush3.bf16.msra.mxu0 %v242_v8 }
  0x21   :  { %230 = vmatmul.mubr.bf16.vlgmr.msra.gmra.mrb[0].mxu0 %v243_v9 }
  0xf4   :  { %v132_v11 = vpop.f32.mrb[0].mxu0 }
  0xf5   :  { %v155_v13 = vadd.f32 %v193_v10, %v132_v11  ;;  %v231_v14 = vpop.f32.mrb[1].mxu0 }
  0xf6   :  { %v135_v15 = vpop.f32.mrb[2].mxu0 }
  0xf7   :  { %v166_v16 = vmul.f32 %v194_v12, %v155_v13  ;;  %v156_v17 = vadd.f32 %v193_v10, %v135_v15  ;;  %v232_v18 = vpop.f32.mrb[3].mxu0  ;;  %vm157_vm1 = vcmp.ge.f32.partialorder %v155_v13, 0.0 }
  0xf9   :  { %vm158_vm2 = vcmp.ge.f32.partialorder %v156_v17, 0.0  ;;  %v167_v19 = vmul.f32 %v194_v12, %v156_v17  ;;  %v168_v20 = vsel %vm157_vm1, %v155_v13, %v166_v16 }
  0xfb   :  { %v169_v21 = vsel %vm158_vm2, %v156_v17, %v167_v19 }
  0xfc   :  { %v202_v22 = vpack.c.bf16 %v169_v21, %v168_v20 }
  0xfe   :  { %203 = vst [vmem:[%s311_s4] sm:$0xff] %v202_v22  }

// kernel: re3net_forward.14
= control target key start
LH: loop header
LB: loop body
LE: loop exit
PB: predicated region body
PF: predicated region fallthrough
CT: control target
= control target key end

     0   :  { %s1040_s12 = smov 0   ;;  %s1042_s13 = smov 0   ;;  %s1153_s0 = inlined_call_operand.vmem [shape: bf16[16,1536], index: 0, kind: input, shape index: {}]   ;;  %s1154_s1 = inlined_call_operand.vmem [shape: bf16[1536,128], index: 1, kind: input, shape index: {}]   ;;  %s1155_s2 = inlined_call_operand.vmem [shape: f32[1,128], index: 2, kind: input, shape index: {}]   ;;  %s1156_s3 = inlined_call_operand.vmem [shape: bf16[16,128], index: 3, kind: output, shape index: {}]  }
   0x1   :  { %s1044_s14 = smov 0   ;;  %s1046_s15 = smov 0  }
   0x2   :  { %s1048_s16 = smov 0  }
   0x3 LB: > { %s25_s17 = sadd.s32 1, %s1013_s15  ;;  %p48_p1 = scmp.ne.s32.totalorder %s1005_s13, %s1001_s12  ;;  %s1017_s16 = sphi %s1048_s16, %s13_s16   ;;  %s1013_s15 = sphi %s1046_s15, %s1160_s15   ;;  %s1009_s14 = sphi %s1044_s14, %s1159_s14   ;;  %s1005_s13 = sphi %s1042_s13, %s1158_s13   ;;  %s1001_s12 = sphi %s1040_s12, %s1157_s12  }
   0x4   : > { %p26_p0 = scmp.ge.s32.totalorder %s25_s17, 3  ;;  %p49_p2 = scmp.eq.s32.totalorder %s1017_s16, 0 }
   0x5   : > { %s41_s19 = sadd.s32 1, %s1005_s13  ;;  %p795_p5 = scmp.ge.s32.totalorder %s1017_s16, 3 }
   0x6   : > { %s1162_s17 = smov (%p26_p0, %s25_s17), 0  ;;  %p50_p3 = por %p49_p2, %p48_p1 }
   0x7   : > { %s37_s18 = ssub.s32 %s1013_s15, %s1162_s17  ;;  %162 = sbr.rel (%p795_p5) target bundleno = 21 (0x15), region = 20 }
   0x8   : > { %p39_p4 = scmp.eq.s32.totalorder %s37_s18, 0 }
   0xa   : > { %s1075_s20 = scalar_select %p39_p4, %s1005_s13, %s41_s19  }
   0xe   : > { %165 = sbr.rel (!%p50_p3) target bundleno = 21 (0x15), region = 24  ;;  %s167_s21 = sand.u32 (%p50_p3), 1, %s1005_s13  }
   0xf   : > { %s848_s22 = sshll.u32 (%p50_p3), %s1013_s15, 4  ;;  %s796_s23 = sshll.u32 (%p50_p3), %s167_s21, 5 }
  0x10   : > { %s175_s26 = scalar_lea.vmem (%p50_p3), %s1153_s0, %s848_s22  ;;  %s169_s27 = scalar_lea.vmem (%p50_p3), [#allocation3], %s796_s23 }
  0x11   : > { %v188_v0 = vld [vmem:[%s175_s26] sm:$0xff] (%p50_p3)  ;;  %v190_v1 = vld [vmem:[%s175_s26 + $0x8] sm:$0xff] (%p50_p3)  ;;  %v192_v2 = vld [vmem:[%s175_s26 + $0x30] sm:$0xff] (%p50_p3) }
  0x12   : > { %189 = vst [vmem:[%s169_s27] sm:$0xff] (%p50_p3), %v188_v0  ;;  %191 = vst [vmem:[%s169_s27 + $0x8] sm:$0xff] (%p50_p3), %v190_v1  ;;  %v194_v3 = vld [vmem:[%s175_s26 + $0x38] sm:$0xff] (%p50_p3) }
  0x13   : > { %193 = vst [vmem:[%s169_s27 + $0x10] sm:$0xff] (%p50_p3), %v192_v2  ;;  %195 = vst [vmem:[%s169_s27 + $0x18] sm:$0xff] (%p50_p3), %v194_v3 }
  0x15 PF: > { %p799_p6 = scmp.ge.s32.totalorder %s1017_s16, 1  ;;  %p212_p7 = scmp.lt.s32.totalorder %s1017_s16, 4 }
  0x17   : > { %p213_p8 = pnand %p799_p6, %p212_p7 }
  0x18   : > { %s219_s28 = sand.u32 (!%p213_p8), 1, %s1001_s12   ;;  %s801_s29 = sshll.u32 (!%p213_p8), %s1009_s14, 6 }
  0x19   : > { %216 = sbr.rel (%p213_p8) target bundleno = 310 (0x136), region = 51  ;;  %s800_s30 = sshll.u32 (!%p213_p8), %s219_s28, 5 }
  0x1a   : > { %p259_p9 = scmp.lt.s32.totalorder (!%p213_p8), %s801_s29, 191  ;;  %s1092_s8 = scalar_lea.vmem (!%p213_p8), [#allocation3], %s800_s30 }
  0x1b   : > { %p803_p10 = scmp.ne.s32.totalorder (!%p213_p8), %s1009_s14, 0 }
  0x20   : > { %s1164_s29 = smov (!%p259_p9, %s801_s29), 191  ;;  %283 = sbr.rel (%p803_p10) target bundleno = 39 (0x27), region = 59 }
  0x21   : > { %s802_s4 = sshll.u32 %s1164_s29, 2  ;;  %v1019_v4 = vmov (!%p803_p10), 0.0  }
  0x22   : > { %s1090_s7 = scalar_lea.vmem %s1154_s1, %s802_s4  ;;  %284 = vst [vmem:[#allocation2] sm:$0xff] (!%p803_p10), %v1019_v4  ;;  %285 = vst [vmem:[#allocation2 + $0x8] sm:$0xff] (!%p803_p10), %v1019_v4 }
  0x27 PF: > { %v941_v5 = vld [vmem:[%s1090_s7 + $0x40] sm:$0xff]   ;;  %v945_v9 = vld [vmem:[%s1090_s7 + $0x48] sm:$0xff]   ;;  %v949_v13 = vld [vmem:[%s1090_s7 + $0x50] sm:$0xff]   ;;  %p840_p11 = scmp.ne.s32.totalorder %s1009_s14, 2 }
  0x28   : > { %v942_v6 = vld [vmem:[%s1090_s7 + $0xc0] sm:$0xff]   ;;  %856 = vmatprep.subr.bf16.mxu0 %v941_v5  ;;  %v946_v10 = vld [vmem:[%s1090_s7 + $0xc8] sm:$0xff]   ;;  %v950_v14 = vld [vmem:[%s1090_s7 + $0xd0] sm:$0xff]  }
  0x29   : > { %v943_v7 = vld [vmem:[%s1090_s7] sm:$0xff]   ;;  %878 = vmatprep.subr.bf16.mxu1 %v942_v6  ;;  %v947_v11 = vld [vmem:[%s1090_s7 + $0x8] sm:$0xff]   ;;  %v951_v15 = vld [vmem:[%s1090_s7 + $0x10] sm:$0xff]  }
  0x2a   : > { %v944_v8 = vld [vmem:[%s1090_s7 + $0x80] sm:$0xff]   ;;  %857 = vmatpush3.bf16.msra.mxu0 %v943_v7  ;;  %v948_v12 = vld [vmem:[%s1090_s7 + $0x88] sm:$0xff]   ;;  %v952_v16 = vld [vmem:[%s1090_s7 + $0x90] sm:$0xff]  }
  0x2b   : > { %879 = vmatpush3.bf16.msra.mxu1 %v944_v8  ;;  %858 = vmatprep.subr.bf16.mxu0 %v945_v9  ;;  %v953_v17 = vld [vmem:[%s1090_s7 + $0x58] sm:$0xff]   ;;  %v957_v21 = vld [vmem:[%s1090_s7 + $0x60] sm:$0xff]   ;;  %v961_v25 = vld [vmem:[%s1090_s7 + $0x68] sm:$0xff]  }
  0x2c   : > { %880 = vmatprep.subr.bf16.mxu1 %v946_v10  ;;  %v954_v18 = vld [vmem:[%s1090_s7 + $0xd8] sm:$0xff]   ;;  %v958_v22 = vld [vmem:[%s1090_s7 + $0xe0] sm:$0xff]   ;;  %v962_v26 = vld [vmem:[%s1090_s7 + $0xe8] sm:$0xff]  }
  0x2d   : > { %v955_v19 = vld [vmem:[%s1090_s7 + $0x18] sm:$0xff]   ;;  %v959_v23 = vld [vmem:[%s1090_s7 + $0x20] sm:$0xff]   ;;  %v963_v27 = vld [vmem:[%s1090_s7 + $0x28] sm:$0xff]  }
  0x2e   : > { %859 = vmatpush3.bf16.msra.mxu0 %v947_v11  ;;  %v956_v20 = vld [vmem:[%s1090_s7 + $0x98] sm:$0xff]   ;;  %v960_v24 = vld [vmem:[%s1090_s7 + $0xa0] sm:$0xff]   ;;  %v964_v28 = vld [vmem:[%s1090_s7 + $0xa8] sm:$0xff]  }
  0x2f   : > { %881 = vmatpush3.bf16.msra.mxu1 %v948_v12  ;;  %860 = vmatprep.subr.bf16.mxu0 %v949_v13  ;;  %v965_v29 = vld [vmem:[%s1090_s7 + $0x70] sm:$0xff]   ;;  %v969_v33 = vld [vmem:[%s1090_s7 + $0x78] sm:$0xff]   ;;  %v350_v50 = vld [vmem:[#allocation2] sm:$0xff] }
  0x30   : > { %882 = vmatprep.subr.bf16.mxu1 %v950_v14  ;;  %v966_v30 = vld [vmem:[%s1090_s7 + $0xf0] sm:$0xff]   ;;  %v970_v34 = vld [vmem:[%s1090_s7 + $0xf8] sm:$0xff]   ;;  %v351_v55 = vld [vmem:[#allocation2 + $0x8] sm:$0xff] }
  0x31   : > { %v967_v31 = vld [vmem:[%s1090_s7 + $0x30] sm:$0xff]   ;;  %v971_v35 = vld [vmem:[%s1090_s7 + $0x38] sm:$0xff]   ;;  %v841_v61 = vld [vmem:[%s1155_s2] ss:$0 sm:$0xff] (!%p840_p11) }
  0x32   : > { %861 = vmatpush3.bf16.msra.mxu0 %v951_v15  ;;  %v968_v32 = vld [vmem:[%s1090_s7 + $0xb0] sm:$0xff]   ;;  %v972_v36 = vld [vmem:[%s1090_s7 + $0xb8] sm:$0xff]  }
  0x33   : > { %883 = vmatpush3.bf16.msra.mxu1 %v952_v16  ;;  %862 = vmatprep.subr.bf16.mxu0 %v953_v17  ;;  %v973_v37 = vld [vmem:[%s1092_s8] ss:$16 sps:$4 sm:$0xff]   ;;  %v975_v38 = vld [vmem:[%s1092_s8 + $0x4] ss:$16 sps:$4 sm:$0xff]   ;;  %v976_v39 = vld [vmem:[%s1092_s8 + $0x8] ss:$16 sps:$4 sm:$0xff]  }
  0x34   : > { %884 = vmatprep.subr.bf16.mxu1 %v954_v18  ;;  %v978_v40 = vld [vmem:[%s1092_s8 + $0xc] ss:$16 sps:$4 sm:$0xff]   ;;  %600 = vmatprep.mubr.bf16.mxu0 %v975_v38 }
  0x35   : > { %641 = vmatprep.mubr.bf16.mxu1 %v978_v40 }
  0x36   : > { %863 = vmatpush3.bf16.msra.mxu0 %v955_v19 }
  0x37   : > { %885 = vmatpush3.bf16.msra.mxu1 %v956_v20  ;;  %864 = vmatprep.subr.bf16.mxu0 %v957_v21 }
  0x38   : > { %886 = vmatprep.subr.bf16.mxu1 %v958_v22 }
  0x3a   : > { %865 = vmatpush3.bf16.msra.mxu0 %v959_v23 }
  0x3b   : > { %887 = vmatpush3.bf16.msra.mxu1 %v960_v24  ;;  %866 = vmatprep.subr.bf16.mxu0 %v961_v25 }
  0x3c   : > { %888 = vmatprep.subr.bf16.mxu1 %v962_v26 }
  0x3e   : > { %867 = vmatpush3.bf16.msra.mxu0 %v963_v27 }
  0x3f   : > { %889 = vmatpush3.bf16.msra.mxu1 %v964_v28  ;;  %868 = vmatprep.subr.bf16.mxu0 %v965_v29 }
  0x40   : > { %890 = vmatprep.subr.bf16.mxu1 %v966_v30 }
  0x42   : > { %869 = vmatpush3.bf16.msra.mxu0 %v967_v31 }
  0x43   : > { %891 = vmatpush3.bf16.msra.mxu1 %v968_v32  ;;  %870 = vmatprep.subr.bf16.mxu0 %v969_v33 }
  0x44   : > { %892 = vmatprep.subr.bf16.mxu1 %v970_v34 }
  0x46   : > { %871 = vmatpush3.bf16.msra.mxu0 %v971_v35 }
  0x47   : > { %893 = vmatpush3.bf16.msra.mxu1 %v972_v36 }
  0x49   : > { %601 = vmatmul.mubr.bf16.vlgmr.msra.gmra.mrb[0].mxu0 %v973_v37 }
  0x4a   : > { %642 = vmatmul.mubr.bf16.vlgmr.msra.gmra.mrb[0].mxu1 %v976_v39 }
 0x11c   : > { %v872_v41 = vpop.f32.mrb[0].mxu0 }
 0x11d   : > { %v894_v42 = vpop.f32.mrb[0].mxu1  ;;  %v873_v43 = vpop.f32.mrb[1].mxu0 }
 0x11e   : > { %v874_v44 = vadd.f32 %v873_v43, %v872_v41  ;;  %v895_v45 = vpop.f32.mrb[1].mxu1  ;;  %v875_v46 = vpop.f32.mrb[2].mxu0 }
 0x11f   : > { %v896_v47 = vadd.f32 %v895_v45, %v894_v42  ;;  %v897_v48 = vpop.f32.mrb[2].mxu1  ;;  %v876_v49 = vpop.f32.mrb[3].mxu0 }
 0x120   : > { %v877_v51 = vadd.f32 %v876_v49, %v875_v46  ;;  %v898_v52 = vpop.f32.mrb[3].mxu1 }
 0x121   : > { %v644_v53 = vadd.f32 %v896_v47, %v874_v44  ;;  %v899_v54 = vadd.f32 %v898_v52, %v897_v48  ;;  %657 = sbr.rel (%p840_p11) target bundleno = 310 (0x136), region = 63 }
 0x123   : > { %v650_v56 = vadd.f32 %v644_v53, %v350_v50  ;;  %v647_v57 = vadd.f32 %v899_v54, %v877_v51 }
 0x125   : > { %652 = vst [vmem:[#allocation2] sm:$0xff] %v650_v56  ;;  %v651_v58 = vadd.f32 %v647_v57, %v351_v55 }
 0x127   : > { %653 = vst [vmem:[#allocation2 + $0x8] sm:$0xff] %v651_v58 }
 0x12c   : > { %v658_v59 = vld [vmem:[#allocation2] sm:$0xff] }
 0x12d   : > { %v667_v62 = vadd.f32 %v841_v61, %v658_v59 }
 0x12e   : > { %v659_v60 = vld [vmem:[#allocation2 + $0x8] sm:$0xff] }
 0x12f   : > { %v668_v63 = vadd.f32 %v841_v61, %v659_v60  ;;  %v669_v0 = vmax.f32 %v667_v62, 0.0 }
 0x131   : > { %v670_v1 = vmax.f32 %v668_v63, 0.0 }
 0x133   : > { %v854_v2 = vpack.c.bf16 %v670_v1, %v669_v0 }
 0x135   : > { %855 = vst [vmem:[%s1156_s3] sm:$0xff] %v854_v2  }
 0x136 PF: > { %s13_s16 = sadd.s32 1, %s1017_s16   ;;  %s1157_s12 = smov %s1005_s13 }
 0x137   : > { %p10_p12 = scmp.ge.s32.totalorder %s13_s16, 5   ;;  %s1158_s13 = smov %s1075_s20 }
 0x138   : > { %s1159_s14 = smov %s1013_s15  ;;  %s1160_s15 = smov %s1162_s17 }
 0x139   :  { %12 = sbr.rel (!%p10_p12) target bundleno = 3 (0x3), region = 104 }

// kernel: re3net_forward.17
= control target key start
LH: loop header
LB: loop body
LE: loop exit
PB: predicated region body
PF: predicated region fallthrough
CT: control target
= control target key end

     0   :  { %s514_s1 = inlined_call_operand.vmem [shape: bf16[128,128], index: 1, kind: input, shape index: {}]   ;;  %s515_s0 = inlined_call_operand.vmem [shape: bf16[64,128], index: 0, kind: input, shape index: {}]   ;;  %s516_s2 = inlined_call_operand.vmem [shape: f32[1,128], index: 2, kind: input, shape index: {}]   ;;  %s517_s3 = inlined_call_operand.vmem [shape: f32[1,128], index: 3, kind: input, shape index: {}]   ;;  %s518_s4 = inlined_call_operand.vmem [shape: bf16[64,128], index: 4, kind: output, shape index: {}]  }
   0x1   :  { %v421_v0 = vld [vmem:[%s514_s1] sm:$0xff]   ;;  %v422_v1 = vld [vmem:[%s514_s1 + $0x8] sm:$0xff]   ;;  %v423_v2 = vld [vmem:[%s514_s1 + $0x10] sm:$0xff]  }
   0x2   :  { %381 = vmatprep.subr.bf16.mxu0 %v421_v0  ;;  %405 = vmatprep.subr.bf16.mxu1 %v421_v0  ;;  %v424_v3 = vld [vmem:[%s514_s1 + $0x18] sm:$0xff]   ;;  %v429_v4 = vld [vmem:[%s515_s0] sm:$0xff]   ;;  %v430_v5 = vld [vmem:[%s515_s0 + $0x10] sm:$0xff]  }
   0x3   :  { %382 = vmatpush3.bf16.msra.mxu0 %v421_v0  ;;  %413 = vmatpush3.bf16.msra.mxu1 %v421_v0  ;;  %v425_v6 = vld [vmem:[%s514_s1 + $0x20] sm:$0xff]   ;;  %v426_v7 = vld [vmem:[%s514_s1 + $0x28] sm:$0xff]   ;;  %v427_v8 = vld [vmem:[%s514_s1 + $0x30] sm:$0xff]  }
   0x4   :  { %383 = vmatprep.subr.bf16.mxu0 %v422_v1  ;;  %406 = vmatprep.subr.bf16.mxu1 %v422_v1  ;;  %v428_v9 = vld [vmem:[%s514_s1 + $0x38] sm:$0xff]   ;;  %v431_v10 = vld [vmem:[%s515_s0 + $0x8] sm:$0xff]   ;;  %v328_v12 = vld [vmem:[%s516_s2] ss:$0 sm:$0xff] }
   0x5   :  { %397 = vmatprep.mubr.bf16.mxu0 %v429_v4  ;;  %401 = vmatprep.mubr.bf16.mxu1 %v430_v5  ;;  %v432_v11 = vld [vmem:[%s515_s0 + $0x18] sm:$0xff]   ;;  %v329_v14 = vld [vmem:[%s517_s3] ss:$0 sm:$0xff] }
   0x7   :  { %384 = vmatpush3.bf16.msra.mxu0 %v422_v1  ;;  %414 = vmatpush3.bf16.msra.mxu1 %v422_v1 }
   0x8   :  { %385 = vmatprep.subr.bf16.mxu0 %v423_v2  ;;  %407 = vmatprep.subr.bf16.mxu1 %v423_v2 }
   0xb   :  { %386 = vmatpush3.bf16.msra.mxu0 %v423_v2  ;;  %415 = vmatpush3.bf16.msra.mxu1 %v423_v2 }
   0xc   :  { %387 = vmatprep.subr.bf16.mxu0 %v424_v3  ;;  %408 = vmatprep.subr.bf16.mxu1 %v424_v3 }
   0xf   :  { %388 = vmatpush3.bf16.msra.mxu0 %v424_v3  ;;  %416 = vmatpush3.bf16.msra.mxu1 %v424_v3 }
  0x10   :  { %389 = vmatprep.subr.bf16.mxu0 %v425_v6  ;;  %409 = vmatprep.subr.bf16.mxu1 %v425_v6 }
  0x13   :  { %390 = vmatpush3.bf16.msra.mxu0 %v425_v6  ;;  %417 = vmatpush3.bf16.msra.mxu1 %v425_v6 }
  0x14   :  { %391 = vmatprep.subr.bf16.mxu0 %v426_v7  ;;  %410 = vmatprep.subr.bf16.mxu1 %v426_v7 }
  0x17   :  { %392 = vmatpush3.bf16.msra.mxu0 %v426_v7  ;;  %418 = vmatpush3.bf16.msra.mxu1 %v426_v7 }
  0x18   :  { %393 = vmatprep.subr.bf16.mxu0 %v427_v8  ;;  %411 = vmatprep.subr.bf16.mxu1 %v427_v8 }
  0x1b   :  { %394 = vmatpush3.bf16.msra.mxu0 %v427_v8  ;;  %419 = vmatpush3.bf16.msra.mxu1 %v427_v8 }
  0x1c   :  { %395 = vmatprep.subr.bf16.mxu0 %v428_v9  ;;  %412 = vmatprep.subr.bf16.mxu1 %v428_v9 }
  0x1f   :  { %396 = vmatpush3.bf16.msra.mxu0 %v428_v9  ;;  %420 = vmatpush3.bf16.msra.mxu1 %v428_v9 }
  0x22   :  { %398 = vmatmul.mubr.bf16.vlgmr.msra.gmra.mrb[0].mxu0 %v431_v10  ;;  %402 = vmatmul.mubr.bf16.vlgmr.msra.gmra.mrb[0].mxu1 %v432_v11 }
  0xf5   :  { %v399_v13 = vpop.f32.mrb[0].mxu0  ;;  %v403_v15 = vpop.f32.mrb[0].mxu1 }
  0xf6   :  { %v235_v16 = vadd.f32 %v399_v13, %v328_v12  ;;  %v239_v17 = vadd.f32 %v403_v15, %v328_v12  ;;  %v168_v18 = vpop.f32.mrb[1].mxu0  ;;  %v184_v19 = vpop.f32.mrb[1].mxu1 }
  0xf7   :  { %v233_v20 = vadd.f32 %v328_v12, %v168_v18  ;;  %v237_v21 = vadd.f32 %v328_v12, %v184_v19  ;;  %v400_v22 = vpop.f32.mrb[2].mxu0  ;;  %v404_v23 = vpop.f32.mrb[2].mxu1 }
  0xf8   :  { %vm243_vm0 = vcmp.ge.f32.partialorder %v235_v16, 0.0  ;;  %v258_v24 = vmul.f32 %v329_v14, %v235_v16  ;;  %vm247_vm1 = vcmp.ge.f32.partialorder %v239_v17, 0.0  ;;  %v262_v25 = vmul.f32 %v329_v14, %v239_v17  ;;  %v171_v26 = vpop.f32.mrb[3].mxu0  ;;  %v187_v27 = vpop.f32.mrb[3].mxu1 }
  0xf9   :  { %vm241_vm2 = vcmp.ge.f32.partialorder %v233_v20, 0.0  ;;  %v256_v28 = vmul.f32 %v329_v14, %v233_v20  ;;  %vm245_vm3 = vcmp.ge.f32.partialorder %v237_v21, 0.0  ;;  %v260_v29 = vmul.f32 %v329_v14, %v237_v21 }
  0xfa   :  { %v236_v30 = vadd.f32 %v400_v22, %v328_v12  ;;  %v240_v31 = vadd.f32 %v404_v23, %v328_v12  ;;  %v266_v32 = vsel %vm243_vm0, %v235_v16, %v258_v24  ;;  %v270_v33 = vsel %vm247_vm1, %v239_v17, %v262_v25 }
  0xfb   :  { %v234_v34 = vadd.f32 %v328_v12, %v171_v26  ;;  %v238_v35 = vadd.f32 %v328_v12, %v187_v27  ;;  %v264_v40 = vsel %vm241_vm2, %v233_v20, %v256_v28  ;;  %v268_v41 = vsel %vm245_vm3, %v237_v21, %v260_v29 }
  0xfc   :  { %vm244_vm4 = vcmp.ge.f32.partialorder %v236_v30, 0.0  ;;  %v259_v36 = vmul.f32 %v329_v14, %v236_v30  ;;  %vm248_vm5 = vcmp.ge.f32.partialorder %v240_v31, 0.0  ;;  %v263_v37 = vmul.f32 %v329_v14, %v240_v31 }
  0xfd   :  { %vm242_vm6 = vcmp.ge.f32.partialorder %v234_v34, 0.0  ;;  %v257_v38 = vmul.f32 %v329_v14, %v234_v34  ;;  %vm246_vm7 = vcmp.ge.f32.partialorder %v238_v35, 0.0  ;;  %v261_v39 = vmul.f32 %v329_v14, %v238_v35 }
  0xfe   :  { %v267_v42 = vsel %vm244_vm4, %v236_v30, %v259_v36  ;;  %v271_v43 = vsel %vm248_vm5, %v240_v31, %v263_v37 }
  0xff   :  { %v354_v44 = vpack.c.bf16 %v267_v42, %v266_v32  ;;  %v364_v45 = vpack.c.bf16 %v271_v43, %v270_v33  ;;  %v265_v46 = vsel %vm242_vm6, %v234_v34, %v257_v38  ;;  %v269_v47 = vsel %vm246_vm7, %v238_v35, %v261_v39 }
 0x100   :  { %v349_v48 = vpack.c.bf16 %v265_v46, %v264_v40  ;;  %v359_v49 = vpack.c.bf16 %v269_v47, %v268_v41 }
 0x101   :  { %366 = vst [vmem:[%s518_s4 + $0x8] sm:$0xff] %v354_v44   ;;  %368 = vst [vmem:[%s518_s4 + $0x18] sm:$0xff] %v364_v45  }
 0x102   :  { %350 = vst [vmem:[%s518_s4] sm:$0xff] %v349_v48   ;;  %367 = vst [vmem:[%s518_s4 + $0x10] sm:$0xff] %v359_v49  }

// kernel: re3net_forward.21
= control target key start
LH: loop header
LB: loop body
LE: loop exit
PB: predicated region body
PF: predicated region fallthrough
CT: control target
= control target key end

     0   :  { %s455_s1 = inlined_call_operand.vmem [shape: s8[512,256], index: 1, kind: input, shape index: {}]   ;;  %s456_s0 = inlined_call_operand.vmem [shape: bf16[16,512], index: 0, kind: input, shape index: {}]   ;;  %s457_s2 = inlined_call_operand.vmem [shape: f32[1,256], index: 2, kind: input, shape index: {}]   ;;  %s458_s3 = inlined_call_operand.vmem [shape: f32[1,256], index: 3, kind: input, shape index: {}]   ;;  %s459_s4 = inlined_call_operand.vmem [shape: f32[16,256], index: 4, kind: output, shape index: {}]  }
   0x1   :  { %v26_v0 = vld [vmem:[%s455_s1 + $0x8] sm:$0xff]  ;;  %v25_v2 = vld [vmem:[%s455_s1] sm:$0xff]  ;;  %v28_v10 = vld [vmem:[%s455_s1 + $0x18] sm:$0xff] }
   0x2   :  { %v42_v1 = vld [vmem:[%s455_s1 + $0x88] sm:$0xff]  ;;  %v58_v3 = vunpack.c.l.s8.bf16 %v26_v0  ;;  %v60_v4 = vunpack.c.h.s8.bf16 %v26_v0  ;;  %v41_v7 = vld [vmem:[%s455_s1 + $0x80] sm:$0xff]  ;;  %v57_v8 = vunpack.c.l.s8.bf16 %v25_v2  ;;  %v44_v11 = vld [vmem:[%s455_s1 + $0x98] sm:$0xff]  ;;  %v59_v12 = vunpack.c.h.s8.bf16 %v25_v2 }
   0x3   :  { %v90_v5 = vunpack.c.l.s8.bf16 %v42_v1  ;;  %v92_v6 = vunpack.c.h.s8.bf16 %v42_v1  ;;  %v89_v9 = vunpack.c.l.s8.bf16 %v41_v7  ;;  %v91_v13 = vunpack.c.h.s8.bf16 %v41_v7  ;;  %v27_v16 = vld [vmem:[%s455_s1 + $0x10] sm:$0xff]  ;;  %v30_v22 = vld [vmem:[%s455_s1 + $0x28] sm:$0xff]  ;;  %v29_v29 = vld [vmem:[%s455_s1 + $0x20] sm:$0xff] }
   0x4   :  { %149 = vmatprep.subr.bf16.mxu1 %v58_v3  ;;  %v62_v14 = vunpack.c.l.s8.bf16 %v28_v10  ;;  %v94_v15 = vunpack.c.l.s8.bf16 %v44_v11  ;;  %v43_v17 = vld [vmem:[%s455_s1 + $0x90] sm:$0xff]  ;;  %v61_v18 = vunpack.c.l.s8.bf16 %v27_v16  ;;  %v64_v20 = vunpack.c.h.s8.bf16 %v28_v10  ;;  %v46_v23 = vld [vmem:[%s455_s1 + $0xa8] sm:$0xff]  ;;  %v45_v30 = vld [vmem:[%s455_s1 + $0xa0] sm:$0xff] }
   0x5   :  { %192 = vmatprep.subr.bf16.mxu0 %v90_v5  ;;  %150 = vmatpush1.bf16.msra.mxu1 %v57_v8  ;;  %v93_v19 = vunpack.c.l.s8.bf16 %v43_v17  ;;  %v96_v21 = vunpack.c.h.s8.bf16 %v44_v11  ;;  %v300_v24 = vld [vmem:[%s456_s0 + $0x4] ss:$16 sps:$4 sm:$0xff]   ;;  %v63_v25 = vunpack.c.h.s8.bf16 %v27_v16  ;;  %v95_v26 = vunpack.c.h.s8.bf16 %v43_v17  ;;  %v303_v31 = vld [vmem:[%s456_s0 + $0xc] ss:$16 sps:$4 sm:$0xff]  }
   0x6   :  { %193 = vmatpush1.bf16.msra.mxu0 %v89_v9  ;;  %151 = vmatprep.subr.bf16.mxu1 %v60_v4  ;;  %v66_v27 = vunpack.c.l.s8.bf16 %v30_v22  ;;  %v98_v28 = vunpack.c.l.s8.bf16 %v46_v23  ;;  %v65_v32 = vunpack.c.l.s8.bf16 %v29_v29  ;;  %v97_v33 = vunpack.c.l.s8.bf16 %v45_v30  ;;  %v32_v36 = vld [vmem:[%s455_s1 + $0x38] sm:$0xff]  ;;  %v31_v42 = vld [vmem:[%s455_s1 + $0x30] sm:$0xff]  ;;  %v34_v48 = vld [vmem:[%s455_s1 + $0x48] sm:$0xff] }
   0x7   :  { %194 = vmatprep.subr.bf16.mxu0 %v92_v6  ;;  %181 = vmatprep.mubr.bf16.mxu1 %v300_v24  ;;  %v68_v34 = vunpack.c.h.s8.bf16 %v30_v22  ;;  %v100_v35 = vunpack.c.h.s8.bf16 %v46_v23  ;;  %v48_v37 = vld [vmem:[%s455_s1 + $0xb8] sm:$0xff]  ;;  %v67_v38 = vunpack.c.h.s8.bf16 %v29_v29  ;;  %v99_v39 = vunpack.c.h.s8.bf16 %v45_v30  ;;  %v47_v43 = vld [vmem:[%s455_s1 + $0xb0] sm:$0xff]  ;;  %v50_v49 = vld [vmem:[%s455_s1 + $0xc8] sm:$0xff] }
   0x8   :  { %224 = vmatprep.mubr.bf16.mxu0 %v303_v31  ;;  %v70_v40 = vunpack.c.l.s8.bf16 %v32_v36  ;;  %v102_v41 = vunpack.c.l.s8.bf16 %v48_v37  ;;  %v69_v44 = vunpack.c.l.s8.bf16 %v31_v42  ;;  %v101_v45 = vunpack.c.l.s8.bf16 %v47_v43  ;;  %v33_v54 = vld [vmem:[%s455_s1 + $0x40] sm:$0xff]  ;;  %v36_v60 = vld [vmem:[%s455_s1 + $0x58] sm:$0xff]  ;;  %v35_v2 = vld [vmem:[%s455_s1 + $0x50] sm:$0xff] }
   0x9   :  { %152 = vmatpush1.bf16.msra.mxu1 %v59_v12  ;;  %v72_v46 = vunpack.c.h.s8.bf16 %v32_v36  ;;  %v104_v47 = vunpack.c.h.s8.bf16 %v48_v37  ;;  %v71_v50 = vunpack.c.h.s8.bf16 %v31_v42  ;;  %v103_v51 = vunpack.c.h.s8.bf16 %v47_v43  ;;  %v49_v55 = vld [vmem:[%s455_s1 + $0xc0] sm:$0xff]  ;;  %v52_v61 = vld [vmem:[%s455_s1 + $0xd8] sm:$0xff]  ;;  %v51_v3 = vld [vmem:[%s455_s1 + $0xd0] sm:$0xff] }
   0xa   :  { %195 = vmatpush1.bf16.msra.mxu0 %v91_v13  ;;  %153 = vmatprep.subr.bf16.mxu1 %v62_v14  ;;  %v74_v52 = vunpack.c.l.s8.bf16 %v34_v48  ;;  %v106_v53 = vunpack.c.l.s8.bf16 %v50_v49  ;;  %v73_v56 = vunpack.c.l.s8.bf16 %v33_v54  ;;  %v105_v57 = vunpack.c.l.s8.bf16 %v49_v55  ;;  %v38_v8 = vld [vmem:[%s455_s1 + $0x68] sm:$0xff]  ;;  %v37_v14 = vld [vmem:[%s455_s1 + $0x60] sm:$0xff] }
   0xb   :  { %196 = vmatprep.subr.bf16.mxu0 %v94_v15  ;;  %v76_v58 = vunpack.c.h.s8.bf16 %v34_v48  ;;  %v108_v59 = vunpack.c.h.s8.bf16 %v50_v49  ;;  %v75_v62 = vunpack.c.h.s8.bf16 %v33_v54  ;;  %v107_v63 = vunpack.c.h.s8.bf16 %v49_v55  ;;  %v54_v9 = vld [vmem:[%s455_s1 + $0xe8] sm:$0xff]  ;;  %v53_v15 = vld [vmem:[%s455_s1 + $0xe0] sm:$0xff] }
   0xc   :  { %v78_v0 = vunpack.c.l.s8.bf16 %v36_v60  ;;  %v110_v1 = vunpack.c.l.s8.bf16 %v52_v61  ;;  %v77_v4 = vunpack.c.l.s8.bf16 %v35_v2  ;;  %v109_v5 = vunpack.c.l.s8.bf16 %v51_v3 }
   0xd   :  { %154 = vmatpush1.bf16.msra.mxu1 %v61_v18  ;;  %v80_v6 = vunpack.c.h.s8.bf16 %v36_v60  ;;  %v112_v7 = vunpack.c.h.s8.bf16 %v52_v61  ;;  %v79_v10 = vunpack.c.h.s8.bf16 %v35_v2  ;;  %v111_v11 = vunpack.c.h.s8.bf16 %v51_v3 }
   0xe   :  { %197 = vmatpush1.bf16.msra.mxu0 %v93_v19  ;;  %155 = vmatprep.subr.bf16.mxu1 %v64_v20  ;;  %v82_v12 = vunpack.c.l.s8.bf16 %v38_v8  ;;  %v114_v13 = vunpack.c.l.s8.bf16 %v54_v9  ;;  %v81_v16 = vunpack.c.l.s8.bf16 %v37_v14  ;;  %v113_v17 = vunpack.c.l.s8.bf16 %v53_v15  ;;  %v40_v20 = vld [vmem:[%s455_s1 + $0x78] sm:$0xff] }
   0xf   :  { %198 = vmatprep.subr.bf16.mxu0 %v96_v21  ;;  %v84_v18 = vunpack.c.h.s8.bf16 %v38_v8  ;;  %v116_v19 = vunpack.c.h.s8.bf16 %v54_v9  ;;  %v56_v21 = vld [vmem:[%s455_s1 + $0xf8] sm:$0xff]  ;;  %v83_v22 = vunpack.c.h.s8.bf16 %v37_v14  ;;  %v115_v23 = vunpack.c.h.s8.bf16 %v53_v15 }
  0x10   :  { %v86_v24 = vunpack.c.l.s8.bf16 %v40_v20  ;;  %v88_v30 = vunpack.c.h.s8.bf16 %v40_v20  ;;  %v120_v31 = vunpack.c.h.s8.bf16 %v56_v21  ;;  %v252_v36 = vlaneseq }
  0x11   :  { %156 = vmatpush1.bf16.msra.mxu1 %v63_v25  ;;  %v118_v25 = vunpack.c.l.s8.bf16 %v56_v21 }
  0x12   :  { %199 = vmatpush1.bf16.msra.mxu0 %v95_v26  ;;  %157 = vmatprep.subr.bf16.mxu1 %v66_v27  ;;  %v39_v26 = vld [vmem:[%s455_s1 + $0x70] sm:$0xff]  ;;  %v253_v37 = vshrl.u32 %v252_v36, 7 }
  0x13   :  { %200 = vmatprep.subr.bf16.mxu0 %v98_v28  ;;  %v55_v27 = vld [vmem:[%s455_s1 + $0xf0] sm:$0xff]  ;;  %v85_v28 = vunpack.c.l.s8.bf16 %v39_v26 }
  0x14   :  { %v117_v29 = vunpack.c.l.s8.bf16 %v55_v27 }
  0x15   :  { %158 = vmatpush1.bf16.msra.mxu1 %v65_v32  ;;  %v87_v32 = vunpack.c.h.s8.bf16 %v39_v26 }
  0x16   :  { %201 = vmatpush1.bf16.msra.mxu0 %v97_v33  ;;  %159 = vmatprep.subr.bf16.mxu1 %v68_v34  ;;  %v119_v33 = vunpack.c.h.s8.bf16 %v55_v27  ;;  %v298_v34 = vld [vmem:[%s456_s0] ss:$16 sps:$4 sm:$0xff]  }
  0x17   :  { %202 = vmatprep.subr.bf16.mxu0 %v100_v35  ;;  %v301_v35 = vld [vmem:[%s456_s0 + $0x8] ss:$16 sps:$4 sm:$0xff]  }
  0x19   :  { %160 = vmatpush1.bf16.msra.mxu1 %v67_v38  ;;  %v254_v38 = vsub.s32 0, %v253_v37 }
  0x1a   :  { %203 = vmatpush1.bf16.msra.mxu0 %v99_v39  ;;  %161 = vmatprep.subr.bf16.mxu1 %v70_v40  ;;  %v250_v39 = vld [vmem:[%s457_s2] sm:$0x3]  ;;  %v258_v40 = vsub.s32 1, %v253_v37 }
  0x1b   :  { %204 = vmatprep.subr.bf16.mxu0 %v102_v41  ;;  %v266_v41 = vld [vmem:[%s458_s3] sm:$0x3]  ;;  %v255_v42 = vrot.slane %v250_v39, %v254_v38 }
  0x1d   :  { %162 = vmatpush1.bf16.msra.mxu1 %v69_v44 }
  0x1e   :  { %205 = vmatpush1.bf16.msra.mxu0 %v101_v45  ;;  %163 = vmatprep.subr.bf16.mxu1 %v72_v46  ;;  %v259_v45 = vrot.slane %v250_v39, %v258_v40 }
  0x1f   :  { %206 = vmatprep.subr.bf16.mxu0 %v104_v47  ;;  %v271_v47 = vrot.slane %v266_v41, %v254_v38 }
  0x21   :  { %164 = vmatpush1.bf16.msra.mxu1 %v71_v50 }
  0x22   :  { %207 = vmatpush1.bf16.msra.mxu0 %v103_v51  ;;  %165 = vmatprep.subr.bf16.mxu1 %v74_v52  ;;  %v275_v51 = vrot.slane %v266_v41, %v258_v40 }
  0x23   :  { %208 = vmatprep.subr.bf16.mxu0 %v106_v53 }
  0x25   :  { %166 = vmatpush1.bf16.msra.mxu1 %v73_v56 }
  0x26   :  { %209 = vmatpush1.bf16.msra.mxu0 %v105_v57  ;;  %167 = vmatprep.subr.bf16.mxu1 %v76_v58 }
  0x27   :  { %210 = vmatprep.subr.bf16.mxu0 %v108_v59 }
  0x29   :  { %168 = vmatpush1.bf16.msra.mxu1 %v75_v62 }
  0x2a   :  { %211 = vmatpush1.bf16.msra.mxu0 %v107_v63  ;;  %169 = vmatprep.subr.bf16.mxu1 %v78_v0 }
  0x2b   :  { %212 = vmatprep.subr.bf16.mxu0 %v110_v1 }
  0x2d   :  { %170 = vmatpush1.bf16.msra.mxu1 %v77_v4 }
  0x2e   :  { %213 = vmatpush1.bf16.msra.mxu0 %v109_v5  ;;  %171 = vmatprep.subr.bf16.mxu1 %v80_v6 }
  0x2f   :  { %214 = vmatprep.subr.bf16.mxu0 %v112_v7 }
  0x31   :  { %172 = vmatpush1.bf16.msra.mxu1 %v79_v10 }
  0x32   :  { %215 = vmatpush1.bf16.msra.mxu0 %v111_v11  ;;  %173 = vmatprep.subr.bf16.mxu1 %v82_v12 }
  0x33   :  { %216 = vmatprep.subr.bf16.mxu0 %v114_v13 }
  0x35   :  { %174 = vmatpush1.bf16.msra.mxu1 %v81_v16 }
  0x36   :  { %217 = vmatpush1.bf16.msra.mxu0 %v113_v17  ;;  %175 = vmatprep.subr.bf16.mxu1 %v84_v18 }
  0x37   :  { %218 = vmatprep.subr.bf16.mxu0 %v116_v19 }
  0x39   :  { %176 = vmatpush1.bf16.msra.mxu1 %v83_v22 }
  0x3a   :  { %219 = vmatpush1.bf16.msra.mxu0 %v115_v23  ;;  %177 = vmatprep.subr.bf16.mxu1 %v86_v24 }
  0x3b   :  { %220 = vmatprep.subr.bf16.mxu0 %v118_v25 }
  0x3d   :  { %178 = vmatpush1.bf16.msra.mxu1 %v85_v28 }
  0x3e   :  { %221 = vmatpush1.bf16.msra.mxu0 %v117_v29  ;;  %179 = vmatprep.subr.bf16.mxu1 %v88_v30 }
  0x3f   :  { %222 = vmatprep.subr.bf16.mxu0 %v120_v31 }
  0x41   :  { %180 = vmatpush1.bf16.msra.mxu1 %v87_v32 }
  0x42   :  { %223 = vmatpush1.bf16.msra.mxu0 %v119_v33 }
  0x44   :  { %182 = vmatmul.mubr.bf16.vlgmr.msra.gmra.mrb[0].mxu1 %v298_v34 }
  0x45   :  { %225 = vmatmul.mubr.bf16.vlgmr.msra.gmra.mrb[0].mxu0 %v301_v35 }
 0x117   :  { %v183_v43 = vpop.f32.mrb[0].mxu1 }
 0x118   :  { %v226_v44 = vpop.f32.mrb[0].mxu0  ;;  %v185_v48 = vpop.f32.mrb[1].mxu1 }
 0x119   :  { %v227_v46 = vadd.f32 %v226_v44, %v183_v43  ;;  %v228_v49 = vpop.f32.mrb[1].mxu0  ;;  %v187_v52 = vpop.f32.mrb[2].mxu1 }
 0x11a   :  { %v229_v50 = vadd.f32 %v228_v49, %v185_v48  ;;  %v230_v53 = vpop.f32.mrb[2].mxu0  ;;  %v189_v56 = vpop.f32.mrb[3].mxu1 }
 0x11b   :  { %v262_v54 = vmul.f32 %v255_v42, %v227_v46  ;;  %v231_v55 = vadd.f32 %v230_v53, %v187_v52  ;;  %v232_v57 = vpop.f32.mrb[3].mxu0 }
 0x11c   :  { %v263_v58 = vmul.f32 %v259_v45, %v229_v50  ;;  %v233_v59 = vadd.f32 %v232_v57, %v189_v56 }
 0x11d   :  { %v278_v60 = vadd.f32 %v271_v47, %v262_v54  ;;  %v264_v61 = vmul.f32 %v255_v42, %v231_v55 }
 0x11e   :  { %v279_v62 = vadd.f32 %v275_v51, %v263_v58  ;;  %v265_v63 = vmul.f32 %v259_v45, %v233_v59 }
 0x11f   :  { %282 = vst [vmem:[%s459_s4] sm:$0xff] %v278_v60  ;;  %v280_v0 = vadd.f32 %v271_v47, %v264_v61 }
 0x120   :  { %283 = vst [vmem:[%s459_s4 + $0x8] sm:$0xff] %v279_v62  ;;  %v281_v1 = vadd.f32 %v275_v51, %v265_v63 }
 0x121   :  { %284 = vst [vmem:[%s459_s4 + $0x10] sm:$0xff] %v280_v0 }
 0x122   :  { %285 = vst [vmem:[%s459_s4 + $0x18] sm:$0xff] %v281_v1 }

// kernel: re3net_forward.20
= control target key start
LH: loop header
LB: loop body
LE: loop exit
PB: predicated region body
PF: predicated region fallthrough
CT: control target
= control target key end

     0   :  { %s1495_s1 = inlined_call_operand.vmem [shape: s8[2048,256], index: 1, kind: input, shape index: {}]   ;;  %s1496_s0 = inlined_call_operand.vmem [shape: bf16[16,2048], index: 0, kind: input, shape index: {}]   ;;  %s1497_s2 = inlined_call_operand.vmem [shape: f32[1,256], index: 2, kind: input, shape index: {}]   ;;  %s1498_s3 = inlined_call_operand.vmem [shape: f32[1,256], index: 3, kind: input, shape index: {}]   ;;  %s1499_s4 = inlined_call_operand.vmem [shape: f32[16,256], index: 4, kind: output, shape index: {}]  }
   0x1   :  { %v26_v0 = vld [vmem:[%s1495_s1 + $0x8] sm:$0xff]  ;;  %v25_v2 = vld [vmem:[%s1495_s1] sm:$0xff]  ;;  %v28_v10 = vld [vmem:[%s1495_s1 + $0x18] sm:$0xff] }
   0x2   :  { %v90_v1 = vld [vmem:[%s1495_s1 + $0x208] sm:$0xff]  ;;  %v154_v3 = vunpack.c.l.s8.bf16 %v26_v0  ;;  %v156_v4 = vunpack.c.h.s8.bf16 %v26_v0  ;;  %v89_v7 = vld [vmem:[%s1495_s1 + $0x200] sm:$0xff]  ;;  %v153_v8 = vunpack.c.l.s8.bf16 %v25_v2  ;;  %v92_v11 = vld [vmem:[%s1495_s1 + $0x218] sm:$0xff]  ;;  %v155_v12 = vunpack.c.h.s8.bf16 %v25_v2 }
   0x3   :  { %v282_v5 = vunpack.c.l.s8.bf16 %v90_v1  ;;  %v284_v6 = vunpack.c.h.s8.bf16 %v90_v1  ;;  %v281_v9 = vunpack.c.l.s8.bf16 %v89_v7  ;;  %v283_v13 = vunpack.c.h.s8.bf16 %v89_v7  ;;  %v27_v16 = vld [vmem:[%s1495_s1 + $0x10] sm:$0xff]  ;;  %v30_v22 = vld [vmem:[%s1495_s1 + $0x28] sm:$0xff]  ;;  %v29_v28 = vld [vmem:[%s1495_s1 + $0x20] sm:$0xff] }
   0x4   :  { %509 = vmatprep.subr.bf16.mxu1 %v154_v3  ;;  %v158_v14 = vunpack.c.l.s8.bf16 %v28_v10  ;;  %v286_v15 = vunpack.c.l.s8.bf16 %v92_v11  ;;  %v91_v17 = vld [vmem:[%s1495_s1 + $0x210] sm:$0xff]  ;;  %v157_v18 = vunpack.c.l.s8.bf16 %v27_v16  ;;  %v160_v20 = vunpack.c.h.s8.bf16 %v28_v10  ;;  %v94_v23 = vld [vmem:[%s1495_s1 + $0x228] sm:$0xff]  ;;  %v93_v29 = vld [vmem:[%s1495_s1 + $0x220] sm:$0xff] }
   0x5   :  { %681 = vmatprep.subr.bf16.mxu0 %v282_v5  ;;  %510 = vmatpush1.bf16.msra.mxu1 %v153_v8  ;;  %v285_v19 = vunpack.c.l.s8.bf16 %v91_v17  ;;  %v288_v21 = vunpack.c.h.s8.bf16 %v92_v11  ;;  %v159_v24 = vunpack.c.h.s8.bf16 %v27_v16  ;;  %v287_v25 = vunpack.c.h.s8.bf16 %v91_v17  ;;  %v1020_v30 = vld [vmem:[%s1496_s0] sm:$0xff]  ;;  %v32_v39 = vld [vmem:[%s1495_s1 + $0x38] sm:$0xff]  ;;  %v31_v46 = vld [vmem:[%s1495_s1 + $0x30] sm:$0xff] }
   0x6   :  { %682 = vmatpush1.bf16.msra.mxu0 %v281_v9  ;;  %511 = vmatprep.subr.bf16.mxu1 %v156_v4  ;;  %v162_v26 = vunpack.c.l.s8.bf16 %v30_v22  ;;  %v290_v27 = vunpack.c.l.s8.bf16 %v94_v23  ;;  %v1025_v31 = vld [vmem:[%s1496_s0 + $0x40] sm:$0xff]  ;;  %v161_v34 = vunpack.c.l.s8.bf16 %v29_v28  ;;  %v289_v35 = vunpack.c.l.s8.bf16 %v93_v29  ;;  %v96_v40 = vld [vmem:[%s1495_s1 + $0x238] sm:$0xff]  ;;  %v95_v47 = vld [vmem:[%s1495_s1 + $0x230] sm:$0xff] }
   0x7   :  { %683 = vmatprep.subr.bf16.mxu0 %v284_v6  ;;  %v1030_v32 = vld [vmem:[%s1496_s0 + $0x20] sm:$0xff]  ;;  %v164_v36 = vunpack.c.h.s8.bf16 %v30_v22  ;;  %v292_v37 = vunpack.c.h.s8.bf16 %v94_v23  ;;  %v913_v38 = vcombine.high %v1020_v30, %v1025_v31  ;;  %v163_v42 = vunpack.c.h.s8.bf16 %v29_v28  ;;  %v34_v52 = vld [vmem:[%s1495_s1 + $0x48] sm:$0xff]  ;;  %v36_v0 = vld [vmem:[%s1495_s1 + $0x58] sm:$0xff] }
   0x8   :  { %v1035_v33 = vld [vmem:[%s1496_s0 + $0x60] sm:$0xff]  ;;  %v291_v43 = vunpack.c.h.s8.bf16 %v93_v29  ;;  %v166_v44 = vunpack.c.l.s8.bf16 %v32_v39  ;;  %v294_v45 = vunpack.c.l.s8.bf16 %v96_v40  ;;  %v165_v48 = vunpack.c.l.s8.bf16 %v31_v46  ;;  %v98_v53 = vld [vmem:[%s1495_s1 + $0x248] sm:$0xff]  ;;  %v100_v1 = vld [vmem:[%s1495_s1 + $0x258] sm:$0xff] }
   0x9   :  { %512 = vmatpush1.bf16.msra.mxu1 %v155_v12  ;;  %v921_v41 = vcombine.high %v1030_v32, %v1035_v33  ;;  %541 = vmatprep.mubr.bf16.mxu1 %v913_v38  ;;  %v293_v49 = vunpack.c.l.s8.bf16 %v95_v47  ;;  %v168_v50 = vunpack.c.h.s8.bf16 %v32_v39  ;;  %v296_v51 = vunpack.c.h.s8.bf16 %v96_v40  ;;  %v33_v58 = vld [vmem:[%s1495_s1 + $0x40] sm:$0xff]  ;;  %v35_v6 = vld [vmem:[%s1495_s1 + $0x50] sm:$0xff]  ;;  %v38_v12 = vld [vmem:[%s1495_s1 + $0x68] sm:$0xff] }
   0xa   :  { %684 = vmatpush1.bf16.msra.mxu0 %v283_v13  ;;  %513 = vmatprep.subr.bf16.mxu1 %v158_v14  ;;  %v167_v54 = vunpack.c.h.s8.bf16 %v31_v46  ;;  %v295_v55 = vunpack.c.h.s8.bf16 %v95_v47  ;;  %v170_v56 = vunpack.c.l.s8.bf16 %v34_v52  ;;  %v298_v57 = vunpack.c.l.s8.bf16 %v98_v53  ;;  %v97_v59 = vld [vmem:[%s1495_s1 + $0x240] sm:$0xff]  ;;  %v99_v7 = vld [vmem:[%s1495_s1 + $0x250] sm:$0xff]  ;;  %v102_v13 = vld [vmem:[%s1495_s1 + $0x268] sm:$0xff] }
   0xb   :  { %685 = vmatprep.subr.bf16.mxu0 %v286_v15  ;;  %713 = vmatprep.mubr.bf16.mxu0 %v921_v41  ;;  %v169_v60 = vunpack.c.l.s8.bf16 %v33_v58  ;;  %v297_v61 = vunpack.c.l.s8.bf16 %v97_v59  ;;  %v172_v62 = vunpack.c.h.s8.bf16 %v34_v52  ;;  %v300_v63 = vunpack.c.h.s8.bf16 %v98_v53  ;;  %v42_v40 = vld [vmem:[%s1495_s1 + $0x88] sm:$0xff]  ;;  %v41_v46 = vld [vmem:[%s1495_s1 + $0x80] sm:$0xff] }
   0xc   :  { %v171_v2 = vunpack.c.h.s8.bf16 %v33_v58  ;;  %v299_v3 = vunpack.c.h.s8.bf16 %v97_v59  ;;  %v174_v4 = vunpack.c.l.s8.bf16 %v36_v0  ;;  %v302_v5 = vunpack.c.l.s8.bf16 %v100_v1  ;;  %v106_v41 = vld [vmem:[%s1495_s1 + $0x288] sm:$0xff]  ;;  %v105_v47 = vld [vmem:[%s1495_s1 + $0x280] sm:$0xff] }
   0xd   :  { %514 = vmatpush1.bf16.msra.mxu1 %v157_v18  ;;  %v173_v8 = vunpack.c.l.s8.bf16 %v35_v6  ;;  %v301_v9 = vunpack.c.l.s8.bf16 %v99_v7  ;;  %v176_v10 = vunpack.c.h.s8.bf16 %v36_v0  ;;  %v304_v11 = vunpack.c.h.s8.bf16 %v100_v1  ;;  %v37_v18 = vld [vmem:[%s1495_s1 + $0x60] sm:$0xff]  ;;  %v1130_v52 = vld [vmem:[%s1496_s0 + $0x28] sm:$0xff] }
   0xe   :  { %686 = vmatpush1.bf16.msra.mxu0 %v285_v19  ;;  %515 = vmatprep.subr.bf16.mxu1 %v160_v20  ;;  %v175_v14 = vunpack.c.h.s8.bf16 %v35_v6  ;;  %v303_v15 = vunpack.c.h.s8.bf16 %v99_v7  ;;  %v178_v16 = vunpack.c.l.s8.bf16 %v38_v12  ;;  %v306_v17 = vunpack.c.l.s8.bf16 %v102_v13  ;;  %v101_v19 = vld [vmem:[%s1495_s1 + $0x260] sm:$0xff]  ;;  %v1135_v53 = vld [vmem:[%s1496_s0 + $0x68] sm:$0xff] }
   0xf   :  { %687 = vmatprep.subr.bf16.mxu0 %v288_v21  ;;  %v177_v20 = vunpack.c.l.s8.bf16 %v37_v18  ;;  %v305_v21 = vunpack.c.l.s8.bf16 %v101_v19  ;;  %v180_v22 = vunpack.c.h.s8.bf16 %v38_v12  ;;  %v308_v23 = vunpack.c.h.s8.bf16 %v102_v13 }
  0x10   :  { %v187_v58 = vunpack.c.h.s8.bf16 %v41_v46  ;;  %v315_v59 = vunpack.c.h.s8.bf16 %v105_v47 }
  0x11   :  { %516 = vmatpush1.bf16.msra.mxu1 %v159_v24  ;;  %v40_v24 = vld [vmem:[%s1495_s1 + $0x78] sm:$0xff] }
  0x12   :  { %688 = vmatpush1.bf16.msra.mxu0 %v287_v25  ;;  %517 = vmatprep.subr.bf16.mxu1 %v162_v26  ;;  %v104_v25 = vld [vmem:[%s1495_s1 + $0x278] sm:$0xff]  ;;  %v179_v26 = vunpack.c.h.s8.bf16 %v37_v18  ;;  %v182_v28 = vunpack.c.l.s8.bf16 %v40_v24  ;;  %v184_v38 = vunpack.c.h.s8.bf16 %v40_v24 }
  0x13   :  { %689 = vmatprep.subr.bf16.mxu0 %v290_v27  ;;  %v307_v27 = vunpack.c.h.s8.bf16 %v101_v19  ;;  %v310_v29 = vunpack.c.l.s8.bf16 %v104_v25  ;;  %v312_v39 = vunpack.c.h.s8.bf16 %v104_v25 }
  0x15   :  { %518 = vmatpush1.bf16.msra.mxu1 %v161_v34  ;;  %v39_v34 = vld [vmem:[%s1495_s1 + $0x70] sm:$0xff] }
  0x16   :  { %690 = vmatpush1.bf16.msra.mxu0 %v289_v35  ;;  %519 = vmatprep.subr.bf16.mxu1 %v164_v36  ;;  %v103_v35 = vld [vmem:[%s1495_s1 + $0x270] sm:$0xff]  ;;  %v181_v36 = vunpack.c.l.s8.bf16 %v39_v34 }
  0x17   :  { %691 = vmatprep.subr.bf16.mxu0 %v292_v37  ;;  %v309_v37 = vunpack.c.l.s8.bf16 %v103_v35 }
  0x19   :  { %520 = vmatpush1.bf16.msra.mxu1 %v163_v42  ;;  %v183_v42 = vunpack.c.h.s8.bf16 %v39_v34 }
  0x1a   :  { %692 = vmatpush1.bf16.msra.mxu0 %v291_v43  ;;  %521 = vmatprep.subr.bf16.mxu1 %v166_v44  ;;  %v311_v43 = vunpack.c.h.s8.bf16 %v103_v35  ;;  %v186_v44 = vunpack.c.l.s8.bf16 %v42_v40 }
  0x1b   :  { %693 = vmatprep.subr.bf16.mxu0 %v294_v45  ;;  %v314_v45 = vunpack.c.l.s8.bf16 %v106_v41 }
  0x1d   :  { %522 = vmatpush1.bf16.msra.mxu1 %v165_v48  ;;  %v1116_v48 = vld [vmem:[%s1496_s0 + $0x8] sm:$0xff] }
  0x1e   :  { %694 = vmatpush1.bf16.msra.mxu0 %v293_v49  ;;  %523 = vmatprep.subr.bf16.mxu1 %v168_v50  ;;  %v912_v49 = vcombine.low %v1020_v30, %v1025_v31  ;;  %v920_v50 = vcombine.low %v1030_v32, %v1035_v33  ;;  %v185_v30 = vunpack.c.l.s8.bf16 %v41_v46  ;;  %v313_v31 = vunpack.c.l.s8.bf16 %v105_v47 }
  0x1f   :  { %695 = vmatprep.subr.bf16.mxu0 %v296_v51  ;;  %v1125_v51 = vld [vmem:[%s1496_s0 + $0x48] sm:$0xff]  ;;  %v188_v32 = vunpack.c.h.s8.bf16 %v42_v40  ;;  %v316_v33 = vunpack.c.h.s8.bf16 %v106_v41 }
  0x21   :  { %524 = vmatpush1.bf16.msra.mxu1 %v167_v54  ;;  %v44_v54 = vld [vmem:[%s1495_s1 + $0x98] sm:$0xff] }
  0x22   :  { %696 = vmatpush1.bf16.msra.mxu0 %v295_v55  ;;  %525 = vmatprep.subr.bf16.mxu1 %v170_v56  ;;  %v108_v55 = vld [vmem:[%s1495_s1 + $0x298] sm:$0xff]  ;;  %v915_v56 = vcombine.high %v1116_v48, %v1125_v51 }
  0x23   :  { %697 = vmatprep.subr.bf16.mxu0 %v298_v57  ;;  %v923_v57 = vcombine.high %v1130_v52, %v1135_v53 }
  0x25   :  { %526 = vmatpush1.bf16.msra.mxu1 %v169_v60  ;;  %v190_v60 = vunpack.c.l.s8.bf16 %v44_v54 }
  0x26   :  { %698 = vmatpush1.bf16.msra.mxu0 %v297_v61  ;;  %527 = vmatprep.subr.bf16.mxu1 %v172_v62  ;;  %v318_v61 = vunpack.c.l.s8.bf16 %v108_v55  ;;  %v43_v62 = vld [vmem:[%s1495_s1 + $0x90] sm:$0xff] }
  0x27   :  { %699 = vmatprep.subr.bf16.mxu0 %v300_v63  ;;  %v107_v63 = vld [vmem:[%s1495_s1 + $0x290] sm:$0xff]  ;;  %v189_v0 = vunpack.c.l.s8.bf16 %v43_v62  ;;  %v191_v6 = vunpack.c.h.s8.bf16 %v43_v62  ;;  %v53_v62 = vld [vmem:[%s1495_s1 + $0xe0] sm:$0xff] }
  0x28   :  { %v317_v1 = vunpack.c.l.s8.bf16 %v107_v63  ;;  %v319_v7 = vunpack.c.h.s8.bf16 %v107_v63  ;;  %v117_v63 = vld [vmem:[%s1495_s1 + $0x2e0] sm:$0xff] }
  0x29   :  { %528 = vmatpush1.bf16.msra.mxu1 %v171_v2  ;;  %v192_v2 = vunpack.c.h.s8.bf16 %v44_v54 }
  0x2a   :  { %700 = vmatpush1.bf16.msra.mxu0 %v299_v3  ;;  %529 = vmatprep.subr.bf16.mxu1 %v174_v4  ;;  %v320_v3 = vunpack.c.h.s8.bf16 %v108_v55  ;;  %v46_v4 = vld [vmem:[%s1495_s1 + $0xa8] sm:$0xff] }
  0x2b   :  { %701 = vmatprep.subr.bf16.mxu0 %v302_v5  ;;  %v110_v5 = vld [vmem:[%s1495_s1 + $0x2a8] sm:$0xff] }
  0x2d   :  { %530 = vmatpush1.bf16.msra.mxu1 %v173_v8  ;;  %v194_v8 = vunpack.c.l.s8.bf16 %v46_v4 }
  0x2e   :  { %702 = vmatpush1.bf16.msra.mxu0 %v301_v9  ;;  %531 = vmatprep.subr.bf16.mxu1 %v176_v10  ;;  %v322_v9 = vunpack.c.l.s8.bf16 %v110_v5  ;;  %v45_v10 = vld [vmem:[%s1495_s1 + $0xa0] sm:$0xff] }
  0x2f   :  { %703 = vmatprep.subr.bf16.mxu0 %v304_v11  ;;  %v109_v11 = vld [vmem:[%s1495_s1 + $0x2a0] sm:$0xff]  ;;  %v193_v12 = vunpack.c.l.s8.bf16 %v45_v10  ;;  %v195_v18 = vunpack.c.h.s8.bf16 %v45_v10  ;;  %v55_v10 = vld [vmem:[%s1495_s1 + $0xf0] sm:$0xff] }
  0x30   :  { %v321_v13 = vunpack.c.l.s8.bf16 %v109_v11  ;;  %v323_v19 = vunpack.c.h.s8.bf16 %v109_v11  ;;  %v119_v11 = vld [vmem:[%s1495_s1 + $0x2f0] sm:$0xff] }
  0x31   :  { %532 = vmatpush1.bf16.msra.mxu1 %v175_v14  ;;  %v196_v14 = vunpack.c.h.s8.bf16 %v46_v4  ;;  %v56_v4 = vld [vmem:[%s1495_s1 + $0xf8] sm:$0xff] }
  0x32   :  { %704 = vmatpush1.bf16.msra.mxu0 %v303_v15  ;;  %533 = vmatprep.subr.bf16.mxu1 %v178_v16  ;;  %v324_v15 = vunpack.c.h.s8.bf16 %v110_v5  ;;  %v48_v16 = vld [vmem:[%s1495_s1 + $0xb8] sm:$0xff] }
  0x33   :  { %705 = vmatprep.subr.bf16.mxu0 %v306_v17  ;;  %v112_v17 = vld [vmem:[%s1495_s1 + $0x2b8] sm:$0xff] }
  0x34   :  { %v120_v5 = vld [vmem:[%s1495_s1 + $0x2f8] sm:$0xff] }
  0x35   :  { %534 = vmatpush1.bf16.msra.mxu1 %v177_v20  ;;  %v198_v20 = vunpack.c.l.s8.bf16 %v48_v16 }
  0x36   :  { %706 = vmatpush1.bf16.msra.mxu0 %v305_v21  ;;  %535 = vmatprep.subr.bf16.mxu1 %v180_v22  ;;  %v326_v21 = vunpack.c.l.s8.bf16 %v112_v17  ;;  %v47_v22 = vld [vmem:[%s1495_s1 + $0xb0] sm:$0xff] }
  0x37   :  { %707 = vmatprep.subr.bf16.mxu0 %v308_v23  ;;  %v111_v23 = vld [vmem:[%s1495_s1 + $0x2b0] sm:$0xff]  ;;  %v197_v24 = vunpack.c.l.s8.bf16 %v47_v22  ;;  %v199_v34 = vunpack.c.h.s8.bf16 %v47_v22  ;;  %v57_v22 = vld [vmem:[%s1495_s1 + $0x100] sm:$0xff] }
  0x38   :  { %v325_v25 = vunpack.c.l.s8.bf16 %v111_v23  ;;  %v327_v35 = vunpack.c.h.s8.bf16 %v111_v23  ;;  %v121_v23 = vld [vmem:[%s1495_s1 + $0x300] sm:$0xff] }
  0x39   :  { %536 = vmatpush1.bf16.msra.mxu1 %v179_v26  ;;  %v200_v26 = vunpack.c.h.s8.bf16 %v48_v16  ;;  %v58_v16 = vld [vmem:[%s1495_s1 + $0x108] sm:$0xff] }
  0x3a   :  { %708 = vmatpush1.bf16.msra.mxu0 %v307_v27  ;;  %537 = vmatprep.subr.bf16.mxu1 %v182_v28  ;;  %v328_v27 = vunpack.c.h.s8.bf16 %v112_v17  ;;  %v50_v28 = vld [vmem:[%s1495_s1 + $0xc8] sm:$0xff] }
  0x3b   :  { %709 = vmatprep.subr.bf16.mxu0 %v310_v29  ;;  %v114_v29 = vld [vmem:[%s1495_s1 + $0x2c8] sm:$0xff] }
  0x3c   :  { %v122_v17 = vld [vmem:[%s1495_s1 + $0x308] sm:$0xff] }
  0x3d   :  { %538 = vmatpush1.bf16.msra.mxu1 %v181_v36  ;;  %v202_v36 = vunpack.c.l.s8.bf16 %v50_v28 }
  0x3e   :  { %710 = vmatpush1.bf16.msra.mxu0 %v309_v37  ;;  %539 = vmatprep.subr.bf16.mxu1 %v184_v38  ;;  %v330_v37 = vunpack.c.l.s8.bf16 %v114_v29  ;;  %v49_v38 = vld [vmem:[%s1495_s1 + $0xc0] sm:$0xff] }
  0x3f   :  { %711 = vmatprep.subr.bf16.mxu0 %v312_v39  ;;  %v113_v39 = vld [vmem:[%s1495_s1 + $0x2c0] sm:$0xff]  ;;  %v201_v40 = vunpack.c.l.s8.bf16 %v49_v38  ;;  %v203_v46 = vunpack.c.h.s8.bf16 %v49_v38  ;;  %v219_v38 = vunpack.c.h.s8.bf16 %v57_v22 }
  0x40   :  { %v329_v41 = vunpack.c.l.s8.bf16 %v113_v39  ;;  %v331_v47 = vunpack.c.h.s8.bf16 %v113_v39  ;;  %v347_v39 = vunpack.c.h.s8.bf16 %v121_v23 }
  0x41   :  { %540 = vmatpush1.bf16.msra.mxu1 %v183_v42  ;;  %v204_v42 = vunpack.c.h.s8.bf16 %v50_v28  ;;  %v1254_v28 = vld [vmem:[%s1496_s0 + $0x30] sm:$0xff] }
  0x42   :  { %712 = vmatpush1.bf16.msra.mxu0 %v311_v43  ;;  %552 = vmatprep.subr.bf16.mxu1 %v186_v44  ;;  %v332_v43 = vunpack.c.h.s8.bf16 %v114_v29  ;;  %v52_v44 = vld [vmem:[%s1495_s1 + $0xd8] sm:$0xff]  ;;  %v1259_v29 = vld [vmem:[%s1496_s0 + $0x70] sm:$0xff] }
  0x43   :  { %724 = vmatprep.subr.bf16.mxu0 %v314_v45  ;;  %v116_v45 = vld [vmem:[%s1495_s1 + $0x2d8] sm:$0xff]  ;;  %v208_v54 = vunpack.c.h.s8.bf16 %v52_v44 }
  0x44   :  { %542 = vmatmul.mubr.bf16.vlgmr.msra.gmra.mrb[0].mxu1 %v912_v49  ;;  %v206_v49 = vunpack.c.l.s8.bf16 %v52_v44  ;;  %v336_v55 = vunpack.c.h.s8.bf16 %v116_v45 }
  0x45   :  { %714 = vmatmul.mubr.bf16.vlgmr.msra.gmra.mrb[0].mxu0 %v920_v50  ;;  %553 = vmatpush1.bf16.msra.mxu1 %v185_v30  ;;  %v334_v50 = vunpack.c.l.s8.bf16 %v116_v45  ;;  %v51_v30 = vld [vmem:[%s1495_s1 + $0xd0] sm:$0xff] }
  0x46   :  { %725 = vmatpush1.bf16.msra.mxu0 %v313_v31  ;;  %554 = vmatprep.subr.bf16.mxu1 %v188_v32  ;;  %v115_v31 = vld [vmem:[%s1495_s1 + $0x2d0] sm:$0xff]  ;;  %v205_v32 = vunpack.c.l.s8.bf16 %v51_v30 }
  0x47   :  { %726 = vmatprep.subr.bf16.mxu0 %v316_v33  ;;  %584 = vmatprep.mubr.bf16.mxu1 %v915_v56  ;;  %v333_v33 = vunpack.c.l.s8.bf16 %v115_v31  ;;  %v54_v56 = vld [vmem:[%s1495_s1 + $0xe8] sm:$0xff] }
  0x48   :  { %756 = vmatprep.mubr.bf16.mxu0 %v923_v57  ;;  %v118_v57 = vld [vmem:[%s1495_s1 + $0x2e8] sm:$0xff] }
  0x49   :  { %555 = vmatpush1.bf16.msra.mxu1 %v187_v58  ;;  %v207_v58 = vunpack.c.h.s8.bf16 %v51_v30 }
  0x4a   :  { %727 = vmatpush1.bf16.msra.mxu0 %v315_v59  ;;  %556 = vmatprep.subr.bf16.mxu1 %v190_v60  ;;  %v335_v59 = vunpack.c.h.s8.bf16 %v115_v31  ;;  %v210_v60 = vunpack.c.l.s8.bf16 %v54_v56 }
  0x4b   :  { %728 = vmatprep.subr.bf16.mxu0 %v318_v61  ;;  %v338_v61 = vunpack.c.l.s8.bf16 %v118_v57 }
  0x4d   :  { %557 = vmatpush1.bf16.msra.mxu1 %v189_v0  ;;  %v209_v0 = vunpack.c.l.s8.bf16 %v53_v62 }
  0x4e   :  { %729 = vmatpush1.bf16.msra.mxu0 %v317_v1  ;;  %558 = vmatprep.subr.bf16.mxu1 %v192_v2  ;;  %v337_v1 = vunpack.c.l.s8.bf16 %v117_v63  ;;  %v212_v2 = vunpack.c.h.s8.bf16 %v54_v56 }
  0x4f   :  { %730 = vmatprep.subr.bf16.mxu0 %v320_v3  ;;  %v340_v3 = vunpack.c.h.s8.bf16 %v118_v57 }
  0x51   :  { %559 = vmatpush1.bf16.msra.mxu1 %v191_v6  ;;  %v211_v6 = vunpack.c.h.s8.bf16 %v53_v62 }
  0x52   :  { %731 = vmatpush1.bf16.msra.mxu0 %v319_v7  ;;  %560 = vmatprep.subr.bf16.mxu1 %v194_v8  ;;  %v339_v7 = vunpack.c.h.s8.bf16 %v117_v63  ;;  %v214_v8 = vunpack.c.l.s8.bf16 %v56_v4 }
  0x53   :  { %732 = vmatprep.subr.bf16.mxu0 %v322_v9  ;;  %v342_v9 = vunpack.c.l.s8.bf16 %v120_v5 }
  0x55   :  { %561 = vmatpush1.bf16.msra.mxu1 %v193_v12  ;;  %v213_v12 = vunpack.c.l.s8.bf16 %v55_v10 }
  0x56   :  { %733 = vmatpush1.bf16.msra.mxu0 %v321_v13  ;;  %562 = vmatprep.subr.bf16.mxu1 %v196_v14  ;;  %v341_v13 = vunpack.c.l.s8.bf16 %v119_v11  ;;  %v216_v14 = vunpack.c.h.s8.bf16 %v56_v4 }
  0x57   :  { %734 = vmatprep.subr.bf16.mxu0 %v324_v15  ;;  %v344_v15 = vunpack.c.h.s8.bf16 %v120_v5 }
  0x59   :  { %563 = vmatpush1.bf16.msra.mxu1 %v195_v18  ;;  %v215_v18 = vunpack.c.h.s8.bf16 %v55_v10 }
  0x5a   :  { %735 = vmatpush1.bf16.msra.mxu0 %v323_v19  ;;  %564 = vmatprep.subr.bf16.mxu1 %v198_v20  ;;  %v343_v19 = vunpack.c.h.s8.bf16 %v119_v11  ;;  %v218_v20 = vunpack.c.l.s8.bf16 %v58_v16 }
  0x5b   :  { %736 = vmatprep.subr.bf16.mxu0 %v326_v21  ;;  %v346_v21 = vunpack.c.l.s8.bf16 %v122_v17 }
  0x5d   :  { %565 = vmatpush1.bf16.msra.mxu1 %v197_v24  ;;  %v1240_v24 = vld [vmem:[%s1496_s0 + $0x10] sm:$0xff] }
  0x5e   :  { %737 = vmatpush1.bf16.msra.mxu0 %v325_v25  ;;  %566 = vmatprep.subr.bf16.mxu1 %v200_v26  ;;  %v914_v25 = vcombine.low %v1116_v48, %v1125_v51  ;;  %v922_v26 = vcombine.low %v1130_v52, %v1135_v53  ;;  %v217_v48 = vunpack.c.l.s8.bf16 %v57_v22  ;;  %v345_v51 = vunpack.c.l.s8.bf16 %v121_v23 }
  0x5f   :  { %738 = vmatprep.subr.bf16.mxu0 %v328_v27  ;;  %v1249_v27 = vld [vmem:[%s1496_s0 + $0x50] sm:$0xff]  ;;  %v220_v52 = vunpack.c.h.s8.bf16 %v58_v16  ;;  %v348_v53 = vunpack.c.h.s8.bf16 %v122_v17 }
  0x61   :  { %567 = vmatpush1.bf16.msra.mxu1 %v199_v34  ;;  %v60_v34 = vld [vmem:[%s1495_s1 + $0x118] sm:$0xff] }
  0x62   :  { %739 = vmatpush1.bf16.msra.mxu0 %v327_v35  ;;  %568 = vmatprep.subr.bf16.mxu1 %v202_v36  ;;  %v124_v35 = vld [vmem:[%s1495_s1 + $0x318] sm:$0xff]  ;;  %v917_v36 = vcombine.high %v1240_v24, %v1249_v27 }
  0x63   :  { %740 = vmatprep.subr.bf16.mxu0 %v330_v37  ;;  %v925_v37 = vcombine.high %v1254_v28, %v1259_v29 }
  0x65   :  { %569 = vmatpush1.bf16.msra.mxu1 %v201_v40  ;;  %v222_v40 = vunpack.c.l.s8.bf16 %v60_v34 }
  0x66   :  { %741 = vmatpush1.bf16.msra.mxu0 %v329_v41  ;;  %570 = vmatprep.subr.bf16.mxu1 %v204_v42  ;;  %v350_v41 = vunpack.c.l.s8.bf16 %v124_v35  ;;  %v59_v42 = vld [vmem:[%s1495_s1 + $0x110] sm:$0xff] }
  0x67   :  { %742 = vmatprep.subr.bf16.mxu0 %v332_v43  ;;  %v123_v43 = vld [vmem:[%s1495_s1 + $0x310] sm:$0xff]  ;;  %v221_v44 = vunpack.c.l.s8.bf16 %v59_v42  ;;  %v223_v30 = vunpack.c.h.s8.bf16 %v59_v42  ;;  %v69_v42 = vld [vmem:[%s1495_s1 + $0x160] sm:$0xff] }
  0x68   :  { %v349_v45 = vunpack.c.l.s8.bf16 %v123_v43  ;;  %v351_v31 = vunpack.c.h.s8.bf16 %v123_v43  ;;  %v133_v43 = vld [vmem:[%s1495_s1 + $0x360] sm:$0xff] }
  0x69   :  { %571 = vmatpush1.bf16.msra.mxu1 %v203_v46  ;;  %v224_v46 = vunpack.c.h.s8.bf16 %v60_v34 }
  0x6a   :  { %743 = vmatpush1.bf16.msra.mxu0 %v331_v47  ;;  %572 = vmatprep.subr.bf16.mxu1 %v206_v49  ;;  %v352_v47 = vunpack.c.h.s8.bf16 %v124_v35  ;;  %v62_v49 = vld [vmem:[%s1495_s1 + $0x128] sm:$0xff] }
  0x6b   :  { %744 = vmatprep.subr.bf16.mxu0 %v334_v50  ;;  %v126_v50 = vld [vmem:[%s1495_s1 + $0x328] sm:$0xff] }
  0x6d   :  { %573 = vmatpush1.bf16.msra.mxu1 %v205_v32  ;;  %v226_v32 = vunpack.c.l.s8.bf16 %v62_v49 }
  0x6e   :  { %745 = vmatpush1.bf16.msra.mxu0 %v333_v33  ;;  %574 = vmatprep.subr.bf16.mxu1 %v208_v54  ;;  %v354_v33 = vunpack.c.l.s8.bf16 %v126_v50  ;;  %v61_v54 = vld [vmem:[%s1495_s1 + $0x120] sm:$0xff] }
  0x6f   :  { %746 = vmatprep.subr.bf16.mxu0 %v336_v55  ;;  %v125_v55 = vld [vmem:[%s1495_s1 + $0x320] sm:$0xff]  ;;  %v225_v56 = vunpack.c.l.s8.bf16 %v61_v54  ;;  %v227_v62 = vunpack.c.h.s8.bf16 %v61_v54  ;;  %v71_v54 = vld [vmem:[%s1495_s1 + $0x170] sm:$0xff] }
  0x70   :  { %v353_v57 = vunpack.c.l.s8.bf16 %v125_v55  ;;  %v355_v63 = vunpack.c.h.s8.bf16 %v125_v55  ;;  %v135_v55 = vld [vmem:[%s1495_s1 + $0x370] sm:$0xff] }
  0x71   :  { %575 = vmatpush1.bf16.msra.mxu1 %v207_v58  ;;  %v228_v58 = vunpack.c.h.s8.bf16 %v62_v49  ;;  %v72_v49 = vld [vmem:[%s1495_s1 + $0x178] sm:$0xff] }
  0x72   :  { %747 = vmatpush1.bf16.msra.mxu0 %v335_v59  ;;  %576 = vmatprep.subr.bf16.mxu1 %v210_v60  ;;  %v356_v59 = vunpack.c.h.s8.bf16 %v126_v50  ;;  %v64_v60 = vld [vmem:[%s1495_s1 + $0x138] sm:$0xff] }
  0x73   :  { %748 = vmatprep.subr.bf16.mxu0 %v338_v61  ;;  %v128_v61 = vld [vmem:[%s1495_s1 + $0x338] sm:$0xff] }
  0x74   :  { %v136_v50 = vld [vmem:[%s1495_s1 + $0x378] sm:$0xff] }
  0x75   :  { %577 = vmatpush1.bf16.msra.mxu1 %v209_v0  ;;  %v230_v0 = vunpack.c.l.s8.bf16 %v64_v60 }
  0x76   :  { %749 = vmatpush1.bf16.msra.mxu0 %v337_v1  ;;  %578 = vmatprep.subr.bf16.mxu1 %v212_v2  ;;  %v358_v1 = vunpack.c.l.s8.bf16 %v128_v61  ;;  %v63_v2 = vld [vmem:[%s1495_s1 + $0x130] sm:$0xff] }
  0x77   :  { %750 = vmatprep.subr.bf16.mxu0 %v340_v3  ;;  %v127_v3 = vld [vmem:[%s1495_s1 + $0x330] sm:$0xff]  ;;  %v229_v4 = vunpack.c.l.s8.bf16 %v63_v2  ;;  %v231_v10 = vunpack.c.h.s8.bf16 %v63_v2  ;;  %v73_v2 = vld [vmem:[%s1495_s1 + $0x180] sm:$0xff] }
  0x78   :  { %v357_v5 = vunpack.c.l.s8.bf16 %v127_v3  ;;  %v359_v11 = vunpack.c.h.s8.bf16 %v127_v3  ;;  %v137_v3 = vld [vmem:[%s1495_s1 + $0x380] sm:$0xff] }
  0x79   :  { %579 = vmatpush1.bf16.msra.mxu1 %v211_v6  ;;  %v232_v6 = vunpack.c.h.s8.bf16 %v64_v60  ;;  %v74_v60 = vld [vmem:[%s1495_s1 + $0x188] sm:$0xff] }
  0x7a   :  { %751 = vmatpush1.bf16.msra.mxu0 %v339_v7  ;;  %580 = vmatprep.subr.bf16.mxu1 %v214_v8  ;;  %v360_v7 = vunpack.c.h.s8.bf16 %v128_v61  ;;  %v66_v8 = vld [vmem:[%s1495_s1 + $0x148] sm:$0xff] }
  0x7b   :  { %752 = vmatprep.subr.bf16.mxu0 %v342_v9  ;;  %v130_v9 = vld [vmem:[%s1495_s1 + $0x348] sm:$0xff] }
  0x7c   :  { %v138_v61 = vld [vmem:[%s1495_s1 + $0x388] sm:$0xff] }
  0x7d   :  { %581 = vmatpush1.bf16.msra.mxu1 %v213_v12  ;;  %v234_v12 = vunpack.c.l.s8.bf16 %v66_v8 }
  0x7e   :  { %753 = vmatpush1.bf16.msra.mxu0 %v341_v13  ;;  %582 = vmatprep.subr.bf16.mxu1 %v216_v14  ;;  %v362_v13 = vunpack.c.l.s8.bf16 %v130_v9  ;;  %v65_v14 = vld [vmem:[%s1495_s1 + $0x140] sm:$0xff] }
  0x7f   :  { %754 = vmatprep.subr.bf16.mxu0 %v344_v15  ;;  %v129_v15 = vld [vmem:[%s1495_s1 + $0x340] sm:$0xff]  ;;  %v233_v16 = vunpack.c.l.s8.bf16 %v65_v14  ;;  %v235_v22 = vunpack.c.h.s8.bf16 %v65_v14  ;;  %v251_v14 = vunpack.c.h.s8.bf16 %v73_v2 }
  0x80   :  { %v361_v17 = vunpack.c.l.s8.bf16 %v129_v15  ;;  %v363_v23 = vunpack.c.h.s8.bf16 %v129_v15  ;;  %v379_v15 = vunpack.c.h.s8.bf16 %v137_v3 }
  0x81   :  { %583 = vmatpush1.bf16.msra.mxu1 %v215_v18  ;;  %v236_v18 = vunpack.c.h.s8.bf16 %v66_v8  ;;  %v1378_v8 = vld [vmem:[%s1496_s0 + $0x38] sm:$0xff] }
  0x82   :  { %755 = vmatpush1.bf16.msra.mxu0 %v343_v19  ;;  %595 = vmatprep.subr.bf16.mxu1 %v218_v20  ;;  %v364_v19 = vunpack.c.h.s8.bf16 %v130_v9  ;;  %v68_v20 = vld [vmem:[%s1495_s1 + $0x158] sm:$0xff] }
  0x83   :  { %767 = vmatprep.subr.bf16.mxu0 %v346_v21  ;;  %v132_v21 = vld [vmem:[%s1495_s1 + $0x358] sm:$0xff]  ;;  %v240_v34 = vunpack.c.h.s8.bf16 %v68_v20 }
  0x84   :  { %585 = vmatmul.mubr.bf16.vlgmr.msra.gmra.mrb[0].mxu1 %v914_v25  ;;  %v238_v25 = vunpack.c.l.s8.bf16 %v68_v20  ;;  %v368_v35 = vunpack.c.h.s8.bf16 %v132_v21  ;;  %v1383_v9 = vld [vmem:[%s1496_s0 + $0x78] sm:$0xff] }
  0x85   :  { %757 = vmatmul.mubr.bf16.vlgmr.msra.gmra.mrb[0].mxu0 %v922_v26  ;;  %596 = vmatpush1.bf16.msra.mxu1 %v217_v48  ;;  %v366_v26 = vunpack.c.l.s8.bf16 %v132_v21  ;;  %v67_v48 = vld [vmem:[%s1495_s1 + $0x150] sm:$0xff] }
  0x86   :  { %768 = vmatpush1.bf16.msra.mxu0 %v345_v51  ;;  %597 = vmatprep.subr.bf16.mxu1 %v220_v52  ;;  %v131_v51 = vld [vmem:[%s1495_s1 + $0x350] sm:$0xff]  ;;  %v237_v52 = vunpack.c.l.s8.bf16 %v67_v48 }
  0x87   :  { %769 = vmatprep.subr.bf16.mxu0 %v348_v53  ;;  %627 = vmatprep.mubr.bf16.mxu1 %v917_v36  ;;  %v365_v53 = vunpack.c.l.s8.bf16 %v131_v51  ;;  %v70_v36 = vld [vmem:[%s1495_s1 + $0x168] sm:$0xff] }
  0x88   :  { %799 = vmatprep.mubr.bf16.mxu0 %v925_v37  ;;  %v134_v37 = vld [vmem:[%s1495_s1 + $0x368] sm:$0xff] }
  0x89   :  { %598 = vmatpush1.bf16.msra.mxu1 %v219_v38  ;;  %v239_v38 = vunpack.c.h.s8.bf16 %v67_v48 }
  0x8a   :  { %770 = vmatpush1.bf16.msra.mxu0 %v347_v39  ;;  %599 = vmatprep.subr.bf16.mxu1 %v222_v40  ;;  %v367_v39 = vunpack.c.h.s8.bf16 %v131_v51  ;;  %v242_v40 = vunpack.c.l.s8.bf16 %v70_v36 }
  0x8b   :  { %771 = vmatprep.subr.bf16.mxu0 %v350_v41  ;;  %v370_v41 = vunpack.c.l.s8.bf16 %v134_v37 }
  0x8d   :  { %600 = vmatpush1.bf16.msra.mxu1 %v221_v44  ;;  %v241_v44 = vunpack.c.l.s8.bf16 %v69_v42 }
  0x8e   :  { %772 = vmatpush1.bf16.msra.mxu0 %v349_v45  ;;  %601 = vmatprep.subr.bf16.mxu1 %v224_v46  ;;  %v369_v45 = vunpack.c.l.s8.bf16 %v133_v43  ;;  %v244_v46 = vunpack.c.h.s8.bf16 %v70_v36 }
  0x8f   :  { %773 = vmatprep.subr.bf16.mxu0 %v352_v47  ;;  %v372_v47 = vunpack.c.h.s8.bf16 %v134_v37 }
  0x91   :  { %602 = vmatpush1.bf16.msra.mxu1 %v223_v30  ;;  %v243_v30 = vunpack.c.h.s8.bf16 %v69_v42 }
  0x92   :  { %774 = vmatpush1.bf16.msra.mxu0 %v351_v31  ;;  %603 = vmatprep.subr.bf16.mxu1 %v226_v32  ;;  %v371_v31 = vunpack.c.h.s8.bf16 %v133_v43  ;;  %v246_v32 = vunpack.c.l.s8.bf16 %v72_v49 }
  0x93   :  { %775 = vmatprep.subr.bf16.mxu0 %v354_v33  ;;  %v374_v33 = vunpack.c.l.s8.bf16 %v136_v50 }
  0x95   :  { %604 = vmatpush1.bf16.msra.mxu1 %v225_v56  ;;  %v245_v56 = vunpack.c.l.s8.bf16 %v71_v54 }
  0x96   :  { %776 = vmatpush1.bf16.msra.mxu0 %v353_v57  ;;  %605 = vmatprep.subr.bf16.mxu1 %v228_v58  ;;  %v373_v57 = vunpack.c.l.s8.bf16 %v135_v55  ;;  %v248_v58 = vunpack.c.h.s8.bf16 %v72_v49 }
  0x97   :  { %777 = vmatprep.subr.bf16.mxu0 %v356_v59  ;;  %v376_v59 = vunpack.c.h.s8.bf16 %v136_v50 }
  0x99   :  { %606 = vmatpush1.bf16.msra.mxu1 %v227_v62  ;;  %v247_v62 = vunpack.c.h.s8.bf16 %v71_v54 }
  0x9a   :  { %778 = vmatpush1.bf16.msra.mxu0 %v355_v63  ;;  %607 = vmatprep.subr.bf16.mxu1 %v230_v0  ;;  %v375_v63 = vunpack.c.h.s8.bf16 %v135_v55  ;;  %v250_v0 = vunpack.c.l.s8.bf16 %v74_v60 }
  0x9b   :  { %779 = vmatprep.subr.bf16.mxu0 %v358_v1  ;;  %v378_v1 = vunpack.c.l.s8.bf16 %v138_v61 }
  0x9d   :  { %608 = vmatpush1.bf16.msra.mxu1 %v229_v4  ;;  %v1364_v4 = vld [vmem:[%s1496_s0 + $0x18] sm:$0xff] }
  0x9e   :  { %780 = vmatpush1.bf16.msra.mxu0 %v357_v5  ;;  %609 = vmatprep.subr.bf16.mxu1 %v232_v6  ;;  %v916_v5 = vcombine.low %v1240_v24, %v1249_v27  ;;  %v924_v6 = vcombine.low %v1254_v28, %v1259_v29  ;;  %v249_v24 = vunpack.c.l.s8.bf16 %v73_v2  ;;  %v377_v27 = vunpack.c.l.s8.bf16 %v137_v3 }
  0x9f   :  { %781 = vmatprep.subr.bf16.mxu0 %v360_v7  ;;  %v1373_v7 = vld [vmem:[%s1496_s0 + $0x58] sm:$0xff]  ;;  %v252_v28 = vunpack.c.h.s8.bf16 %v74_v60  ;;  %v380_v29 = vunpack.c.h.s8.bf16 %v138_v61 }
  0xa1   :  { %610 = vmatpush1.bf16.msra.mxu1 %v231_v10  ;;  %v76_v10 = vld [vmem:[%s1495_s1 + $0x198] sm:$0xff] }
  0xa2   :  { %782 = vmatpush1.bf16.msra.mxu0 %v359_v11  ;;  %611 = vmatprep.subr.bf16.mxu1 %v234_v12  ;;  %v140_v11 = vld [vmem:[%s1495_s1 + $0x398] sm:$0xff]  ;;  %v919_v12 = vcombine.high %v1364_v4, %v1373_v7 }
  0xa3   :  { %783 = vmatprep.subr.bf16.mxu0 %v362_v13  ;;  %v927_v13 = vcombine.high %v1378_v8, %v1383_v9 }
  0xa5   :  { %612 = vmatpush1.bf16.msra.mxu1 %v233_v16  ;;  %v254_v16 = vunpack.c.l.s8.bf16 %v76_v10 }
  0xa6   :  { %784 = vmatpush1.bf16.msra.mxu0 %v361_v17  ;;  %613 = vmatprep.subr.bf16.mxu1 %v236_v18  ;;  %v382_v17 = vunpack.c.l.s8.bf16 %v140_v11  ;;  %v75_v18 = vld [vmem:[%s1495_s1 + $0x190] sm:$0xff] }
  0xa7   :  { %785 = vmatprep.subr.bf16.mxu0 %v364_v19  ;;  %v139_v19 = vld [vmem:[%s1495_s1 + $0x390] sm:$0xff]  ;;  %v253_v20 = vunpack.c.l.s8.bf16 %v75_v18  ;;  %v255_v48 = vunpack.c.h.s8.bf16 %v75_v18  ;;  %v85_v18 = vld [vmem:[%s1495_s1 + $0x1e0] sm:$0xff] }
  0xa8   :  { %v381_v21 = vunpack.c.l.s8.bf16 %v139_v19  ;;  %v383_v51 = vunpack.c.h.s8.bf16 %v139_v19  ;;  %v149_v19 = vld [vmem:[%s1495_s1 + $0x3e0] sm:$0xff] }
  0xa9   :  { %614 = vmatpush1.bf16.msra.mxu1 %v235_v22  ;;  %v256_v22 = vunpack.c.h.s8.bf16 %v76_v10 }
  0xaa   :  { %786 = vmatpush1.bf16.msra.mxu0 %v363_v23  ;;  %615 = vmatprep.subr.bf16.mxu1 %v238_v25  ;;  %v384_v23 = vunpack.c.h.s8.bf16 %v140_v11  ;;  %v78_v25 = vld [vmem:[%s1495_s1 + $0x1a8] sm:$0xff] }
  0xab   :  { %787 = vmatprep.subr.bf16.mxu0 %v366_v26  ;;  %v142_v26 = vld [vmem:[%s1495_s1 + $0x3a8] sm:$0xff] }
  0xad   :  { %616 = vmatpush1.bf16.msra.mxu1 %v237_v52  ;;  %v258_v52 = vunpack.c.l.s8.bf16 %v78_v25 }
  0xae   :  { %788 = vmatpush1.bf16.msra.mxu0 %v365_v53  ;;  %617 = vmatprep.subr.bf16.mxu1 %v240_v34  ;;  %v386_v53 = vunpack.c.l.s8.bf16 %v142_v26  ;;  %v77_v34 = vld [vmem:[%s1495_s1 + $0x1a0] sm:$0xff] }
  0xaf   :  { %789 = vmatprep.subr.bf16.mxu0 %v368_v35  ;;  %v141_v35 = vld [vmem:[%s1495_s1 + $0x3a0] sm:$0xff]  ;;  %v257_v36 = vunpack.c.l.s8.bf16 %v77_v34  ;;  %v259_v42 = vunpack.c.h.s8.bf16 %v77_v34  ;;  %v87_v34 = vld [vmem:[%s1495_s1 + $0x1f0] sm:$0xff] }
  0xb0   :  { %v385_v37 = vunpack.c.l.s8.bf16 %v141_v35  ;;  %v387_v43 = vunpack.c.h.s8.bf16 %v141_v35  ;;  %v151_v35 = vld [vmem:[%s1495_s1 + $0x3f0] sm:$0xff] }
  0xb1   :  { %618 = vmatpush1.bf16.msra.mxu1 %v239_v38  ;;  %v260_v38 = vunpack.c.h.s8.bf16 %v78_v25  ;;  %v88_v25 = vld [vmem:[%s1495_s1 + $0x1f8] sm:$0xff] }
  0xb2   :  { %790 = vmatpush1.bf16.msra.mxu0 %v367_v39  ;;  %619 = vmatprep.subr.bf16.mxu1 %v242_v40  ;;  %v388_v39 = vunpack.c.h.s8.bf16 %v142_v26  ;;  %v80_v40 = vld [vmem:[%s1495_s1 + $0x1b8] sm:$0xff] }
  0xb3   :  { %791 = vmatprep.subr.bf16.mxu0 %v370_v41  ;;  %v144_v41 = vld [vmem:[%s1495_s1 + $0x3b8] sm:$0xff] }
  0xb4   :  { %v152_v26 = vld [vmem:[%s1495_s1 + $0x3f8] sm:$0xff] }
  0xb5   :  { %620 = vmatpush1.bf16.msra.mxu1 %v241_v44  ;;  %v262_v44 = vunpack.c.l.s8.bf16 %v80_v40 }
  0xb6   :  { %792 = vmatpush1.bf16.msra.mxu0 %v369_v45  ;;  %621 = vmatprep.subr.bf16.mxu1 %v244_v46  ;;  %v390_v45 = vunpack.c.l.s8.bf16 %v144_v41  ;;  %v79_v46 = vld [vmem:[%s1495_s1 + $0x1b0] sm:$0xff] }
  0xb7   :  { %793 = vmatprep.subr.bf16.mxu0 %v372_v47  ;;  %v143_v47 = vld [vmem:[%s1495_s1 + $0x3b0] sm:$0xff]  ;;  %v261_v49 = vunpack.c.l.s8.bf16 %v79_v46  ;;  %v263_v54 = vunpack.c.h.s8.bf16 %v79_v46 }
  0xb8   :  { %v389_v50 = vunpack.c.l.s8.bf16 %v143_v47  ;;  %v391_v55 = vunpack.c.h.s8.bf16 %v143_v47  ;;  %v868_v47 = vld [vmem:[%s1497_s2] sm:$0x3] }
  0xb9   :  { %622 = vmatpush1.bf16.msra.mxu1 %v243_v30  ;;  %v264_v30 = vunpack.c.h.s8.bf16 %v80_v40  ;;  %v279_v40 = vunpack.c.h.s8.bf16 %v87_v34 }
  0xba   :  { %794 = vmatpush1.bf16.msra.mxu0 %v371_v31  ;;  %623 = vmatprep.subr.bf16.mxu1 %v246_v32  ;;  %v392_v31 = vunpack.c.h.s8.bf16 %v144_v41  ;;  %v82_v32 = vld [vmem:[%s1495_s1 + $0x1c8] sm:$0xff]  ;;  %v407_v41 = vunpack.c.h.s8.bf16 %v151_v35 }
  0xbb   :  { %795 = vmatprep.subr.bf16.mxu0 %v374_v33  ;;  %v146_v33 = vld [vmem:[%s1495_s1 + $0x3c8] sm:$0xff] }
  0xbd   :  { %624 = vmatpush1.bf16.msra.mxu1 %v245_v56  ;;  %v266_v56 = vunpack.c.l.s8.bf16 %v82_v32 }
  0xbe   :  { %796 = vmatpush1.bf16.msra.mxu0 %v373_v57  ;;  %625 = vmatprep.subr.bf16.mxu1 %v248_v58  ;;  %v394_v57 = vunpack.c.l.s8.bf16 %v146_v33  ;;  %v81_v58 = vld [vmem:[%s1495_s1 + $0x1c0] sm:$0xff] }
  0xbf   :  { %797 = vmatprep.subr.bf16.mxu0 %v376_v59  ;;  %v145_v59 = vld [vmem:[%s1495_s1 + $0x3c0] sm:$0xff]  ;;  %v265_v60 = vunpack.c.l.s8.bf16 %v81_v58  ;;  %v267_v2 = vunpack.c.h.s8.bf16 %v81_v58 }
  0xc0   :  { %v393_v61 = vunpack.c.l.s8.bf16 %v145_v59  ;;  %v395_v3 = vunpack.c.h.s8.bf16 %v145_v59 }
  0xc1   :  { %626 = vmatpush1.bf16.msra.mxu1 %v247_v62  ;;  %v268_v62 = vunpack.c.h.s8.bf16 %v82_v32 }
  0xc2   :  { %798 = vmatpush1.bf16.msra.mxu0 %v375_v63  ;;  %638 = vmatprep.subr.bf16.mxu1 %v250_v0  ;;  %v396_v63 = vunpack.c.h.s8.bf16 %v146_v33  ;;  %v84_v0 = vld [vmem:[%s1495_s1 + $0x1d8] sm:$0xff] }
  0xc3   :  { %810 = vmatprep.subr.bf16.mxu0 %v378_v1  ;;  %v148_v1 = vld [vmem:[%s1495_s1 + $0x3d8] sm:$0xff]  ;;  %v272_v10 = vunpack.c.h.s8.bf16 %v84_v0 }
  0xc4   :  { %628 = vmatmul.mubr.bf16.vlgmr.msra.gmra.mrb[0].mxu1 %v916_v5  ;;  %v270_v5 = vunpack.c.l.s8.bf16 %v84_v0  ;;  %v400_v11 = vunpack.c.h.s8.bf16 %v148_v1 }
  0xc5   :  { %800 = vmatmul.mubr.bf16.vlgmr.msra.gmra.mrb[0].mxu0 %v924_v6  ;;  %639 = vmatpush1.bf16.msra.mxu1 %v249_v24  ;;  %v398_v6 = vunpack.c.l.s8.bf16 %v148_v1  ;;  %v83_v24 = vld [vmem:[%s1495_s1 + $0x1d0] sm:$0xff] }
  0xc6   :  { %811 = vmatpush1.bf16.msra.mxu0 %v377_v27  ;;  %640 = vmatprep.subr.bf16.mxu1 %v252_v28  ;;  %v147_v27 = vld [vmem:[%s1495_s1 + $0x3d0] sm:$0xff]  ;;  %v269_v28 = vunpack.c.l.s8.bf16 %v83_v24 }
  0xc7   :  { %812 = vmatprep.subr.bf16.mxu0 %v380_v29  ;;  %670 = vmatprep.mubr.bf16.mxu1 %v919_v12  ;;  %v397_v29 = vunpack.c.l.s8.bf16 %v147_v27  ;;  %v86_v12 = vld [vmem:[%s1495_s1 + $0x1e8] sm:$0xff] }
  0xc8   :  { %842 = vmatprep.mubr.bf16.mxu0 %v927_v13  ;;  %v150_v13 = vld [vmem:[%s1495_s1 + $0x3e8] sm:$0xff] }
  0xc9   :  { %641 = vmatpush1.bf16.msra.mxu1 %v251_v14  ;;  %v271_v14 = vunpack.c.h.s8.bf16 %v83_v24 }
  0xca   :  { %813 = vmatpush1.bf16.msra.mxu0 %v379_v15  ;;  %642 = vmatprep.subr.bf16.mxu1 %v254_v16  ;;  %v399_v15 = vunpack.c.h.s8.bf16 %v147_v27  ;;  %v274_v16 = vunpack.c.l.s8.bf16 %v86_v12 }
  0xcb   :  { %814 = vmatprep.subr.bf16.mxu0 %v382_v17  ;;  %v402_v17 = vunpack.c.l.s8.bf16 %v150_v13 }
  0xcd   :  { %643 = vmatpush1.bf16.msra.mxu1 %v253_v20  ;;  %v273_v20 = vunpack.c.l.s8.bf16 %v85_v18 }
  0xce   :  { %815 = vmatpush1.bf16.msra.mxu0 %v381_v21  ;;  %644 = vmatprep.subr.bf16.mxu1 %v256_v22  ;;  %v401_v21 = vunpack.c.l.s8.bf16 %v149_v19  ;;  %v276_v22 = vunpack.c.h.s8.bf16 %v86_v12 }
  0xcf   :  { %816 = vmatprep.subr.bf16.mxu0 %v384_v23  ;;  %v404_v23 = vunpack.c.h.s8.bf16 %v150_v13 }
  0xd1   :  { %645 = vmatpush1.bf16.msra.mxu1 %v255_v48  ;;  %v275_v48 = vunpack.c.h.s8.bf16 %v85_v18 }
  0xd2   :  { %817 = vmatpush1.bf16.msra.mxu0 %v383_v51  ;;  %646 = vmatprep.subr.bf16.mxu1 %v258_v52  ;;  %v403_v51 = vunpack.c.h.s8.bf16 %v149_v19  ;;  %v278_v52 = vunpack.c.l.s8.bf16 %v88_v25 }
  0xd3   :  { %818 = vmatprep.subr.bf16.mxu0 %v386_v53  ;;  %v406_v53 = vunpack.c.l.s8.bf16 %v152_v26 }
  0xd5   :  { %647 = vmatpush1.bf16.msra.mxu1 %v257_v36  ;;  %v277_v36 = vunpack.c.l.s8.bf16 %v87_v34 }
  0xd6   :  { %819 = vmatpush1.bf16.msra.mxu0 %v385_v37  ;;  %648 = vmatprep.subr.bf16.mxu1 %v260_v38  ;;  %v405_v37 = vunpack.c.l.s8.bf16 %v151_v35  ;;  %v280_v38 = vunpack.c.h.s8.bf16 %v88_v25 }
  0xd7   :  { %820 = vmatprep.subr.bf16.mxu0 %v388_v39  ;;  %v408_v39 = vunpack.c.h.s8.bf16 %v152_v26 }
  0xd9   :  { %649 = vmatpush1.bf16.msra.mxu1 %v259_v42  ;;  %v918_v42 = vcombine.low %v1364_v4, %v1373_v7 }
  0xda   :  { %821 = vmatpush1.bf16.msra.mxu0 %v387_v43  ;;  %650 = vmatprep.subr.bf16.mxu1 %v262_v44  ;;  %v926_v43 = vcombine.low %v1378_v8, %v1383_v9  ;;  %v870_v44 = vlaneseq }
  0xdb   :  { %822 = vmatprep.subr.bf16.mxu0 %v390_v45 }
  0xdc   :  { %v871_v45 = vshrl.u32 %v870_v44, 7 }
  0xdd   :  { %651 = vmatpush1.bf16.msra.mxu1 %v261_v49 }
  0xde   :  { %823 = vmatpush1.bf16.msra.mxu0 %v389_v50  ;;  %652 = vmatprep.subr.bf16.mxu1 %v264_v30  ;;  %v872_v46 = vsub.s32 0, %v871_v45  ;;  %v876_v49 = vsub.s32 1, %v871_v45  ;;  %v884_v50 = vld [vmem:[%s1498_s3] sm:$0x3] }
  0xdf   :  { %824 = vmatprep.subr.bf16.mxu0 %v392_v31 }
  0xe0   :  { %v873_v4 = vrot.slane %v868_v47, %v872_v46  ;;  %v877_v8 = vrot.slane %v868_v47, %v876_v49  ;;  %v889_v31 = vrot.slane %v884_v50, %v872_v46 }
  0xe1   :  { %653 = vmatpush1.bf16.msra.mxu1 %v263_v54 }
  0xe2   :  { %825 = vmatpush1.bf16.msra.mxu0 %v391_v55  ;;  %654 = vmatprep.subr.bf16.mxu1 %v266_v56  ;;  %v893_v55 = vrot.slane %v884_v50, %v876_v49 }
  0xe3   :  { %826 = vmatprep.subr.bf16.mxu0 %v394_v57 }
  0xe5   :  { %655 = vmatpush1.bf16.msra.mxu1 %v265_v60 }
  0xe6   :  { %827 = vmatpush1.bf16.msra.mxu0 %v393_v61  ;;  %656 = vmatprep.subr.bf16.mxu1 %v268_v62 }
  0xe7   :  { %828 = vmatprep.subr.bf16.mxu0 %v396_v63 }
  0xe9   :  { %657 = vmatpush1.bf16.msra.mxu1 %v267_v2 }
  0xea   :  { %829 = vmatpush1.bf16.msra.mxu0 %v395_v3  ;;  %658 = vmatprep.subr.bf16.mxu1 %v270_v5 }
  0xeb   :  { %830 = vmatprep.subr.bf16.mxu0 %v398_v6 }
  0xed   :  { %659 = vmatpush1.bf16.msra.mxu1 %v269_v28 }
  0xee   :  { %831 = vmatpush1.bf16.msra.mxu0 %v397_v29  ;;  %660 = vmatprep.subr.bf16.mxu1 %v272_v10 }
  0xef   :  { %832 = vmatprep.subr.bf16.mxu0 %v400_v11 }
  0xf1   :  { %661 = vmatpush1.bf16.msra.mxu1 %v271_v14 }
  0xf2   :  { %833 = vmatpush1.bf16.msra.mxu0 %v399_v15  ;;  %662 = vmatprep.subr.bf16.mxu1 %v274_v16 }
  0xf3   :  { %834 = vmatprep.subr.bf16.mxu0 %v402_v17 }
  0xf5   :  { %663 = vmatpush1.bf16.msra.mxu1 %v273_v20 }
  0xf6   :  { %835 = vmatpush1.bf16.msra.mxu0 %v401_v21  ;;  %664 = vmatprep.subr.bf16.mxu1 %v276_v22 }
  0xf7   :  { %836 = vmatprep.subr.bf16.mxu0 %v404_v23 }
  0xf9   :  { %665 = vmatpush1.bf16.msra.mxu1 %v275_v48 }
  0xfa   :  { %837 = vmatpush1.bf16.msra.mxu0 %v403_v51  ;;  %666 = vmatprep.subr.bf16.mxu1 %v278_v52 }
  0xfb   :  { %838 = vmatprep.subr.bf16.mxu0 %v406_v53 }
  0xfd   :  { %667 = vmatpush1.bf16.msra.mxu1 %v277_v36 }
  0xfe   :  { %839 = vmatpush1.bf16.msra.mxu0 %v405_v37  ;;  %668 = vmatprep.subr.bf16.mxu1 %v280_v38 }
  0xff   :  { %840 = vmatprep.subr.bf16.mxu0 %v408_v39 }
 0x101   :  { %669 = vmatpush1.bf16.msra.mxu1 %v279_v40 }
 0x102   :  { %841 = vmatpush1.bf16.msra.mxu0 %v407_v41 }
 0x104   :  { %671 = vmatmul.mubr.bf16.vlgmr.msra.gmra.mrb[0].mxu1 %v918_v42 }
 0x105   :  { %843 = vmatmul.mubr.bf16.vlgmr.msra.gmra.mrb[0].mxu0 %v926_v43 }
 0x1d7   :  { %v672_v7 = vpop.f32.mrb[0].mxu1 }
 0x1d8   :  { %v844_v30 = vpop.f32.mrb[0].mxu0  ;;  %v674_v32 = vpop.f32.mrb[1].mxu1 }
 0x1d9   :  { %v928_v9 = vadd.f32 %v844_v30, %v672_v7  ;;  %v846_v33 = vpop.f32.mrb[1].mxu0  ;;  %v676_v56 = vpop.f32.mrb[2].mxu1 }
 0x1da   :  { %v929_v54 = vadd.f32 %v846_v33, %v674_v32  ;;  %v848_v57 = vpop.f32.mrb[2].mxu0  ;;  %v678_v60 = vpop.f32.mrb[3].mxu1 }
 0x1db   :  { %v880_v58 = vmul.f32 %v928_v9, %v873_v4  ;;  %v930_v59 = vadd.f32 %v848_v57, %v676_v56  ;;  %v850_v61 = vpop.f32.mrb[3].mxu0 }
 0x1dc   :  { %v881_v62 = vmul.f32 %v929_v54, %v877_v8  ;;  %v931_v63 = vadd.f32 %v850_v61, %v678_v60 }
 0x1dd   :  { %v896_v0 = vadd.f32 %v889_v31, %v880_v58  ;;  %v882_v1 = vmul.f32 %v930_v59, %v873_v4 }
 0x1de   :  { %v897_v2 = vadd.f32 %v893_v55, %v881_v62  ;;  %v883_v3 = vmul.f32 %v931_v63, %v877_v8 }
 0x1df   :  { %v900_v5 = vmax.f32 %v896_v0, 0.0  ;;  %v898_v6 = vadd.f32 %v889_v31, %v882_v1 }
 0x1e0   :  { %v901_v24 = vmax.f32 %v897_v2, 0.0  ;;  %v899_v27 = vadd.f32 %v893_v55, %v883_v3 }
 0x1e1   :  { %904 = vst [vmem:[%s1499_s4] sm:$0xff] %v900_v5  ;;  %v902_v28 = vmax.f32 %v898_v6, 0.0 }
 0x1e2   :  { %905 = vst [vmem:[%s1499_s4 + $0x8] sm:$0xff] %v901_v24  ;;  %v903_v29 = vmax.f32 %v899_v27, 0.0 }
 0x1e3   :  { %906 = vst [vmem:[%s1499_s4 + $0x10] sm:$0xff] %v902_v28 }
 0x1e4   :  { %907 = vst [vmem:[%s1499_s4 + $0x18] sm:$0xff] %v903_v29 }

// kernel: re3net_forward.23
= control target key start
LH: loop header
LB: loop body
LE: loop exit
PB: predicated region body
PF: predicated region fallthrough
CT: control target
= control target key end

     0   :  { %v210_v0 = vmov 0.0   ;;  %vm211_vm0 = vmmov 0   ;;  %s268_s1 = inlined_call_operand.vmem [shape: bf16[128,128], index: 1, kind: input, shape index: {}]   ;;  %s269_s0 = inlined_call_operand.vmem [shape: bf16[16,128], index: 0, kind: input, shape index: {}]   ;;  %s270_s2 = inlined_call_operand.vmem [shape: f32[1,128], index: 2, kind: input, shape index: {}]   ;;  %s271_s3 = inlined_call_operand.vmem [shape: f32[16,128], index: 3, kind: output, shape index: {}]  }
   0x1   :  { %179 = vmatprep.subr.bf16.mxu0 %v210_v0  ;;  %v201_v1 = vld [vmem:[%s268_s1] sm:$0xff]   ;;  %195 = vmatprep.mubr.msk.bf16.mxu0 %vm211_vm0, %v210_v0  ;;  %v202_v2 = vld [vmem:[%s268_s1 + $0x8] sm:$0xff]   ;;  %v203_v3 = vld [vmem:[%s268_s1 + $0x10] sm:$0xff]  }
   0x2   :  { %180 = vmatpush3.bf16.msra.mxu0 %v201_v1  ;;  %v204_v4 = vld [vmem:[%s268_s1 + $0x18] sm:$0xff]   ;;  %v205_v5 = vld [vmem:[%s268_s1 + $0x20] sm:$0xff]   ;;  %v206_v6 = vld [vmem:[%s268_s1 + $0x28] sm:$0xff]  }
   0x3   :  { %181 = vmatprep.subr.bf16.mxu0 %v210_v0  ;;  %v207_v7 = vld [vmem:[%s268_s1 + $0x30] sm:$0xff]   ;;  %v208_v8 = vld [vmem:[%s268_s1 + $0x38] sm:$0xff]   ;;  %v209_v9 = vld [vmem:[%s269_s0] sm:$0xff]  }
   0x4   :  { %v169_v10 = vld [vmem:[%s270_s2] ss:$0 sm:$0xff] }
   0x6   :  { %182 = vmatpush3.bf16.msra.mxu0 %v202_v2 }
   0x7   :  { %183 = vmatprep.subr.bf16.mxu0 %v210_v0 }
   0xa   :  { %184 = vmatpush3.bf16.msra.mxu0 %v203_v3 }
   0xb   :  { %185 = vmatprep.subr.bf16.mxu0 %v210_v0 }
   0xe   :  { %186 = vmatpush3.bf16.msra.mxu0 %v204_v4 }
   0xf   :  { %187 = vmatprep.subr.bf16.mxu0 %v210_v0 }
  0x12   :  { %188 = vmatpush3.bf16.msra.mxu0 %v205_v5 }
  0x13   :  { %189 = vmatprep.subr.bf16.mxu0 %v210_v0 }
  0x16   :  { %190 = vmatpush3.bf16.msra.mxu0 %v206_v6 }
  0x17   :  { %191 = vmatprep.subr.bf16.mxu0 %v210_v0 }
  0x1a   :  { %192 = vmatpush3.bf16.msra.mxu0 %v207_v7 }
  0x1b   :  { %193 = vmatprep.subr.bf16.mxu0 %v210_v0 }
  0x1e   :  { %194 = vmatpush3.bf16.msra.mxu0 %v208_v8 }
  0x21   :  { %196 = vmatmul.mubr.bf16.vlgmr.msra.gmra.mrb[0].mxu0 %v209_v9 }
  0xf4   :  { %v129_v11 = vpop.f32.mrb[0].mxu0 }
  0xf5   :  { %v152_v12 = vadd.f32 %v169_v10, %v129_v11  ;;  %v197_v13 = vpop.f32.mrb[1].mxu0 }
  0xf6   :  { %v132_v14 = vpop.f32.mrb[2].mxu0 }
  0xf7   :  { %154 = vst [vmem:[%s271_s3] sm:$0xff] %v152_v12  ;;  %v153_v15 = vadd.f32 %v169_v10, %v132_v14  ;;  %v198_v16 = vpop.f32.mrb[3].mxu0 }
  0xf9   :  { %155 = vst [vmem:[%s271_s3 + $0x8] sm:$0xff] %v153_v15 }

</bundles_post_ra>
